<compile_context>
chip_gen: v7x
topology: tpu7x:2x2x1
jax: 0.10.0
libtpu: 0.0.40
codegen_flags: <defaults>
</compile_context>

<pallas_src>
import jax
import jax.numpy as jnp
from jax.experimental import pallas as pl
from jax.experimental.pallas import tpu as pltpu

N_EMBD = 384          # matches the PyTorch module
BLOCK_SIZE = 16       # max sequence length (position table size)
LN_EPS = 1e-5         # nn.LayerNorm default eps

_VMEM_LIMIT = 32 * 1024 * 1024   # well above actual use (~4 MiB), safe on v5e/v6e/v7x


def gpt_block_kernel(x_ref,
                     ln1_g, ln1_b, wk, wq, wv,
                     ln2_g, ln2_b, w1, b1, w2, b2,
                     lnf_g, lnf_b,
                     hf_ref):
    """Fused transformer block + final LayerNorm for the whole (B, T) batch.

    x_ref: (B, T, C) f32.  Matmul weights are bf16; accumulation is f32.
    Output hf_ref: (B*T, C) bf16 (operand dtype for the lm_head kernel).
    """
    B, T, C = x_ref.shape
    f32 = jnp.float32
    bf16 = jnp.bfloat16

    def layernorm(h, g, b):
        mu = jnp.mean(h, axis=-1, keepdims=True)
        var = jnp.mean((h - mu) ** 2, axis=-1, keepdims=True)
        return (h - mu) * jax.lax.rsqrt(var + LN_EPS) * g + b

    # Residual stream kept in f32, flattened so matmul M-dim is B*T.
    x = x_ref[...].reshape(B * T, C)

    # ---- self-attention (single head, head_size = n_embd) ----
    h = layernorm(x, ln1_g[...], ln1_b[...]).astype(bf16)
    q = jnp.dot(h, wq[...], preferred_element_type=f32)
    k = jnp.dot(h, wk[...], preferred_element_type=f32)
    v = jnp.dot(h, wv[...], preferred_element_type=f32)

    qb = q.reshape(B, T, C).astype(bf16)
    kb = k.reshape(B, T, C).astype(bf16)
    vb = v.reshape(B, T, C).astype(bf16)

    # Batched attention scores (B, T, T). Tiny at T<=16 -> lane-sparse is fine.
    wei = jnp.einsum('btc,bsc->bts', qb, kb,
                     preferred_element_type=f32) * (C ** -0.5)
    t_i = jax.lax.broadcasted_iota(jnp.int32, (B, T, T), 1)
    s_i = jax.lax.broadcasted_iota(jnp.int32, (B, T, T), 2)
    wei = jnp.where(t_i >= s_i, wei, -jnp.inf)          # causal (tril) mask
    wei = wei - jnp.max(wei, axis=-1, keepdims=True)
    p = jnp.exp(wei)
    denom = jnp.sum(p, axis=-1, keepdims=True)
    p = p * pl.reciprocal(denom, approx=True)           # softmax divide on EUP
    # TODO(synk): nn.Dropout(p=0.2) omitted — eval-mode (identity) semantics.
    att = jnp.einsum('bts,bsc->btc', p.astype(bf16), vb,
                     preferred_element_type=f32)
    x = x + att.reshape(B * T, C)                       # residual

    # ---- feed-forward: Linear(C,4C) -> ReLU -> Linear(4C,C) ----
    h2 = layernorm(x, ln2_g[...], ln2_b[...]).astype(bf16)
    h2 = jnp.dot(h2, w1[...], preferred_element_type=f32) + b1[...]
    h2 = jnp.maximum(h2, 0.0).astype(bf16)
    h2 = jnp.dot(h2, w2[...], preferred_element_type=f32) + b2[...]
    x = x + h2                                          # residual

    # ---- final LayerNorm ----
    hf = layernorm(x, lnf_g[...], lnf_b[...])
    hf_ref[...] = hf.astype(bf16)


def lm_head_kernel(hf_ref, w_ref, b_ref, o_ref):
    """One vocab tile of the lm_head: (B*T, C) @ (C, TV) + (1, TV)."""
    o_ref[...] = (jnp.dot(hf_ref[...], w_ref[...],
                          preferred_element_type=jnp.float32) + b_ref[...])


def gpt_forward(idx, params):
    """idx: (B, T) int32 token ids.  Returns logits (B, T, vocab_size) f32."""
    B, T = idx.shape
    C = N_EMBD
    V = params['lm_w'].shape[1]
    assert T <= BLOCK_SIZE, "T must not exceed block_size"

    # Embedding gathers (glue, plain JAX).
    tok = jnp.take(params['tok_emb'], idx, axis=0)   # (B, T, C)
    pos = params['pos_emb'][:T]                      # (T, C)
    x = (tok + pos).astype(jnp.float32)

    bf16 = jnp.bfloat16
    blk_args = (
        params['ln1_g'], params['ln1_b'],
        params['wk'].astype(bf16), params['wq'].astype(bf16), params['wv'].astype(bf16),
        params['ln2_g'], params['ln2_b'],
        params['w1'].astype(bf16), params['b1'],
        params['w2'].astype(bf16), params['b2'],
        params['lnf_g'], params['lnf_b'],
    )

    # --- transformer block + final LN: single invocation, everything resident ---
    vmem_spec = pl.BlockSpec(memory_space=pltpu.MemorySpace.VMEM)
    hf = pl.pallas_call(
        gpt_block_kernel,
        out_shape=jax.ShapeDtypeStruct((B * T, C), jnp.bfloat16),
        in_specs=[vmem_spec] * (1 + len(blk_args)),
        out_specs=vmem_spec,
        compiler_params=pltpu.CompilerParams(vmem_limit_bytes=_VMEM_LIMIT),
    )(x, *blk_args)

    # --- lm_head: vocab-tiled, lane-dense output, parallel grid axis (v7x 2 TCs) ---
    TV = V if V <= 2048 else 2048        # full dim (small V) or 128-multiple tile
    n_tiles = pl.cdiv(V, TV)
    logits_flat = pl.pallas_call(
        lm_head_kernel,
        out_shape=jax.ShapeDtypeStruct((B * T, V), jnp.float32),
        grid=(n_tiles,),
        in_specs=[
            pl.BlockSpec((B * T, C), lambda j: (0, 0)),
            pl.BlockSpec((C, TV), lambda j: (0, j)),
            pl.BlockSpec((1, TV), lambda j: (0, j)),
        ],
        out_specs=pl.BlockSpec((B * T, TV), lambda j: (0, j)),
        compiler_params=pltpu.CompilerParams(
            dimension_semantics=("parallel",),
            vmem_limit_bytes=_VMEM_LIMIT),
    )(hf, params['lm_w'].astype(bf16), params['lm_b'])

    return logits_flat.reshape(B, T, V)


def init_params(key, vocab_size):
    """Deterministic init mirroring GPTLanguageModel._init_weights:
    Linear / Embedding weights ~ N(0, 0.02), Linear biases = 0,
    LayerNorm gamma = 1, beta = 0."""
    C = N_EMBD
    ks = jax.random.split(key, 8)

    def normal(k, shape):
        return (0.02 * jax.random.normal(k, shape)).astype(jnp.float32)

    f32 = jnp.float32
    return dict(
        tok_emb=normal(ks[0], (vocab_size, C)),
        pos_emb=normal(ks[1], (BLOCK_SIZE, C)),
        ln1_g=jnp.ones((1, C), f32), ln1_b=jnp.zeros((1, C), f32),
        wk=normal(ks[2], (C, C)),
        wq=normal(ks[3], (C, C)),
        wv=normal(ks[4], (C, C)),
        ln2_g=jnp.ones((1, C), f32), ln2_b=jnp.zeros((1, C), f32),
        w1=normal(ks[5], (C, 4 * C)), b1=jnp.zeros((1, 4 * C), f32),
        w2=normal(ks[6], (4 * C, C)), b2=jnp.zeros((1, C), f32),
        lnf_g=jnp.ones((1, C), f32), lnf_b=jnp.zeros((1, C), f32),
        lm_w=normal(ks[7], (C, vocab_size)), lm_b=jnp.zeros((1, vocab_size), f32),
    )


def gpt_forward_ref(idx, params):
    """Pure-JAX reference with the same bf16-operand / f32-accumulate matmuls."""
    T = idx.shape[1]
    x = (params['tok_emb'][idx] + params['pos_emb'][:T]).astype(jnp.float32)
    bf16 = jnp.bfloat16

    def ln(h, g, b):
        mu = h.mean(-1, keepdims=True)
        var = ((h - mu) ** 2).mean(-1, keepdims=True)
        return (h - mu) / jnp.sqrt(var + LN_EPS) * g + b

    def bdot(a, w):
        return jnp.dot(a.astype(bf16), w.astype(bf16),
                       preferred_element_type=jnp.float32)

    h = ln(x, params['ln1_g'], params['ln1_b'])
    k = bdot(h, params['wk']); q = bdot(h, params['wq']); v = bdot(h, params['wv'])
    wei = jnp.einsum('btc,bsc->bts', q.astype(bf16), k.astype(bf16),
                     preferred_element_type=jnp.float32) * (N_EMBD ** -0.5)
    mask = jnp.tril(jnp.ones((T, T), bool))
    wei = jnp.where(mask, wei, -jnp.inf)
    wei = jax.nn.softmax(wei, axis=-1)
    x = x + jnp.einsum('bts,bsc->btc', wei.astype(bf16), v.astype(bf16),
                       preferred_element_type=jnp.float32)

    h2 = ln(x, params['ln2_g'], params['ln2_b'])
    h2 = bdot(h2, params['w1']) + params['b1']
    h2 = bdot(jax.nn.relu(h2), params['w2']) + params['b2']
    x = x + h2

    hf = ln(x, params['lnf_g'], params['lnf_b'])
    return bdot(hf, params['lm_w']) + params['lm_b']


if __name__ == "__main__":
    B, T = 2, 8               # T <= block_size (16)
    VOCAB = 128

    key = jax.random.PRNGKey(0)
    pkey, ikey = jax.random.split(key)
    params = init_params(pkey, VOCAB)
    idx = jax.random.randint(ikey, (B, T), 0, VOCAB, dtype=jnp.int32)

    logits = gpt_forward(idx, params)
    logits = jax.block_until_ready(logits)

    ref = gpt_forward_ref(idx, params)
    assert logits.shape == (B, T, VOCAB)
    # bf16 matmul operands (+ approx softmax reciprocal) -> loosened tolerance
    assert jnp.allclose(logits, ref, atol=1e-2, rtol=1e-2), "mismatch vs reference"

    print("KERNEL_OK")
</pallas_src>

<mosaic_0001>
module attributes {stable_mosaic.version = 11 : i64} {
  func.func @gpt_block_kernel(%arg0: memref<2x8x384xf32, #tpu.memory_space<vmem>>, %arg1: memref<1x384xf32, #tpu.memory_space<vmem>>, %arg2: memref<1x384xf32, #tpu.memory_space<vmem>>, %arg3: memref<384x384xbf16, #tpu.memory_space<vmem>>, %arg4: memref<384x384xbf16, #tpu.memory_space<vmem>>, %arg5: memref<384x384xbf16, #tpu.memory_space<vmem>>, %arg6: memref<1x384xf32, #tpu.memory_space<vmem>>, %arg7: memref<1x384xf32, #tpu.memory_space<vmem>>, %arg8: memref<384x1536xbf16, #tpu.memory_space<vmem>>, %arg9: memref<1x1536xf32, #tpu.memory_space<vmem>>, %arg10: memref<1536x384xbf16, #tpu.memory_space<vmem>>, %arg11: memref<1x384xf32, #tpu.memory_space<vmem>>, %arg12: memref<1x384xf32, #tpu.memory_space<vmem>>, %arg13: memref<1x384xf32, #tpu.memory_space<vmem>>, %arg14: memref<16x384xbf16, #tpu.memory_space<vmem>>) attributes {dimension_semantics = [], scalar_prefetch = 0 : i64, scratch_operands = 0 : i64, tpu.core_type = #tpu.core_type<tc>} {
    %c0 = arith.constant 0 : index
    %c0_0 = arith.constant 0 : index
    %c0_1 = arith.constant 0 : index
    %0 = vector.load %arg0[%c0, %c0_0, %c0_1] : memref<2x8x384xf32, #tpu.memory_space<vmem>>, vector<2x8x384xf32>
    %1 = vector.shape_cast %0 : vector<2x8x384xf32> to vector<16x384xf32>
    %c0_2 = arith.constant 0 : index
    %c0_3 = arith.constant 0 : index
    %2 = vector.load %arg1[%c0_2, %c0_3] : memref<1x384xf32, #tpu.memory_space<vmem>>, vector<1x384xf32>
    %c0_4 = arith.constant 0 : index
    %c0_5 = arith.constant 0 : index
    %3 = vector.load %arg2[%c0_4, %c0_5] : memref<1x384xf32, #tpu.memory_space<vmem>>, vector<1x384xf32>
    %cst = arith.constant dense<0.000000e+00> : vector<16xf32>
    %4 = vector.multi_reduction <add>, %1, %cst [1] : vector<16x384xf32> to vector<16xf32>
    %5 = vector.shape_cast %4 : vector<16xf32> to vector<16x1xf32>
    %cst_6 = arith.constant 3.840000e+02 : f32
    %6 = vector.broadcast %cst_6 : f32 to vector<16x1xf32>
    %7 = arith.divf %5, %6 : vector<16x1xf32>
    %8 = vector.broadcast %7 : vector<16x1xf32> to vector<16x384xf32>
    %9 = arith.subf %1, %8 : vector<16x384xf32>
    %10 = arith.mulf %9, %9 : vector<16x384xf32>
    %cst_7 = arith.constant dense<0.000000e+00> : vector<16xf32>
    %11 = vector.multi_reduction <add>, %10, %cst_7 [1] : vector<16x384xf32> to vector<16xf32>
    %12 = vector.shape_cast %11 : vector<16xf32> to vector<16x1xf32>
    %cst_8 = arith.constant 3.840000e+02 : f32
    %13 = vector.broadcast %cst_8 : f32 to vector<16x1xf32>
    %14 = arith.divf %12, %13 : vector<16x1xf32>
    %15 = vector.broadcast %7 : vector<16x1xf32> to vector<16x384xf32>
    %16 = arith.subf %1, %15 : vector<16x384xf32>
    %cst_9 = arith.constant 9.99999974E-6 : f32
    %17 = vector.broadcast %cst_9 : f32 to vector<16x1xf32>
    %18 = arith.addf %14, %17 : vector<16x1xf32>
    %19 = math.rsqrt %18 : vector<16x1xf32>
    %20 = vector.broadcast %19 : vector<16x1xf32> to vector<16x384xf32>
    %21 = arith.mulf %16, %20 : vector<16x384xf32>
    %22 = vector.broadcast %2 : vector<1x384xf32> to vector<16x384xf32>
    %23 = arith.mulf %21, %22 : vector<16x384xf32>
    %24 = vector.broadcast %3 : vector<1x384xf32> to vector<16x384xf32>
    %25 = arith.addf %23, %24 : vector<16x384xf32>
    %26 = arith.truncf %25 : vector<16x384xf32> to vector<16x384xbf16>
    %c0_10 = arith.constant 0 : index
    %c0_11 = arith.constant 0 : index
    %27 = vector.load %arg4[%c0_10, %c0_11] : memref<384x384xbf16, #tpu.memory_space<vmem>>, vector<384x384xbf16>
    %cst_12 = arith.constant dense<0.000000e+00> : vector<16x384xf32>
    %28 = tpu.matmul %26, %27, %cst_12 {dimension_numbers = #tpu.dot_dimension_numbers<[1], [0], [0], [1], [0, 0, 1, 1], [], []>} : vector<16x384xbf16>, vector<384x384xbf16>, vector<16x384xf32> -> vector<16x384xf32>
    %c0_13 = arith.constant 0 : index
    %c0_14 = arith.constant 0 : index
    %29 = vector.load %arg3[%c0_13, %c0_14] : memref<384x384xbf16, #tpu.memory_space<vmem>>, vector<384x384xbf16>
    %cst_15 = arith.constant dense<0.000000e+00> : vector<16x384xf32>
    %30 = tpu.matmul %26, %29, %cst_15 {dimension_numbers = #tpu.dot_dimension_numbers<[1], [0], [0], [1], [0, 0, 1, 1], [], []>} : vector<16x384xbf16>, vector<384x384xbf16>, vector<16x384xf32> -> vector<16x384xf32>
    %c0_16 = arith.constant 0 : index
    %c0_17 = arith.constant 0 : index
    %31 = vector.load %arg5[%c0_16, %c0_17] : memref<384x384xbf16, #tpu.memory_space<vmem>>, vector<384x384xbf16>
    %cst_18 = arith.constant dense<0.000000e+00> : vector<16x384xf32>
    %32 = tpu.matmul %26, %31, %cst_18 {dimension_numbers = #tpu.dot_dimension_numbers<[1], [0], [0], [1], [0, 0, 1, 1], [], []>} : vector<16x384xbf16>, vector<384x384xbf16>, vector<16x384xf32> -> vector<16x384xf32>
    %33 = vector.shape_cast %28 : vector<16x384xf32> to vector<2x8x384xf32>
    %34 = arith.truncf %33 : vector<2x8x384xf32> to vector<2x8x384xbf16>
    %35 = vector.shape_cast %30 : vector<16x384xf32> to vector<2x8x384xf32>
    %36 = arith.truncf %35 : vector<2x8x384xf32> to vector<2x8x384xbf16>
    %37 = vector.shape_cast %32 : vector<16x384xf32> to vector<2x8x384xf32>
    %38 = arith.truncf %37 : vector<2x8x384xf32> to vector<2x8x384xbf16>
    "tpu.trace_start"() <{level = 10 : i32, message = "btc,bsc->bts"}> : () -> ()
    %cst_19 = arith.constant dense<0.000000e+00> : vector<2x8x8xf32>
    %39 = tpu.matmul %34, %36, %cst_19 {dimension_numbers = #tpu.dot_dimension_numbers<[2], [2], [1], [1], [0, 0, 0, 1, 1, 1], [0], [0]>} : vector<2x8x384xbf16>, vector<2x8x384xbf16>, vector<2x8x8xf32> -> vector<2x8x8xf32>
    "tpu.trace_stop"() : () -> ()
    %cst_20 = arith.constant 0.0510310382 : f32
    %40 = vector.broadcast %cst_20 : f32 to vector<2x8x8xf32>
    %41 = arith.mulf %39, %40 : vector<2x8x8xf32>
    %42 = tpu.iota {dimensions = array<i32: 1>} : vector<2x8x8xi32>
    %43 = tpu.iota {dimensions = array<i32: 2>} : vector<2x8x8xi32>
    %44 = arith.cmpi sge, %42, %43 : vector<2x8x8xi32>
    %cst_21 = arith.constant 0xFF800000 : f32
    %45 = vector.broadcast %cst_21 : f32 to vector<2x8x8xf32>
    %46 = arith.select %44, %41, %45 : vector<2x8x8xi1>, vector<2x8x8xf32>
    %cst_22 = arith.constant dense<0xFF800000> : vector<2x8xf32>
    %47 = vector.multi_reduction <maximumf>, %46, %cst_22 [2] : vector<2x8x8xf32> to vector<2x8xf32>
    %48 = vector.shape_cast %47 : vector<2x8xf32> to vector<2x8x1xf32>
    %49 = vector.broadcast %48 : vector<2x8x1xf32> to vector<2x8x8xf32>
    %50 = arith.subf %46, %49 : vector<2x8x8xf32>
    %51 = math.exp %50 : vector<2x8x8xf32>
    %cst_23 = arith.constant dense<0.000000e+00> : vector<2x8xf32>
    %52 = vector.multi_reduction <add>, %51, %cst_23 [2] : vector<2x8x8xf32> to vector<2x8xf32>
    %53 = vector.shape_cast %52 : vector<2x8xf32> to vector<2x8x1xf32>
    %54 = tpu.reciprocal %53 {approx = true} : vector<2x8x1xf32> -> vector<2x8x1xf32>
    %55 = vector.broadcast %54 : vector<2x8x1xf32> to vector<2x8x8xf32>
    %56 = arith.mulf %51, %55 : vector<2x8x8xf32>
    %57 = arith.truncf %56 : vector<2x8x8xf32> to vector<2x8x8xbf16>
    "tpu.trace_start"() <{level = 10 : i32, message = "bts,bsc->btc"}> : () -> ()
    %cst_24 = arith.constant dense<0.000000e+00> : vector<2x8x384xf32>
    %58 = tpu.matmul %57, %38, %cst_24 {dimension_numbers = #tpu.dot_dimension_numbers<[2], [1], [1], [2], [0, 0, 0, 1, 1, 2], [0], [0]>} : vector<2x8x8xbf16>, vector<2x8x384xbf16>, vector<2x8x384xf32> -> vector<2x8x384xf32>
    "tpu.trace_stop"() : () -> ()
    %59 = vector.shape_cast %58 : vector<2x8x384xf32> to vector<16x384xf32>
    %60 = arith.addf %1, %59 : vector<16x384xf32>
    %c0_25 = arith.constant 0 : index
    %c0_26 = arith.constant 0 : index
    %61 = vector.load %arg6[%c0_25, %c0_26] : memref<1x384xf32, #tpu.memory_space<vmem>>, vector<1x384xf32>
    %c0_27 = arith.constant 0 : index
    %c0_28 = arith.constant 0 : index
    %62 = vector.load %arg7[%c0_27, %c0_28] : memref<1x384xf32, #tpu.memory_space<vmem>>, vector<1x384xf32>
    %cst_29 = arith.constant dense<0.000000e+00> : vector<16xf32>
    %63 = vector.multi_reduction <add>, %60, %cst_29 [1] : vector<16x384xf32> to vector<16xf32>
    %64 = vector.shape_cast %63 : vector<16xf32> to vector<16x1xf32>
    %cst_30 = arith.constant 3.840000e+02 : f32
    %65 = vector.broadcast %cst_30 : f32 to vector<16x1xf32>
    %66 = arith.divf %64, %65 : vector<16x1xf32>
    %67 = vector.broadcast %66 : vector<16x1xf32> to vector<16x384xf32>
    %68 = arith.subf %60, %67 : vector<16x384xf32>
    %69 = arith.mulf %68, %68 : vector<16x384xf32>
    %cst_31 = arith.constant dense<0.000000e+00> : vector<16xf32>
    %70 = vector.multi_reduction <add>, %69, %cst_31 [1] : vector<16x384xf32> to vector<16xf32>
    %71 = vector.shape_cast %70 : vector<16xf32> to vector<16x1xf32>
    %cst_32 = arith.constant 3.840000e+02 : f32
    %72 = vector.broadcast %cst_32 : f32 to vector<16x1xf32>
    %73 = arith.divf %71, %72 : vector<16x1xf32>
    %74 = vector.broadcast %66 : vector<16x1xf32> to vector<16x384xf32>
    %75 = arith.subf %60, %74 : vector<16x384xf32>
    %cst_33 = arith.constant 9.99999974E-6 : f32
    %76 = vector.broadcast %cst_33 : f32 to vector<16x1xf32>
    %77 = arith.addf %73, %76 : vector<16x1xf32>
    %78 = math.rsqrt %77 : vector<16x1xf32>
    %79 = vector.broadcast %78 : vector<16x1xf32> to vector<16x384xf32>
    %80 = arith.mulf %75, %79 : vector<16x384xf32>
    %81 = vector.broadcast %61 : vector<1x384xf32> to vector<16x384xf32>
    %82 = arith.mulf %80, %81 : vector<16x384xf32>
    %83 = vector.broadcast %62 : vector<1x384xf32> to vector<16x384xf32>
    %84 = arith.addf %82, %83 : vector<16x384xf32>
    %85 = arith.truncf %84 : vector<16x384xf32> to vector<16x384xbf16>
    %c0_34 = arith.constant 0 : index
    %c0_35 = arith.constant 0 : index
    %86 = vector.load %arg8[%c0_34, %c0_35] : memref<384x1536xbf16, #tpu.memory_space<vmem>>, vector<384x1536xbf16>
    %cst_36 = arith.constant dense<0.000000e+00> : vector<16x1536xf32>
    %87 = tpu.matmul %85, %86, %cst_36 {dimension_numbers = #tpu.dot_dimension_numbers<[1], [0], [0], [1], [0, 0, 1, 1], [], []>} : vector<16x384xbf16>, vector<384x1536xbf16>, vector<16x1536xf32> -> vector<16x1536xf32>
    %c0_37 = arith.constant 0 : index
    %c0_38 = arith.constant 0 : index
    %88 = vector.load %arg9[%c0_37, %c0_38] : memref<1x1536xf32, #tpu.memory_space<vmem>>, vector<1x1536xf32>
    %89 = vector.broadcast %88 : vector<1x1536xf32> to vector<16x1536xf32>
    %90 = arith.addf %87, %89 : vector<16x1536xf32>
    %cst_39 = arith.constant 0.000000e+00 : f32
    %91 = vector.broadcast %cst_39 : f32 to vector<16x1536xf32>
    %92 = arith.maximumf %90, %91 : vector<16x1536xf32>
    %93 = arith.truncf %92 : vector<16x1536xf32> to vector<16x1536xbf16>
    %c0_40 = arith.constant 0 : index
    %c0_41 = arith.constant 0 : index
    %94 = vector.load %arg10[%c0_40, %c0_41] : memref<1536x384xbf16, #tpu.memory_space<vmem>>, vector<1536x384xbf16>
    %cst_42 = arith.constant dense<0.000000e+00> : vector<16x384xf32>
    %95 = tpu.matmul %93, %94, %cst_42 {dimension_numbers = #tpu.dot_dimension_numbers<[1], [0], [0], [1], [0, 0, 1, 1], [], []>} : vector<16x1536xbf16>, vector<1536x384xbf16>, vector<16x384xf32> -> vector<16x384xf32>
    %c0_43 = arith.constant 0 : index
    %c0_44 = arith.constant 0 : index
    %96 = vector.load %arg11[%c0_43, %c0_44] : memref<1x384xf32, #tpu.memory_space<vmem>>, vector<1x384xf32>
    %97 = vector.broadcast %96 : vector<1x384xf32> to vector<16x384xf32>
    %98 = arith.addf %95, %97 : vector<16x384xf32>
    %99 = arith.addf %60, %98 : vector<16x384xf32>
    %c0_45 = arith.constant 0 : index
    %c0_46 = arith.constant 0 : index
    %100 = vector.load %arg12[%c0_45, %c0_46] : memref<1x384xf32, #tpu.memory_space<vmem>>, vector<1x384xf32>
    %c0_47 = arith.constant 0 : index
    %c0_48 = arith.constant 0 : index
    %101 = vector.load %arg13[%c0_47, %c0_48] : memref<1x384xf32, #tpu.memory_space<vmem>>, vector<1x384xf32>
    %cst_49 = arith.constant dense<0.000000e+00> : vector<16xf32>
    %102 = vector.multi_reduction <add>, %99, %cst_49 [1] : vector<16x384xf32> to vector<16xf32>
    %103 = vector.shape_cast %102 : vector<16xf32> to vector<16x1xf32>
    %cst_50 = arith.constant 3.840000e+02 : f32
    %104 = vector.broadcast %cst_50 : f32 to vector<16x1xf32>
    %105 = arith.divf %103, %104 : vector<16x1xf32>
    %106 = vector.broadcast %105 : vector<16x1xf32> to vector<16x384xf32>
    %107 = arith.subf %99, %106 : vector<16x384xf32>
    %108 = arith.mulf %107, %107 : vector<16x384xf32>
    %cst_51 = arith.constant dense<0.000000e+00> : vector<16xf32>
    %109 = vector.multi_reduction <add>, %108, %cst_51 [1] : vector<16x384xf32> to vector<16xf32>
    %110 = vector.shape_cast %109 : vector<16xf32> to vector<16x1xf32>
    %cst_52 = arith.constant 3.840000e+02 : f32
    %111 = vector.broadcast %cst_52 : f32 to vector<16x1xf32>
    %112 = arith.divf %110, %111 : vector<16x1xf32>
    %113 = vector.broadcast %105 : vector<16x1xf32> to vector<16x384xf32>
    %114 = arith.subf %99, %113 : vector<16x384xf32>
    %cst_53 = arith.constant 9.99999974E-6 : f32
    %115 = vector.broadcast %cst_53 : f32 to vector<16x1xf32>
    %116 = arith.addf %112, %115 : vector<16x1xf32>
    %117 = math.rsqrt %116 : vector<16x1xf32>
    %118 = vector.broadcast %117 : vector<16x1xf32> to vector<16x384xf32>
    %119 = arith.mulf %114, %118 : vector<16x384xf32>
    %120 = vector.broadcast %100 : vector<1x384xf32> to vector<16x384xf32>
    %121 = arith.mulf %119, %120 : vector<16x384xf32>
    %122 = vector.broadcast %101 : vector<1x384xf32> to vector<16x384xf32>
    %123 = arith.addf %121, %122 : vector<16x384xf32>
    %124 = arith.truncf %123 : vector<16x384xf32> to vector<16x384xbf16>
    %c0_54 = arith.constant 0 : index
    %c0_55 = arith.constant 0 : index
    %125 = vector.load %arg14[%c0_54, %c0_55] : memref<16x384xbf16, #tpu.memory_space<vmem>>, vector<16x384xbf16>
    tpu.vector_store %arg14[%c0_54, %c0_55], %124 {strides = array<i32>} : memref<16x384xbf16, #tpu.memory_space<vmem>>, vector<16x384xbf16>,
    return
  }
}

</mosaic_0001>

<bundles_post_ra>
// kernel: tpu_custom_call.1
= control target key start
LH: loop header
LB: loop body
LE: loop exit
PB: predicated region body
PF: predicated region fallthrough
CT: control target
= control target key end

     0   :  { %19 = vsyncpa [#allocation3], 0  ;;  %s11065_s0 = inlined_call_operand.hbm [shape: f32[2,8,384], index: 0, kind: input, shape index: {}]   ;;  %s11066_s1 = inlined_call_operand.hbm [shape: f32[1,384], index: 1, kind: input, shape index: {}]   ;;  %s11067_s2 = inlined_call_operand.hbm [shape: f32[1,384], index: 2, kind: input, shape index: {}]   ;;  %s11068_s3 = inlined_call_operand.hbm [shape: bf16[384,384], index: 3, kind: input, shape index: {}]   ;;  %s11069_s4 = inlined_call_operand.hbm [shape: bf16[384,384], index: 4, kind: input, shape index: {}]   ;;  %s11070_s5 = inlined_call_operand.hbm [shape: bf16[384,384], index: 5, kind: input, shape index: {}]   ;;  %s11071_s6 = inlined_call_operand.hbm [shape: f32[1,384], index: 6, kind: input, shape index: {}]   ;;  %s11072_s7 = inlined_call_operand.hbm [shape: f32[1,384], index: 7, kind: input, shape index: {}]   ;;  %s11073_s8 = inlined_call_operand.hbm [shape: bf16[384,1536], index: 8, kind: input, shape index: {}]   ;;  %s11074_s9 = inlined_call_operand.hbm [shape: f32[1,1536], index: 9, kind: input, shape index: {}]   ;;  %s11075_s10 = inlined_call_operand.hbm [shape: bf16[1536,384], index: 10, kind: input, shape index: {}]   ;;  %s11076_s11 = inlined_call_operand.hbm [shape: f32[1,384], index: 11, kind: input, shape index: {}]   ;;  %s11077_s12 = inlined_call_operand.hbm [shape: f32[1,384], index: 12, kind: input, shape index: {}]   ;;  %s11078_s13 = inlined_call_operand.hbm [shape: f32[1,384], index: 13, kind: input, shape index: {}]   ;;  %s11079_s14 = inlined_call_operand.hbm [shape: bf16[16,384], index: 14, kind: output, shape index: {}]  }
   0x1   :  { %20 = vsyncpa [#allocation6], 0 }
   0x2   :  { %21 = vsyncpa [#allocation9], 0 }
   0x3   :  { %22 = vsyncpa [#allocation12], 0 }
   0x4   :  { %23 = vsyncpa [#allocation15], 0 }
   0x5   :  { %24 = vsyncpa [#allocation18], 0 }
   0x6   :  { %25 = vsyncpa [#allocation21], 0 }
   0x7   :  { %26 = vsyncpa [#allocation24], 0 }
   0x8   :  { %27 = vsyncpa [#allocation4], 0  ;;  %s10405_s29 = smov [#allocation5]   ;;  %s10406_s15 = smov [#allocation8]  }
   0x9   :  { %s46_s30 = sshll.u32 %s10405_s29, 4  ;;  %s65_s16 = sshll.u32 %s10406_s15, 4  ;;  %s47_s30 = int_to_ptr.vmem [resolvable:$true] %s46_s30  ;;  %s10504_s16 = int_to_ptr.vmem [resolvable:$true] %s65_s16 }
   0xa   :  { %s10057_s19 = scalar_lea.hbm %s11066_s1, 48 }
   0xb   :  { %p10058_p0 = scmp.ne.s32.totalorder %s11066_s1, %s10057_s19  ;;  %p10061_p1 = scmp.lt.u32.totalorder %s10057_s19, %s11066_s1 }
   0xd   :  { %p10063_p2 = pnand %p10061_p1, %p10058_p0 }
   0xf   :  { %10066 = shalt.err (!%p10063_p2)
}
  0x10   :  { %s10067_s24 = scalar_lea.vmem %s47_s30, 48  ;;  %s10071_s25 = scalar_lea.vmem %s47_s30, 64 }
  0x11   :  { %p10068_p3 = scmp.ne.s32.totalorder %s47_s30, %s10067_s24  ;;  %p10072_p4 = scmp.lt.s32.totalorder %s47_s30, %s47_s30 }
  0x12   :  { %p10073_p5 = scmp.lt.s32.totalorder %s10071_s25, %s10067_s24 }
  0x14   :  { %p10074_p6 = por %p10073_p5, %p10072_p4 }
  0x16   :  { %p10075_p7 = pnand %p10074_p6, %p10068_p3 }
  0x18   :  { %10078 = shalt.err (!%p10075_p7)
}
  0x19   :  { %49 = dma.hbm_to_vmem [thread:$0]  %s11066_s1, 48, %s47_s30, [#allocation6]  }
  0x1a   :  { %s10079_s15 = scalar_lea.hbm %s11068_s3, 9216 }
  0x1b   :  { %p10080_p8 = scmp.ne.s32.totalorder %s11068_s3, %s10079_s15  ;;  %p10083_p9 = scmp.lt.u32.totalorder %s10079_s15, %s11068_s3 }
  0x1d   :  { %p10085_p10 = pnand %p10083_p9, %p10080_p8 }
  0x1f   :  { %10088 = shalt.err (!%p10085_p10)
}
  0x20   :  { %s10089_s21 = scalar_lea.vmem %s10504_s16, 9216  ;;  %p10094_p12 = scmp.lt.s32.totalorder %s10504_s16, %s10504_s16 }
  0x21   :  { %p10090_p11 = scmp.ne.s32.totalorder %s10504_s16, %s10089_s21  ;;  %p10095_p13 = scmp.lt.s32.totalorder %s10089_s21, %s10089_s21 }
  0x23   :  { %p10096_p0 = por %p10095_p13, %p10094_p12 }
  0x25   :  { %p10097_p1 = pnand %p10096_p0, %p10090_p11 }
  0x27   :  { %10100 = shalt.err (!%p10097_p1)
}
  0x28   :  { %s10407_s1 = smov 192   ;;  %s10408_s30 = smov 12  }
  0x29   :  { %71 = dma.hbm_to_vmem [thread:$0]  %s11068_s3, 9216, %s10504_s16, [#allocation9], %s10407_s1, %s10407_s1, %s10408_s30  }
  0x2a   :  { %s10409_s24 = smov [#allocation11]   ;;  %s10410_s26 = smov [#allocation14]  }
  0x2b   :  { %s89_s25 = sshll.u32 %s10409_s24, 4  ;;  %s112_s27 = sshll.u32 %s10410_s26, 4  ;;  %s90_s25 = int_to_ptr.vmem [resolvable:$true] %s89_s25  ;;  %s113_s27 = int_to_ptr.vmem [resolvable:$true] %s112_s27 }
  0x2c   :  { %s10101_s15 = scalar_lea.hbm %s11070_s5, 9216 }
  0x2d   :  { %p10102_p2 = scmp.ne.s32.totalorder %s11070_s5, %s10101_s15  ;;  %p10105_p3 = scmp.lt.u32.totalorder %s10101_s15, %s11070_s5 }
  0x2f   :  { %p10107_p4 = pnand %p10105_p3, %p10102_p2 }
  0x31   :  { %10110 = shalt.err (!%p10107_p4)
}
  0x32   :  { %s10111_s3 = scalar_lea.vmem %s90_s25, 9216  ;;  %p10116_p6 = scmp.lt.s32.totalorder %s90_s25, %s90_s25 }
  0x33   :  { %p10112_p5 = scmp.ne.s32.totalorder %s90_s25, %s10111_s3  ;;  %p10117_p7 = scmp.lt.s32.totalorder %s10111_s3, %s10111_s3 }
  0x35   :  { %p10118_p8 = por %p10117_p7, %p10116_p6 }
  0x37   :  { %p10119_p9 = pnand %p10118_p8, %p10112_p5 }
  0x39   :  { %10122 = shalt.err (!%p10119_p9)
}
  0x3a   :  { %95 = dma.hbm_to_vmem [thread:$0]  %s11070_s5, 9216, %s90_s25, [#allocation12], %s10407_s1, %s10407_s1, %s10408_s30  }
  0x3b   :  { %s10123_s24 = scalar_lea.hbm %s11072_s7, 48 }
  0x3c   :  { %p10124_p10 = scmp.ne.s32.totalorder %s11072_s7, %s10123_s24  ;;  %p10127_p11 = scmp.lt.u32.totalorder %s10123_s24, %s11072_s7 }
  0x3e   :  { %p10129_p12 = pnand %p10127_p11, %p10124_p10 }
  0x40   :  { %10132 = shalt.err (!%p10129_p12)
}
  0x41   :  { %s10133_s17 = scalar_lea.vmem %s113_s27, 48  ;;  %s10137_s18 = scalar_lea.vmem %s113_s27, 64 }
  0x42   :  { %p10134_p13 = scmp.ne.s32.totalorder %s113_s27, %s10133_s17  ;;  %p10138_p0 = scmp.lt.s32.totalorder %s113_s27, %s113_s27 }
  0x43   :  { %p10139_p1 = scmp.lt.s32.totalorder %s10137_s18, %s10133_s17 }
  0x45   :  { %p10140_p2 = por %p10139_p1, %p10138_p0 }
  0x47   :  { %p10141_p3 = pnand %p10140_p2, %p10134_p13 }
  0x49   :  { %10144 = shalt.err (!%p10141_p3)
}
  0x4a   :  { %115 = dma.hbm_to_vmem [thread:$0]  %s11072_s7, 48, %s113_s27, [#allocation15]  }
  0x4b   :  { %s10411_s19 = smov [#allocation17]   ;;  %s10412_s3 = smov [#allocation20]  }
  0x4c   :  { %s134_s20 = sshll.u32 %s10411_s19, 4  ;;  %s156_s16 = sshll.u32 %s10412_s3, 4  ;;  %s135_s20 = int_to_ptr.vmem [resolvable:$true] %s134_s20  ;;  %s157_s16 = int_to_ptr.vmem [resolvable:$true] %s156_s16 }
  0x4d   :  { %s10145_s23 = scalar_lea.hbm %s11074_s9, 192 }
  0x4e   :  { %p10146_p4 = scmp.ne.s32.totalorder %s11074_s9, %s10145_s23  ;;  %p10149_p5 = scmp.lt.u32.totalorder %s10145_s23, %s11074_s9 }
  0x50   :  { %p10151_p6 = pnand %p10149_p5, %p10146_p4 }
  0x52   :  { %10154 = shalt.err (!%p10151_p6)
}
  0x53   :  { %s10155_s7 = scalar_lea.vmem %s135_s20, 192  ;;  %p10160_p8 = scmp.lt.s32.totalorder %s135_s20, %s135_s20 }
  0x54   :  { %p10156_p7 = scmp.ne.s32.totalorder %s135_s20, %s10155_s7  ;;  %p10161_p9 = scmp.lt.s32.totalorder %s10155_s7, %s10155_s7 }
  0x56   :  { %p10162_p10 = por %p10161_p9, %p10160_p8 }
  0x58   :  { %p10163_p11 = pnand %p10162_p10, %p10156_p7 }
  0x5a   :  { %10166 = shalt.err (!%p10163_p11)
}
  0x5b   :  { %137 = dma.hbm_to_vmem [thread:$0]  %s11074_s9, 192, %s135_s20, [#allocation18]  }
  0x5c   :  { %s10167_s5 = scalar_lea.hbm %s11076_s11, 48 }
  0x5d   :  { %p10168_p12 = scmp.ne.s32.totalorder %s11076_s11, %s10167_s5  ;;  %p10171_p13 = scmp.lt.u32.totalorder %s10167_s5, %s11076_s11 }
  0x5f   :  { %p10173_p0 = pnand %p10171_p13, %p10168_p12 }
  0x61   :  { %10176 = shalt.err (!%p10173_p0)
}
  0x62   :  { %s10177_s22 = scalar_lea.vmem %s157_s16, 48  ;;  %s10181_s23 = scalar_lea.vmem %s157_s16, 64 }
  0x63   :  { %p10178_p1 = scmp.ne.s32.totalorder %s157_s16, %s10177_s22  ;;  %p10182_p2 = scmp.lt.s32.totalorder %s157_s16, %s157_s16 }
  0x64   :  { %p10183_p3 = scmp.lt.s32.totalorder %s10181_s23, %s10177_s22 }
  0x66   :  { %p10184_p4 = por %p10183_p3, %p10182_p2 }
  0x68   :  { %p10185_p5 = pnand %p10184_p4, %p10178_p1 }
  0x6a   :  { %10188 = shalt.err (!%p10185_p5)
}
  0x6b   :  { %159 = dma.hbm_to_vmem [thread:$0]  %s11076_s11, 48, %s157_s16, [#allocation21]  }
  0x6c   :  { %s10413_s24 = smov [#allocation2]   ;;  %s10189_s7 = scalar_lea.hbm %s11065_s0, 768 }
  0x6d   :  { %s33_s26 = sshll.u32 %s10413_s24, 4  ;;  %p10190_p6 = scmp.ne.s32.totalorder %s11065_s0, %s10189_s7  ;;  %s34_s26 = int_to_ptr.vmem [resolvable:$true] %s33_s26 }
  0x6e   :  { %p10193_p7 = scmp.lt.u32.totalorder %s10189_s7, %s11065_s0 }
  0x70   :  { %p10195_p8 = pnand %p10193_p7, %p10190_p6 }
  0x72   :  { %10198 = shalt.err (!%p10195_p8)
}
  0x73   :  { %s10199_s5 = scalar_lea.vmem %s34_s26, 768  ;;  %p10204_p10 = scmp.lt.s32.totalorder %s34_s26, %s34_s26 }
  0x74   :  { %p10200_p9 = scmp.ne.s32.totalorder %s34_s26, %s10199_s5  ;;  %p10205_p11 = scmp.lt.s32.totalorder %s10199_s5, %s10199_s5 }
  0x76   :  { %p10206_p12 = por %p10205_p11, %p10204_p10 }
  0x78   :  { %p10207_p13 = pnand %p10206_p12, %p10200_p9 }
  0x7a   :  { %10210 = shalt.err (!%p10207_p13)
}
  0x7b   :  { %s10414_s11 = smov 384   ;;  %s10415_s16 = smov 24  }
  0x7c   :  { %39 = dma.hbm_to_vmem [thread:$0]  %s11065_s0, 768, %s34_s26, [#allocation3], %s10414_s11, %s10414_s11, %s10415_s16  }
  0x7d   :  { %s10416_s3 = smov [#allocation7]   ;;  %s10417_s22 = smov [#allocation10]  }
  0x7e   :  { %s56_s21 = sshll.u32 %s10416_s3, 4  ;;  %s77_s23 = sshll.u32 %s10417_s22, 4  ;;  %s57_s21 = int_to_ptr.vmem [resolvable:$true] %s56_s21  ;;  %s78_s23 = int_to_ptr.vmem [resolvable:$true] %s77_s23 }
  0x7f   :  { %s10211_s24 = scalar_lea.hbm %s11067_s2, 48 }
  0x80   :  { %p10212_p0 = scmp.ne.s32.totalorder %s11067_s2, %s10211_s24  ;;  %p10215_p1 = scmp.lt.u32.totalorder %s10211_s24, %s11067_s2 }
  0x82   :  { %p10217_p2 = pnand %p10215_p1, %p10212_p0 }
  0x84   :  { %10220 = shalt.err (!%p10217_p2)
}
  0x85   :  { %s10221_s0 = scalar_lea.vmem %s57_s21, 48  ;;  %s10225_s26 = scalar_lea.vmem %s57_s21, 64 }
  0x86   :  { %p10222_p3 = scmp.ne.s32.totalorder %s57_s21, %s10221_s0  ;;  %p10226_p4 = scmp.lt.s32.totalorder %s57_s21, %s57_s21 }
  0x87   :  { %p10227_p5 = scmp.lt.s32.totalorder %s10225_s26, %s10221_s0 }
  0x89   :  { %p10228_p6 = por %p10227_p5, %p10226_p4 }
  0x8b   :  { %p10229_p7 = pnand %p10228_p6, %p10222_p3 }
  0x8d   :  { %10232 = shalt.err (!%p10229_p7)
}
  0x8e   :  { %59 = dma.hbm_to_vmem [thread:$0]  %s11067_s2, 48, %s57_s21, [#allocation6]  }
  0x8f   :  { %s10233_s11 = scalar_lea.hbm %s11069_s4, 9216 }
  0x90   :  { %p10234_p8 = scmp.ne.s32.totalorder %s11069_s4, %s10233_s11  ;;  %p10237_p9 = scmp.lt.u32.totalorder %s10233_s11, %s11069_s4 }
  0x92   :  { %p10239_p10 = pnand %p10237_p9, %p10234_p8 }
  0x94   :  { %10242 = shalt.err (!%p10239_p10)
}
  0x95   :  { %s10243_s22 = scalar_lea.vmem %s78_s23, 9216  ;;  %p10248_p12 = scmp.lt.s32.totalorder %s78_s23, %s78_s23 }
  0x96   :  { %p10244_p11 = scmp.ne.s32.totalorder %s78_s23, %s10243_s22  ;;  %p10249_p13 = scmp.lt.s32.totalorder %s10243_s22, %s10243_s22 }
  0x98   :  { %p10250_p0 = por %p10249_p13, %p10248_p12 }
  0x9a   :  { %p10251_p1 = pnand %p10250_p0, %p10244_p11 }
  0x9c   :  { %10254 = shalt.err (!%p10251_p1)
}
  0x9d   :  { %83 = dma.hbm_to_vmem [thread:$0]  %s11069_s4, 9216, %s78_s23, [#allocation9], %s10407_s1, %s10407_s1, %s10408_s30  }
  0x9e   :  { %s10418_s9 = smov [#allocation13]   ;;  %s10419_s24 = smov [#allocation16]  }
  0x9f   :  { %s102_s20 = sshll.u32 %s10418_s9, 4  ;;  %s121_s28 = sshll.u32 %s10419_s24, 4  ;;  %s103_s20 = int_to_ptr.vmem [resolvable:$true] %s102_s20  ;;  %s122_s28 = int_to_ptr.vmem [resolvable:$true] %s121_s28 }
  0xa0   :  { %s10255_s27 = scalar_lea.hbm %s11071_s6, 48 }
  0xa1   :  { %p10256_p2 = scmp.ne.s32.totalorder %s11071_s6, %s10255_s27  ;;  %p10259_p3 = scmp.lt.u32.totalorder %s10255_s27, %s11071_s6 }
  0xa3   :  { %p10261_p4 = pnand %p10259_p3, %p10256_p2 }
  0xa5   :  { %10264 = shalt.err (!%p10261_p4)
}
  0xa6   :  { %s10265_s4 = scalar_lea.vmem %s103_s20, 48  ;;  %s10269_s23 = scalar_lea.vmem %s103_s20, 64 }
  0xa7   :  { %p10266_p5 = scmp.ne.s32.totalorder %s103_s20, %s10265_s4  ;;  %p10270_p6 = scmp.lt.s32.totalorder %s103_s20, %s103_s20 }
  0xa8   :  { %p10271_p7 = scmp.lt.s32.totalorder %s10269_s23, %s10265_s4 }
  0xaa   :  { %p10272_p8 = por %p10271_p7, %p10270_p6 }
  0xac   :  { %p10273_p9 = pnand %p10272_p8, %p10266_p5 }
  0xae   :  { %10276 = shalt.err (!%p10273_p9)
}
  0xaf   :  { %105 = dma.hbm_to_vmem [thread:$0]  %s11071_s6, 48, %s103_s20, [#allocation12]  }
  0xb0   :  { %s10277_s25 = scalar_lea.hbm %s11073_s8, 36864 }
  0xb1   :  { %p10278_p10 = scmp.ne.s32.totalorder %s11073_s8, %s10277_s25  ;;  %p10281_p11 = scmp.lt.u32.totalorder %s10277_s25, %s11073_s8 }
  0xb3   :  { %p10283_p12 = pnand %p10281_p11, %p10278_p10 }
  0xb5   :  { %10286 = shalt.err (!%p10283_p12)
}
  0xb6   :  { %s10287_s21 = scalar_lea.vmem %s122_s28, 36864  ;;  %p10292_p0 = scmp.lt.s32.totalorder %s122_s28, %s122_s28 }
  0xb7   :  { %p10288_p13 = scmp.ne.s32.totalorder %s122_s28, %s10287_s21  ;;  %p10293_p1 = scmp.lt.s32.totalorder %s10287_s21, %s10287_s21 }
  0xb9   :  { %p10294_p2 = por %p10293_p1, %p10292_p0 }
  0xbb   :  { %p10295_p3 = pnand %p10294_p2, %p10288_p13 }
  0xbd   :  { %10298 = shalt.err (!%p10295_p3)
}
  0xbe   :  { %s10420_s6 = smov 768   ;;  %s10421_s9 = smov 48  }
  0xbf   :  { %127 = dma.hbm_to_vmem [thread:$0]  %s11073_s8, 36864, %s122_s28, [#allocation15], %s10420_s6, %s10420_s6, %s10421_s9  }
  0xc0   :  { %s10422_s29 = smov [#allocation19]   ;;  %s10423_s27 = smov [#allocation22]  }
  0xc1   :  { %s143_s7 = sshll.u32 %s10422_s29, 4  ;;  %s166_s0 = sshll.u32 %s10423_s27, 4  ;;  %s144_s7 = int_to_ptr.vmem [resolvable:$true] %s143_s7  ;;  %s167_s0 = int_to_ptr.vmem [resolvable:$true] %s166_s0 }
  0xc2   :  { %s10299_s17 = scalar_lea.hbm %s11075_s10, 36864 }
  0xc3   :  { %p10300_p4 = scmp.ne.s32.totalorder %s11075_s10, %s10299_s17  ;;  %p10303_p5 = scmp.lt.u32.totalorder %s10299_s17, %s11075_s10 }
  0xc5   :  { %p10305_p6 = pnand %p10303_p5, %p10300_p4 }
  0xc7   :  { %10308 = shalt.err (!%p10305_p6)
}
  0xc8   :  { %s10309_s8 = scalar_lea.vmem %s144_s7, 36864  ;;  %p10314_p8 = scmp.lt.s32.totalorder %s144_s7, %s144_s7 }
  0xc9   :  { %p10310_p7 = scmp.ne.s32.totalorder %s144_s7, %s10309_s8  ;;  %p10315_p9 = scmp.lt.s32.totalorder %s10309_s8, %s10309_s8 }
  0xcb   :  { %p10316_p10 = por %p10315_p9, %p10314_p8 }
  0xcd   :  { %p10317_p11 = pnand %p10316_p10, %p10310_p7 }
  0xcf   :  { %10320 = shalt.err (!%p10317_p11)
}
  0xd0   :  { %149 = dma.hbm_to_vmem [thread:$0]  %s11075_s10, 36864, %s144_s7, [#allocation18], %s10407_s1, %s10407_s1, %s10408_s30  }
  0xd1   :  { %s10321_s19 = scalar_lea.hbm %s11077_s12, 48 }
  0xd2   :  { %p10322_p12 = scmp.ne.s32.totalorder %s11077_s12, %s10321_s19  ;;  %p10325_p13 = scmp.lt.u32.totalorder %s10321_s19, %s11077_s12 }
  0xd4   :  { %p10327_p0 = pnand %p10325_p13, %p10322_p12 }
  0xd6   :  { %10330 = shalt.err (!%p10327_p0)
}
  0xd7   :  { %s10331_s6 = scalar_lea.vmem %s167_s0, 48  ;;  %s10335_s9 = scalar_lea.vmem %s167_s0, 64 }
  0xd8   :  { %p10332_p1 = scmp.ne.s32.totalorder %s167_s0, %s10331_s6  ;;  %p10336_p2 = scmp.lt.s32.totalorder %s167_s0, %s167_s0 }
  0xd9   :  { %p10337_p3 = scmp.lt.s32.totalorder %s10335_s9, %s10331_s6 }
  0xdb   :  { %p10338_p4 = por %p10337_p3, %p10336_p2 }
  0xdd   :  { %p10339_p5 = pnand %p10338_p4, %p10332_p1 }
  0xdf   :  { %10342 = shalt.err (!%p10339_p5)
}
  0xe0   :  { %169 = dma.hbm_to_vmem [thread:$0]  %s11077_s12, 48, %s167_s0, [#allocation21]  }
  0xe1   :  { %s10424_s24 = smov [#allocation23]   ;;  %s10343_s26 = scalar_lea.hbm %s11078_s13, 48 }
  0xe2   :  { %s176_s29 = sshll.u32 %s10424_s24, 4  ;;  %p10344_p6 = scmp.ne.s32.totalorder %s11078_s13, %s10343_s26  ;;  %s177_s29 = int_to_ptr.vmem [resolvable:$true] %s176_s29 }
  0xe3   :  { %p10347_p7 = scmp.lt.u32.totalorder %s10343_s26, %s11078_s13 }
  0xe5   :  { %p10349_p8 = pnand %p10347_p7, %p10344_p6 }
  0xe7   :  { %10352 = shalt.err (!%p10349_p8)
}
  0xe8   :  { %s10353_s18 = scalar_lea.vmem %s177_s29, 48  ;;  %s10357_s12 = scalar_lea.vmem %s177_s29, 64 }
  0xe9   :  { %p10354_p9 = scmp.ne.s32.totalorder %s177_s29, %s10353_s18  ;;  %p10358_p10 = scmp.lt.s32.totalorder %s177_s29, %s177_s29 }
  0xea   :  { %p10359_p11 = scmp.lt.s32.totalorder %s10357_s12, %s10353_s18 }
  0xec   :  { %p10360_p12 = por %p10359_p11, %p10358_p10 }
  0xee   :  { %p10361_p13 = pnand %p10360_p12, %p10354_p9 }
  0xf0   :  { %10364 = shalt.err (!%p10361_p13)
}
  0xf1   :  { %179 = dma.hbm_to_vmem [thread:$0]  %s11078_s13, 48, %s177_s29, [#allocation24]  }
  0xf2   :  { %10387 = dma.done.wait [#allocation3], 768  }
  0xf3   :  { %10388 = vsyncadd [#allocation3], 4294966528 }
  0xf4   :  { %10389 = dma.done.wait [#allocation6], 96  }
  0xf5   :  { %10390 = vsyncadd [#allocation6], 4294967200 }
  0xf6   :  { %10391 = dma.done.wait [#allocation9], 18432  }
  0xf7   :  { %10392 = vsyncadd [#allocation9], 4294948864 }
  0xf8   :  { %10393 = dma.done.wait [#allocation12], 9264  }
  0xf9   :  { %10394 = vsyncadd [#allocation12], 4294958032 }
  0xfa   :  { %10395 = dma.done.wait [#allocation15], 36912  }
  0xfb   :  { %10396 = vsyncadd [#allocation15], 4294930384 }
  0xfc   :  { %10397 = dma.done.wait [#allocation18], 37056  }
  0xfd   :  { %10398 = vsyncadd [#allocation18], 4294930240 }
  0xfe   :  { %10399 = dma.done.wait [#allocation21], 96  }
  0xff   :  { %10400 = vsyncadd [#allocation21], 4294967200 }
 0x100   :  { %10401 = dma.done.wait [#allocation24], 48  }
 0x101   :  { %10402 = vsyncadd [#allocation24], 4294967248  ;;  %v223_v0 = vld [vmem:[#allocation2] sm:$0xff]  ;;  %v224_v1 = vld [vmem:[#allocation2 + $0x8] sm:$0xff]  ;;  %vm10427_vm0 = vmmov 0   ;;  %vm2480_vm1 = vcmask 1043456  }
 0x102   :  { %v225_v2 = vld [vmem:[#allocation2 + $0x10] sm:$0xff]  ;;  %v231_v3 = vadd.f32 %v224_v1, %v223_v0  ;;  %v226_v4 = vld [vmem:[#allocation2 + $0x18] sm:$0xff]  ;;  %v227_v5 = vld [vmem:[#allocation2 + $0x20] sm:$0xff]  ;;  %vm2452_vm3 = vcmask 64512   ;;  %s10428_s13 = smov [#allocation25]  }
 0x103   :  { %v228_v6 = vld [vmem:[#allocation2 + $0x28] sm:$0xff]  ;;  %v235_v7 = vadd.f32 %v227_v5, %v226_v4  ;;  %v8929_v11 = vld [vmem:[#allocation10] ss:$12 sps:$4 sm:$0xff]   ;;  %v8930_v12 = vld [vmem:[#allocation10 + $0x1c] ss:$12 sps:$4 sm:$0xff]   ;;  %s7669_s8 = sshll.u32 %s10428_s13, 4  ;;  %s7670_s8 = int_to_ptr.vmem [resolvable:$true] %s7669_s8 }
 0x104   :  { %v232_v8 = vadd.f32 %v231_v3, %v225_v2  ;;  %v8927_v10 = vld [vmem:[#allocation10 + $0x4] ss:$12 sps:$4 sm:$0xff]   ;;  %v8933_v14 = vld [vmem:[#allocation10 + $0x34] ss:$12 sps:$4 sm:$0xff]   ;;  %v8936_v17 = vld [vmem:[#allocation10 + $0x4c] ss:$12 sps:$4 sm:$0xff]   ;;  %p10370_p1 = scmp.lt.s32.totalorder %s7670_s8, %s7670_s8 }
 0x105   :  { %v236_v9 = vadd.f32 %v235_v7, %v228_v6  ;;  %801 = vmatprep.subr.bf16.mxu1 %v8927_v10  ;;  %v8932_v13 = vld [vmem:[#allocation10 + $0x18] ss:$12 sps:$4 sm:$0xff]   ;;  %v8953_v15 = vld [vmem:[#allocation8 + $0xc8] ss:$12 sps:$4 sm:$0xff]   ;;  %v8935_v16 = vld [vmem:[#allocation10 + $0x30] ss:$12 sps:$4 sm:$0xff]  }
 0x106   :  { %233 = vadd.xlane.f32.xlu0 %v232_v8  ;;  %802 = vmatpush1.bf16.msra.mxu1 %v8929_v11  ;;  %v8955_v18 = vld [vmem:[#allocation8 + $0x8] ss:$12 sps:$4 sm:$0xff]   ;;  %v8958_v19 = vld [vmem:[#allocation8 + $0xe0] ss:$12 sps:$4 sm:$0xff]   ;;  %v8939_v21 = vld [vmem:[#allocation10 + $0x64] ss:$12 sps:$4 sm:$0xff]  }
 0x107   :  { %803 = vmatprep.subr.bf16.mxu1 %v8930_v12  ;;  %8525 = vmatprep.subr.bf16.mxu0 %v8953_v15  ;;  %v8938_v20 = vld [vmem:[#allocation10 + $0x48] ss:$12 sps:$4 sm:$0xff]   ;;  %v8941_v22 = vld [vmem:[#allocation10 + $0x60] ss:$12 sps:$4 sm:$0xff]   ;;  %v8944_v24 = vld [vmem:[#allocation10 + $0x78] ss:$12 sps:$4 sm:$0xff]  }
 0x108   :  { %8526 = vmatpush3.bf16.msra.mxu0 %v8955_v18  ;;  %v8942_v23 = vld [vmem:[#allocation10 + $0x7c] ss:$12 sps:$4 sm:$0xff]   ;;  %v8945_v25 = vld [vmem:[#allocation10 + $0x94] ss:$12 sps:$4 sm:$0xff]   ;;  %v8948_v27 = vld [vmem:[#allocation10 + $0xac] ss:$12 sps:$4 sm:$0xff]  }
 0x109   :  { %8527 = vmatprep.subr.bf16.mxu0 %v8958_v19  ;;  %v8947_v26 = vld [vmem:[#allocation10 + $0x90] ss:$12 sps:$4 sm:$0xff]   ;;  %v8950_v28 = vld [vmem:[#allocation10 + $0xa8] ss:$12 sps:$4 sm:$0xff]   ;;  %v8954_v30 = vld [vmem:[#allocation10 + $0xc0] ss:$12 sps:$4 sm:$0xff]  }
 0x10a   :  { %237 = vadd.xlane.f32.xlu0 %v236_v9  ;;  %804 = vmatpush1.bf16.msra.mxu1 %v8932_v13  ;;  %v8951_v29 = vld [vmem:[#allocation10 + $0xc4] ss:$12 sps:$4 sm:$0xff]   ;;  %v8956_v31 = vld [vmem:[#allocation10 + $0xdc] ss:$12 sps:$4 sm:$0xff]   ;;  %v8960_v53 = vld [vmem:[#allocation8 + $0x20] ss:$12 sps:$4 sm:$0xff]  }
 0x10b   :  { %805 = vmatprep.subr.bf16.mxu1 %v8933_v14  ;;  %v8959_v52 = vld [vmem:[#allocation10 + $0xd8] ss:$12 sps:$4 sm:$0xff]   ;;  %v8961_v54 = vld [vmem:[#allocation10 + $0xf4] ss:$12 sps:$4 sm:$0xff]   ;;  %v8964_v56 = vld [vmem:[#allocation10 + $0xf0] ss:$12 sps:$4 sm:$0xff]  }
 0x10c   :  { %8528 = vmatpush3.bf16.msra.mxu0 %v8960_v53  ;;  %v8963_v55 = vld [vmem:[#allocation8 + $0xf8] ss:$12 sps:$4 sm:$0xff]   ;;  %v8968_v59 = vld [vmem:[#allocation8 + $0x110] ss:$12 sps:$4 sm:$0xff]   ;;  %v8969_v60 = vld [vmem:[#allocation10 + $0x108] ss:$12 sps:$4 sm:$0xff]  }
 0x10d   :  { %v8965_v57 = vld [vmem:[#allocation8 + $0x38] ss:$12 sps:$4 sm:$0xff]   ;;  %8529 = vmatprep.subr.bf16.mxu0 %v8963_v55  ;;  %v8970_v61 = vld [vmem:[#allocation8 + $0x50] ss:$12 sps:$4 sm:$0xff]   ;;  %v8973_v63 = vld [vmem:[#allocation8 + $0x128] ss:$12 sps:$4 sm:$0xff]  }
 0x10e   :  { %806 = vmatpush1.bf16.msra.mxu1 %v8935_v16  ;;  %v8966_v58 = vld [vmem:[#allocation10 + $0x10c] ss:$12 sps:$4 sm:$0xff]   ;;  %v8971_v62 = vld [vmem:[#allocation10 + $0x124] ss:$12 sps:$4 sm:$0xff]   ;;  %v8989_v12 = vld [vmem:[#allocation10 + $0x168] ss:$12 sps:$4 sm:$0xff]  }
 0x10f   :  { %807 = vmatprep.subr.bf16.mxu1 %v8936_v17  ;;  %v8978_v3 = vld [vmem:[#allocation8 + $0x140] ss:$12 sps:$4 sm:$0xff]   ;;  %v8983_v7 = vld [vmem:[#allocation8 + $0x158] ss:$12 sps:$4 sm:$0xff]   ;;  %v8984_v8 = vld [vmem:[#allocation10 + $0x150] ss:$12 sps:$4 sm:$0xff]  }
 0x110   :  { %8530 = vmatpush3.bf16.msra.mxu0 %v8965_v57  ;;  %v8985_v9 = vld [vmem:[#allocation8 + $0x98] ss:$12 sps:$4 sm:$0xff]   ;;  %v8988_v11 = vld [vmem:[#allocation8 + $0x170] ss:$12 sps:$4 sm:$0xff]   ;;  %v10425_v15 = vmov 0.0   ;;  %v10426_v57 = vmov 0  }
 0x111   :  { %8531 = vmatprep.subr.bf16.mxu0 %v8968_v59  ;;  %v8986_v10 = vld [vmem:[#allocation10 + $0x16c] ss:$12 sps:$4 sm:$0xff]   ;;  %v8990_v13 = vld [vmem:[#allocation8 + $0xb0] ss:$12 sps:$4 sm:$0xff]   ;;  %v9001_v55 = vld [vmem:[#allocation10 + $0x1b4] ss:$12 sps:$4 sm:$0xff]  }
 0x112   :  { %808 = vmatpush1.bf16.msra.mxu1 %v8938_v20  ;;  %v8993_v14 = vld [vmem:[#allocation10 + $0x184] ss:$12 sps:$4 sm:$0xff]   ;;  %v275_v20 = vlaneseq  ;;  %v9005_v59 = vld [vmem:[#allocation10 + $0x1cc] ss:$12 sps:$4 sm:$0xff]   ;;  %s10365_s28 = scalar_lea.vmem %s7670_s8, 384 }
 0x113   :  { %809 = vmatprep.subr.bf16.mxu1 %v8939_v21  ;;  %p10366_p0 = scmp.ne.s32.totalorder %s7670_s8, %s10365_s28  ;;  %p10371_p2 = scmp.lt.s32.totalorder %s10365_s28, %s10365_s28 }
 0x114   :  { %8532 = vmatpush3.bf16.msra.mxu0 %v8970_v61  ;;  %v9006_v61 = vld [vmem:[#allocation8 + $0x1d0] ss:$12 sps:$4 sm:$0xff]  }
 0x115   :  { %8533 = vmatprep.subr.bf16.mxu0 %v8973_v63  ;;  %v9007_v63 = vld [vmem:[#allocation10 + $0x1e0] ss:$12 sps:$4 sm:$0xff]   ;;  %p10372_p3 = por %p10371_p2, %p10370_p1 }
 0x116   :  { %810 = vmatpush1.bf16.msra.mxu1 %v8941_v22 }
 0x117   :  { %811 = vmatprep.subr.bf16.mxu1 %v8942_v23  ;;  %v10717_v23 = vshrl.u32 %v275_v20, 7  ;;  %p10373_p4 = pnand %p10372_p3, %p10366_p0 }
 0x11a   :  { %812 = vmatpush1.bf16.msra.mxu1 %v8944_v24  ;;  %v10719_v24 = vld [vmem:[#allocation5] sm:$0x7] }
 0x11b   :  { %813 = vmatprep.subr.bf16.mxu1 %v8945_v25  ;;  %v10722_v25 = vsub.s32 1, %v10717_v23 }
 0x11e   :  { %814 = vmatpush1.bf16.msra.mxu1 %v8947_v26  ;;  %v10725_v26 = vsub.s32 0, %v10717_v23 }
 0x11f   :  { %815 = vmatprep.subr.bf16.mxu1 %v8948_v27 }
 0x122   :  { %816 = vmatpush1.bf16.msra.mxu1 %v8950_v28  ;;  %v10729_v28 = vld [vmem:[#allocation7] sm:$0x7] }
 0x123   :  { %817 = vmatprep.subr.bf16.mxu1 %v8951_v29 }
 0x126   :  { %818 = vmatpush1.bf16.msra.mxu1 %v8954_v30  ;;  %v282_v30 = vrot.slane %v10719_v24, %v10722_v25 }
 0x127   :  { %819 = vmatprep.subr.bf16.mxu1 %v8956_v31 }
 0x12a   :  { %820 = vmatpush1.bf16.msra.mxu1 %v8959_v52 }
 0x12b   :  { %821 = vmatprep.subr.bf16.mxu1 %v8961_v54  ;;  %v8997_v54 = vld [vmem:[#allocation10 + $0x19c] ss:$12 sps:$4 sm:$0xff]  }
 0x12e   :  { %822 = vmatpush1.bf16.msra.mxu1 %v8964_v56  ;;  %v8999_v56 = vld [vmem:[#allocation10 + $0x1b0] ss:$12 sps:$4 sm:$0xff]  }
 0x12f   :  { %823 = vmatprep.subr.bf16.mxu1 %v8966_v58  ;;  %v9002_v58 = vld [vmem:[#allocation8 + $0x1b8] ss:$12 sps:$4 sm:$0xff]  }
 0x132   :  { %824 = vmatpush1.bf16.msra.mxu1 %v8969_v60  ;;  %v9003_v60 = vld [vmem:[#allocation10 + $0x1c8] ss:$12 sps:$4 sm:$0xff]  }
 0x133   :  { %825 = vmatprep.subr.bf16.mxu1 %v8971_v62  ;;  %v9009_v62 = vld [vmem:[#allocation10 + $0x1e4] ss:$12 sps:$4 sm:$0xff]  }
 0x193   :  { %v234_v32 = vpop.xlane.xlu0 %233 }
 0x194   :  { %v240_v33 = vmul.f32 0.0026041667, %v234_v32  ;;  %v278_v32 = vrot.slane %v10719_v24, %v10725_v26 }
 0x196   :  { %v10691_v34 = vsub.f32 %v223_v0, %v240_v33  ;;  %v10693_v35 = vsub.f32 %v224_v1, %v240_v33  ;;  %v10695_v36 = vsub.f32 %v225_v2, %v240_v33  ;;  %v8974_v0 = vld [vmem:[#allocation10 + $0x120] ss:$12 sps:$4 sm:$0xff]   ;;  %v8975_v1 = vld [vmem:[#allocation8 + $0x68] ss:$12 sps:$4 sm:$0xff]  }
 0x197   :  { %v238_v37 = vpop.xlane.xlu0 %237  ;;  %v8976_v2 = vld [vmem:[#allocation10 + $0x13c] ss:$12 sps:$4 sm:$0xff]   ;;  %826 = vmatpush1.bf16.msra.mxu1 %v8974_v0  ;;  %8534 = vmatpush3.bf16.msra.mxu0 %v8975_v1 }
 0x198   :  { %v241_v38 = vmul.f32 0.0026041667, %v238_v37  ;;  %v248_v39 = vmul.f32 %v10691_v34, %v10691_v34  ;;  %v249_v40 = vmul.f32 %v10693_v35, %v10693_v35  ;;  %v250_v41 = vmul.f32 %v10695_v36, %v10695_v36  ;;  %827 = vmatprep.subr.bf16.mxu1 %v8976_v2  ;;  %8535 = vmatprep.subr.bf16.mxu0 %v8978_v3  ;;  %v9010_v0 = vld [vmem:[#allocation8 + $0x1e8] ss:$12 sps:$4 sm:$0xff]   ;;  %v9011_v2 = vld [vmem:[#allocation10 + $0x1f8] ss:$12 sps:$4 sm:$0xff]  }
 0x199   :  { %v304_v37 = vrot.slane %v10729_v28, %v10722_v25  ;;  %v9013_v1 = vld [vmem:[#allocation10 + $0x1fc] ss:$12 sps:$4 sm:$0xff]   ;;  %v10761_v3 = vsub.s32 2, %v10717_v23 }
 0x19a   :  { %v10703_v42 = vsub.f32 %v226_v4, %v241_v38  ;;  %v10705_v43 = vsub.f32 %v227_v5, %v241_v38  ;;  %v10707_v44 = vsub.f32 %v228_v6, %v241_v38  ;;  %v254_v45 = vadd.f32 %v249_v40, %v248_v39  ;;  %v8979_v4 = vld [vmem:[#allocation10 + $0x138] ss:$12 sps:$4 sm:$0xff]   ;;  %v8980_v5 = vld [vmem:[#allocation8 + $0x80] ss:$12 sps:$4 sm:$0xff]  }
 0x19b   :  { %v8981_v6 = vld [vmem:[#allocation10 + $0x154] ss:$12 sps:$4 sm:$0xff]   ;;  %828 = vmatpush1.bf16.msra.mxu1 %v8979_v4  ;;  %8536 = vmatpush3.bf16.msra.mxu0 %v8980_v5  ;;  %v300_v38 = vrot.slane %v10729_v28, %v10725_v26 }
 0x19c   :  { %v255_v46 = vadd.f32 %v254_v45, %v250_v41  ;;  %v251_v47 = vmul.f32 %v10703_v42, %v10703_v42  ;;  %v252_v48 = vmul.f32 %v10705_v43, %v10705_v43  ;;  %v253_v49 = vmul.f32 %v10707_v44, %v10707_v44  ;;  %829 = vmatprep.subr.bf16.mxu1 %v8981_v6  ;;  %v9014_v4 = vld [vmem:[#allocation8 + $0x200] ss:$12 sps:$4 sm:$0xff]  }
 0x19d   :  { %8537 = vmatprep.subr.bf16.mxu0 %v8983_v7  ;;  %v9017_v5 = vld [vmem:[#allocation10 + $0x214] ss:$12 sps:$4 sm:$0xff]   ;;  %v9015_v7 = vld [vmem:[#allocation10 + $0x210] ss:$12 sps:$4 sm:$0xff]  }
 0x19e   :  { %256 = vadd.xlane.f32.xlu1 %v255_v46  ;;  %v258_v50 = vadd.f32 %v252_v48, %v251_v47  ;;  %v8991_v48 = vld [vmem:[#allocation10 + $0x180] ss:$12 sps:$4 sm:$0xff]  }
 0x19f   :  { %830 = vmatpush1.bf16.msra.mxu1 %v8984_v8  ;;  %8538 = vmatpush3.bf16.msra.mxu0 %v8985_v9  ;;  %v286_v9 = vrot.slane %v10719_v24, %v10761_v3  ;;  %v9028_v24 = vld [vmem:[#allocation10 + $0xe0] ss:$12 sps:$4 sm:$0xff]  }
 0x1a0   :  { %v259_v51 = vadd.f32 %v258_v50, %v253_v49  ;;  %831 = vmatprep.subr.bf16.mxu1 %v8986_v10  ;;  %8539 = vmatprep.subr.bf16.mxu0 %v8988_v11  ;;  %v9018_v10 = vld [vmem:[#allocation8 + $0x218] ss:$12 sps:$4 sm:$0xff]  }
 0x1a1   :  { %v9021_v11 = vld [vmem:[#allocation10 + $0x22c] ss:$12 sps:$4 sm:$0xff]  }
 0x1a2   :  { %260 = vadd.xlane.f32.xlu1 %v259_v51  ;;  %v8994_v51 = vld [vmem:[#allocation8 + $0x188] ss:$12 sps:$4 sm:$0xff]  }
 0x1a3   :  { %832 = vmatpush1.bf16.msra.mxu1 %v8989_v12  ;;  %8540 = vmatpush3.bf16.msra.mxu0 %v8990_v13  ;;  %v9019_v13 = vld [vmem:[#allocation10 + $0x228] ss:$12 sps:$4 sm:$0xff]  }
 0x1a4   :  { %844 = vmatprep.subr.bf16.mxu1 %v8993_v14  ;;  %8747 = vmatprep.subr.bf16.mxu0 %v10425_v15  ;;  %v9022_v14 = vld [vmem:[#allocation8 + $0x230] ss:$12 sps:$4 sm:$0xff]  }
 0x22b   :  { %v257_v16 = vpop.xlane.xlu1 %256 }
 0x22c   :  { %v262_v17 = vmul.f32 0.0026041667, %v257_v16 }
 0x22e   :  { %v264_v18 = vadd.f32 1e-05, %v262_v17  ;;  %v9026_v17 = vld [vmem:[#allocation11 + $0x4] ss:$12 sps:$4 sm:$0xff]  }
 0x22f   :  { %v261_v19 = vpop.xlane.xlu1 %260 }
 0x230   :  { %10031 = vrsqrt.f32 %v264_v18  ;;  %v263_v21 = vmul.f32 0.0026041667, %v261_v19  ;;  %v9027_v19 = vld [vmem:[#allocation10 + $0x8] ss:$12 sps:$4 sm:$0xff]  }
 0x232   :  { %v265_v22 = vadd.f32 1e-05, %v263_v21 }
 0x234   :  { %10033 = vrsqrt.f32 %v265_v22  ;;  %v9024_v22 = vld [vmem:[#allocation11] ss:$12 sps:$4 sm:$0xff]  }
 0x23a   :  { %v10727_v27 = vpop.eup %10031 }
 0x23b   :  { %v269_v29 = vmul.f32 %v10727_v27, %v10693_v35  ;;  %v268_v31 = vmul.f32 %v10727_v27, %v10691_v34  ;;  %v270_v8 = vmul.f32 %v10727_v27, %v10695_v36  ;;  %v9023_v36 = vld [vmem:[#allocation10 + $0xc8] ss:$12 sps:$4 sm:$0xff]  }
 0x23d   :  { %v291_v40 = vmul.f32 %v282_v30, %v269_v29  ;;  %v290_v41 = vmul.f32 %v278_v32, %v268_v31  ;;  %v292_v16 = vmul.f32 %v286_v9, %v270_v8  ;;  %v9031_v29 = vld [vmem:[#allocation11 + $0x1c] ss:$12 sps:$4 sm:$0xff]   ;;  %v9033_v31 = vld [vmem:[#allocation10 + $0xf8] ss:$12 sps:$4 sm:$0xff]  }
 0x23e   :  { %v10034_v33 = vpop.eup %10033  ;;  %v9075_v8 = vld [vmem:[#allocation11 + $0x108] ss:$12 sps:$4 sm:$0xff]  }
 0x23f   :  { %v272_v39 = vmul.f32 %v10034_v33, %v10705_v43  ;;  %v271_v35 = vmul.f32 %v10034_v33, %v10703_v42  ;;  %v313_v47 = vadd.f32 %v304_v37, %v291_v40  ;;  %v312_v49 = vadd.f32 %v300_v38, %v290_v41  ;;  %v8995_v43 = vld [vmem:[#allocation10 + $0x198] ss:$12 sps:$4 sm:$0xff]   ;;  %v8998_v42 = vld [vmem:[#allocation8 + $0x1a0] ss:$12 sps:$4 sm:$0xff]   ;;  %v9042_v40 = vld [vmem:[#allocation10 + $0x50] ss:$12 sps:$4 sm:$0xff]  }
 0x240   :  { %v273_v6 = vmul.f32 %v10034_v33, %v10707_v44  ;;  %v308_v44 = vrot.slane %v10729_v28, %v10761_v3  ;;  %v9029_v28 = vld [vmem:[#allocation11 + $0x18] ss:$12 sps:$4 sm:$0xff]   ;;  %v9043_v41 = vld [vmem:[#allocation10 + $0x128] ss:$12 sps:$4 sm:$0xff]  }
 0x241   :  { %v294_v45 = vmul.f32 %v282_v30, %v272_v39  ;;  %v293_v46 = vmul.f32 %v278_v32, %v271_v35  ;;  %v9032_v30 = vld [vmem:[#allocation10 + $0x20] ss:$12 sps:$4 sm:$0xff]   ;;  %v9037_v33 = vld [vmem:[#allocation10 + $0x38] ss:$12 sps:$4 sm:$0xff]   ;;  %v9039_v35 = vld [vmem:[#allocation11 + $0x48] ss:$12 sps:$4 sm:$0xff]  }
 0x242   :  { %v295_v12 = vmul.f32 %v286_v9, %v273_v6  ;;  %v314_v21 = vadd.f32 %v308_v44, %v292_v16  ;;  %v9036_v32 = vld [vmem:[#allocation11 + $0x34] ss:$12 sps:$4 sm:$0xff]   ;;  %v9041_v39 = vld [vmem:[#allocation11 + $0x4c] ss:$12 sps:$4 sm:$0xff]   ;;  %v9081_v9 = vld [vmem:[#allocation11 + $0x124] ss:$12 sps:$4 sm:$0xff]  }
 0x243   :  { %v316_v34 = vadd.f32 %v304_v37, %v294_v45  ;;  %v315_v50 = vadd.f32 %v300_v38, %v293_v46  ;;  %v9034_v37 = vld [vmem:[#allocation11 + $0x30] ss:$12 sps:$4 sm:$0xff]   ;;  %v9047_v46 = vld [vmem:[#allocation10 + $0x68] ss:$12 sps:$4 sm:$0xff]   ;;  %v9077_v6 = vld [vmem:[#allocation11 + $0x10c] ss:$12 sps:$4 sm:$0xff]  }
 0x244   :  { %v317_v18 = vadd.f32 %v308_v44, %v295_v12  ;;  %v9038_v38 = vld [vmem:[#allocation10 + $0x110] ss:$12 sps:$4 sm:$0xff]   ;;  %v9089_v16 = vld [vmem:[#allocation11 + $0x154] ss:$12 sps:$4 sm:$0xff]   ;;  %v9090_v44 = vld [vmem:[#allocation10 + $0x218] ss:$12 sps:$4 sm:$0xff]  }
 0x245   :  { %v10745_v52 = vpack.c.bf16 %v316_v34, %v313_v47  ;;  %v10747_v53 = vpack.c.bf16 %v315_v50, %v312_v49  ;;  %v9046_v45 = vld [vmem:[#allocation11 + $0x64] ss:$12 sps:$4 sm:$0xff]   ;;  %v9044_v47 = vld [vmem:[#allocation11 + $0x60] ss:$12 sps:$4 sm:$0xff]   ;;  %v9085_v12 = vld [vmem:[#allocation11 + $0x13c] ss:$12 sps:$4 sm:$0xff]  }
 0x246   :  { %v10773_v27 = vpack.c.bf16 %v317_v18, %v314_v21  ;;  %v9048_v34 = vld [vmem:[#allocation10 + $0x140] ss:$12 sps:$4 sm:$0xff]   ;;  %v9049_v50 = vld [vmem:[#allocation11 + $0x78] ss:$12 sps:$4 sm:$0xff]   ;;  %v9094_v18 = vld [vmem:[#allocation10 + $0x230] ss:$12 sps:$4 sm:$0xff]  }
 0x247   :  { %833 = vmatprep.mubr.bf16.mxu1 %v10745_v52  ;;  %1567 = vmatprep.mubr.bf16.mxu0 %v10745_v52  ;;  %v9052_v49 = vld [vmem:[#allocation10 + $0x80] ss:$12 sps:$4 sm:$0xff]   ;;  %v9097_v21 = vld [vmem:[#allocation8 + $0x4] ss:$12 sps:$4 sm:$0xff]  }
 0x248   :  { %834 = vmatmul.mubr.bf16.vlgmr.msra.gmra.mrb[0].mxu1 %v10747_v53  ;;  %1568 = vmatmul.mubr.bf16.vlgmr.msra.gmra.mrb[0].mxu0 %v10747_v53 }
 0x249   :  { %845 = vmatpush1.bf16.msra.mxu1 %v8991_v48  ;;  %8748 = vmatpush3.bf16.msra.mxu0 %v8994_v51  ;;  %v9051_v48 = vld [vmem:[#allocation11 + $0x7c] ss:$12 sps:$4 sm:$0xff]   ;;  %v9053_v51 = vld [vmem:[#allocation10 + $0x158] ss:$12 sps:$4 sm:$0xff]  }
 0x24a   :  { %846 = vmatprep.subr.bf16.mxu1 %v8997_v54  ;;  %8749 = vmatprep.subr.bf16.mxu0 %v10425_v15  ;;  %v9056_v54 = vld [vmem:[#allocation11 + $0x94] ss:$12 sps:$4 sm:$0xff]  }
 0x24b   :  { %876 = vmatprep.mubr.bf16.mxu1 %v10426_v57  ;;  %8763 = vmatprep.mubr.msk.bf16.mxu0 %vm10427_vm0, %v10425_v15 }
 0x24d   :  { %847 = vmatpush1.bf16.msra.mxu1 %v8995_v43  ;;  %8750 = vmatpush3.bf16.msra.mxu0 %v8998_v42  ;;  %v9057_v43 = vld [vmem:[#allocation10 + $0x98] ss:$12 sps:$4 sm:$0xff]   ;;  %v9054_v42 = vld [vmem:[#allocation11 + $0x90] ss:$12 sps:$4 sm:$0xff]  }
 0x24e   :  { %848 = vmatprep.subr.bf16.mxu1 %v9001_v55  ;;  %8751 = vmatprep.subr.bf16.mxu0 %v10425_v15  ;;  %v9058_v55 = vld [vmem:[#allocation10 + $0x170] ss:$12 sps:$4 sm:$0xff]  }
 0x251   :  { %849 = vmatpush1.bf16.msra.mxu1 %v8999_v56  ;;  %8752 = vmatpush3.bf16.msra.mxu0 %v9002_v58  ;;  %v9061_v56 = vld [vmem:[#allocation11 + $0xac] ss:$12 sps:$4 sm:$0xff]   ;;  %v9059_v58 = vld [vmem:[#allocation11 + $0xa8] ss:$12 sps:$4 sm:$0xff]  }
 0x252   :  { %850 = vmatprep.subr.bf16.mxu1 %v9005_v59  ;;  %8753 = vmatprep.subr.bf16.mxu0 %v10425_v15  ;;  %v9062_v59 = vld [vmem:[#allocation10 + $0xb0] ss:$12 sps:$4 sm:$0xff]  }
 0x255   :  { %851 = vmatpush1.bf16.msra.mxu1 %v9003_v60  ;;  %8754 = vmatpush3.bf16.msra.mxu0 %v9006_v61  ;;  %v9065_v60 = vld [vmem:[#allocation11 + $0xc4] ss:$12 sps:$4 sm:$0xff]   ;;  %v9066_v61 = vld [vmem:[#allocation10 + $0x188] ss:$12 sps:$4 sm:$0xff]  }
 0x256   :  { %852 = vmatprep.subr.bf16.mxu1 %v9009_v62  ;;  %8755 = vmatprep.subr.bf16.mxu0 %v10425_v15  ;;  %v9063_v62 = vld [vmem:[#allocation11 + $0xc0] ss:$12 sps:$4 sm:$0xff]  }
 0x259   :  { %853 = vmatpush1.bf16.msra.mxu1 %v9007_v63  ;;  %8756 = vmatpush3.bf16.msra.mxu0 %v9010_v0  ;;  %v9069_v63 = vld [vmem:[#allocation11 + $0xdc] ss:$12 sps:$4 sm:$0xff]   ;;  %v9070_v0 = vld [vmem:[#allocation10 + $0x1a0] ss:$12 sps:$4 sm:$0xff]  }
 0x25a   :  { %854 = vmatprep.subr.bf16.mxu1 %v9013_v1  ;;  %8757 = vmatprep.subr.bf16.mxu0 %v10425_v15  ;;  %v9067_v1 = vld [vmem:[#allocation11 + $0xd8] ss:$12 sps:$4 sm:$0xff]  }
 0x25d   :  { %855 = vmatpush1.bf16.msra.mxu1 %v9011_v2  ;;  %8758 = vmatpush3.bf16.msra.mxu0 %v9014_v4  ;;  %v9073_v2 = vld [vmem:[#allocation11 + $0xf4] ss:$12 sps:$4 sm:$0xff]   ;;  %v9074_v4 = vld [vmem:[#allocation10 + $0x1b8] ss:$12 sps:$4 sm:$0xff]  }
 0x25e   :  { %856 = vmatprep.subr.bf16.mxu1 %v9017_v5  ;;  %8759 = vmatprep.subr.bf16.mxu0 %v10425_v15  ;;  %v9071_v5 = vld [vmem:[#allocation11 + $0xf0] ss:$12 sps:$4 sm:$0xff]  }
 0x261   :  { %857 = vmatpush1.bf16.msra.mxu1 %v9015_v7  ;;  %8760 = vmatpush3.bf16.msra.mxu0 %v9018_v10  ;;  %v9078_v7 = vld [vmem:[#allocation10 + $0x1d0] ss:$12 sps:$4 sm:$0xff]   ;;  %v9082_v10 = vld [vmem:[#allocation10 + $0x1e8] ss:$12 sps:$4 sm:$0xff]  }
 0x262   :  { %858 = vmatprep.subr.bf16.mxu1 %v9021_v11  ;;  %8761 = vmatprep.subr.bf16.mxu0 %v10425_v15  ;;  %v9079_v11 = vld [vmem:[#allocation11 + $0x120] ss:$12 sps:$4 sm:$0xff]  }
 0x265   :  { %859 = vmatpush1.bf16.msra.mxu1 %v9019_v13  ;;  %8762 = vmatpush3.bf16.msra.mxu0 %v9022_v14  ;;  %v9086_v13 = vld [vmem:[#allocation10 + $0x200] ss:$12 sps:$4 sm:$0xff]   ;;  %v9083_v14 = vld [vmem:[#allocation11 + $0x138] ss:$12 sps:$4 sm:$0xff]  }
 0x266   :  { %8494 = vmatprep.subr.bf16.mxu1 %v9023_v36  ;;  %2097 = vmatprep.subr.bf16.mxu0 %v9026_v17  ;;  %v9087_v36 = vld [vmem:[#allocation11 + $0x150] ss:$12 sps:$4 sm:$0xff]   ;;  %v9093_v17 = vld [vmem:[#allocation11 + $0x16c] ss:$12 sps:$4 sm:$0xff]  }
 0x268   :  { %877 = vmatmul.mubr.bf16.vlgmr.msra.gmra.mrb[0].mxu1 %v10773_v27  ;;  %8764 = vmatmul.mubr.bf16.vlgmr.msra.gmra.mrb[4].mxu0 %v10773_v27 }
 0x269   :  { %8495 = vmatpush3.bf16.msra.mxu1 %v9027_v19  ;;  %919 = vmatprep.mubr.bf16.mxu1 %v10745_v52  ;;  %v9091_v19 = vld [vmem:[#allocation11 + $0x168] ss:$12 sps:$4 sm:$0xff]  }
 0x26a   :  { %2098 = vmatpush1.bf16.msra.mxu0 %v9024_v22  ;;  %2129 = vmatprep.mubr.bf16.mxu0 %v10745_v52  ;;  %v9100_v22 = vld [vmem:[#allocation11 + $0x184] ss:$12 sps:$4 sm:$0xff]  }
 0x26b   :  { %8496 = vmatprep.subr.bf16.mxu1 %v9028_v24  ;;  %2099 = vmatprep.subr.bf16.mxu0 %v9031_v29  ;;  %v9095_v24 = vld [vmem:[#allocation8] ss:$12 sps:$4 sm:$0xff]  }
 0x26c   :  { %v9098_v29 = vld [vmem:[#allocation11 + $0x180] ss:$12 sps:$4 sm:$0xff]  }
 0x26d   :  { %8497 = vmatpush3.bf16.msra.mxu1 %v9032_v30  ;;  %v9106_v30 = vld [vmem:[#allocation11 + $0x19c] ss:$12 sps:$4 sm:$0xff]  }
 0x26e   :  { %2100 = vmatpush1.bf16.msra.mxu0 %v9029_v28  ;;  %8498 = vmatprep.subr.bf16.mxu1 %v9033_v31  ;;  %v9103_v28 = vld [vmem:[#allocation8 + $0x1c] ss:$12 sps:$4 sm:$0xff]   ;;  %v9101_v31 = vld [vmem:[#allocation8 + $0x18] ss:$12 sps:$4 sm:$0xff]  }
 0x26f   :  { %2101 = vmatprep.subr.bf16.mxu0 %v9036_v32  ;;  %v9104_v32 = vld [vmem:[#allocation11 + $0x198] ss:$12 sps:$4 sm:$0xff]  }
 0x271   :  { %8499 = vmatpush3.bf16.msra.mxu1 %v9037_v33  ;;  %v9109_v33 = vld [vmem:[#allocation8 + $0x34] ss:$12 sps:$4 sm:$0xff]  }
 0x272   :  { %2102 = vmatpush1.bf16.msra.mxu0 %v9034_v37  ;;  %8500 = vmatprep.subr.bf16.mxu1 %v9038_v38  ;;  %v9112_v37 = vld [vmem:[#allocation11 + $0x1b4] ss:$12 sps:$4 sm:$0xff]   ;;  %v9107_v38 = vld [vmem:[#allocation8 + $0x30] ss:$12 sps:$4 sm:$0xff]  }
 0x273   :  { %2103 = vmatprep.subr.bf16.mxu0 %v9041_v39  ;;  %v9110_v39 = vld [vmem:[#allocation11 + $0x1b0] ss:$12 sps:$4 sm:$0xff]  }
 0x275   :  { %8501 = vmatpush3.bf16.msra.mxu1 %v9042_v40  ;;  %v9115_v40 = vld [vmem:[#allocation8 + $0x4c] ss:$12 sps:$4 sm:$0xff]  }
 0x276   :  { %2104 = vmatpush1.bf16.msra.mxu0 %v9039_v35  ;;  %8502 = vmatprep.subr.bf16.mxu1 %v9043_v41  ;;  %v9118_v35 = vld [vmem:[#allocation11 + $0x1cc] ss:$12 sps:$4 sm:$0xff]   ;;  %v9113_v41 = vld [vmem:[#allocation8 + $0x48] ss:$12 sps:$4 sm:$0xff]  }
 0x277   :  { %2105 = vmatprep.subr.bf16.mxu0 %v9046_v45  ;;  %v9116_v45 = vld [vmem:[#allocation11 + $0x1c8] ss:$12 sps:$4 sm:$0xff]  }
 0x279   :  { %8503 = vmatpush3.bf16.msra.mxu1 %v9047_v46  ;;  %v9121_v46 = vld [vmem:[#allocation8 + $0x64] ss:$12 sps:$4 sm:$0xff]  }
 0x27a   :  { %2106 = vmatpush1.bf16.msra.mxu0 %v9044_v47  ;;  %8504 = vmatprep.subr.bf16.mxu1 %v9048_v34  ;;  %v9124_v47 = vld [vmem:[#allocation11 + $0x1e4] ss:$12 sps:$4 sm:$0xff]   ;;  %v9119_v34 = vld [vmem:[#allocation8 + $0x60] ss:$12 sps:$4 sm:$0xff]  }
 0x27b   :  { %2107 = vmatprep.subr.bf16.mxu0 %v9051_v48  ;;  %v9122_v48 = vld [vmem:[#allocation11 + $0x1e0] ss:$12 sps:$4 sm:$0xff]  }
 0x27d   :  { %8505 = vmatpush3.bf16.msra.mxu1 %v9052_v49  ;;  %v9127_v49 = vld [vmem:[#allocation8 + $0x7c] ss:$12 sps:$4 sm:$0xff]  }
 0x27e   :  { %2108 = vmatpush1.bf16.msra.mxu0 %v9049_v50  ;;  %8506 = vmatprep.subr.bf16.mxu1 %v9053_v51  ;;  %v9130_v50 = vld [vmem:[#allocation11 + $0x1fc] ss:$12 sps:$4 sm:$0xff]   ;;  %v9125_v51 = vld [vmem:[#allocation8 + $0x78] ss:$12 sps:$4 sm:$0xff]  }
 0x27f   :  { %2109 = vmatprep.subr.bf16.mxu0 %v9056_v54  ;;  %v9128_v54 = vld [vmem:[#allocation11 + $0x1f8] ss:$12 sps:$4 sm:$0xff]  }
 0x281   :  { %8507 = vmatpush3.bf16.msra.mxu1 %v9057_v43  ;;  %v9133_v43 = vld [vmem:[#allocation8 + $0x94] ss:$12 sps:$4 sm:$0xff]  }
 0x282   :  { %2110 = vmatpush1.bf16.msra.mxu0 %v9054_v42  ;;  %8508 = vmatprep.subr.bf16.mxu1 %v9058_v55  ;;  %v9136_v42 = vld [vmem:[#allocation11 + $0x214] ss:$12 sps:$4 sm:$0xff]   ;;  %v9131_v55 = vld [vmem:[#allocation8 + $0x90] ss:$12 sps:$4 sm:$0xff]  }
 0x283   :  { %2111 = vmatprep.subr.bf16.mxu0 %v9061_v56  ;;  %v9134_v56 = vld [vmem:[#allocation11 + $0x210] ss:$12 sps:$4 sm:$0xff]  }
 0x285   :  { %8509 = vmatpush3.bf16.msra.mxu1 %v9062_v59  ;;  %v9142_v59 = vld [vmem:[#allocation11 + $0x22c] ss:$12 sps:$4 sm:$0xff]  }
 0x286   :  { %2112 = vmatpush1.bf16.msra.mxu0 %v9059_v58  ;;  %8727 = vmatprep.subr.bf16.mxu1 %v10425_v15  ;;  %v9139_v58 = vld [vmem:[#allocation8 + $0xac] ss:$12 sps:$4 sm:$0xff]  }
 0x287   :  { %2113 = vmatprep.subr.bf16.mxu0 %v9065_v60  ;;  %v9137_v60 = vld [vmem:[#allocation8 + $0xa8] ss:$12 sps:$4 sm:$0xff]  }
 0x288   :  { %920 = vmatmul.mubr.bf16.vlgmr.msra.gmra.mrb[4].mxu1 %v10747_v53 }
 0x289   :  { %8728 = vmatpush3.bf16.msra.mxu1 %v9066_v61  ;;  %8743 = vmatprep.mubr.msk.bf16.mxu1 %vm10427_vm0, %v10425_v15  ;;  %v9140_v61 = vld [vmem:[#allocation11 + $0x228] ss:$12 sps:$4 sm:$0xff]  }
 0x28a   :  { %2114 = vmatpush1.bf16.msra.mxu0 %v9063_v62  ;;  %8729 = vmatprep.subr.bf16.mxu1 %v10425_v15  ;;  %v9145_v62 = vld [vmem:[#allocation8 + $0xc4] ss:$12 sps:$4 sm:$0xff]  }
 0x28b   :  { %2115 = vmatprep.subr.bf16.mxu0 %v9069_v63  ;;  %v9143_v63 = vld [vmem:[#allocation8 + $0xc0] ss:$12 sps:$4 sm:$0xff]  }
 0x28d   :  { %8730 = vmatpush3.bf16.msra.mxu1 %v9070_v0  ;;  %v9148_v0 = vld [vmem:[#allocation8 + $0xdc] ss:$12 sps:$4 sm:$0xff]  }
 0x28e   :  { %2116 = vmatpush1.bf16.msra.mxu0 %v9067_v1  ;;  %8731 = vmatprep.subr.bf16.mxu1 %v10425_v15  ;;  %v9146_v1 = vld [vmem:[#allocation8 + $0xd8] ss:$12 sps:$4 sm:$0xff]  }
 0x28f   :  { %2117 = vmatprep.subr.bf16.mxu0 %v9073_v2  ;;  %v9151_v2 = vld [vmem:[#allocation8 + $0xf4] ss:$12 sps:$4 sm:$0xff]  }
 0x291   :  { %8732 = vmatpush3.bf16.msra.mxu1 %v9074_v4  ;;  %v9149_v4 = vld [vmem:[#allocation8 + $0xf0] ss:$12 sps:$4 sm:$0xff]  }
 0x292   :  { %2118 = vmatpush1.bf16.msra.mxu0 %v9071_v5  ;;  %8733 = vmatprep.subr.bf16.mxu1 %v10425_v15  ;;  %v9154_v5 = vld [vmem:[#allocation8 + $0x10c] ss:$12 sps:$4 sm:$0xff]  }
 0x293   :  { %2119 = vmatprep.subr.bf16.mxu0 %v9077_v6  ;;  %v9152_v6 = vld [vmem:[#allocation8 + $0x108] ss:$12 sps:$4 sm:$0xff]  }
 0x295   :  { %8734 = vmatpush3.bf16.msra.mxu1 %v9078_v7  ;;  %v9157_v7 = vld [vmem:[#allocation8 + $0x124] ss:$12 sps:$4 sm:$0xff]  }
 0x296   :  { %2120 = vmatpush1.bf16.msra.mxu0 %v9075_v8  ;;  %8735 = vmatprep.subr.bf16.mxu1 %v10425_v15  ;;  %v9155_v8 = vld [vmem:[#allocation8 + $0x120] ss:$12 sps:$4 sm:$0xff]  }
 0x297   :  { %2121 = vmatprep.subr.bf16.mxu0 %v9081_v9  ;;  %v9160_v9 = vld [vmem:[#allocation8 + $0x13c] ss:$12 sps:$4 sm:$0xff]  }
 0x299   :  { %8736 = vmatpush3.bf16.msra.mxu1 %v9082_v10  ;;  %v9158_v10 = vld [vmem:[#allocation8 + $0x138] ss:$12 sps:$4 sm:$0xff]  }
 0x29a   :  { %2122 = vmatpush1.bf16.msra.mxu0 %v9079_v11  ;;  %8737 = vmatprep.subr.bf16.mxu1 %v10425_v15  ;;  %v9163_v11 = vld [vmem:[#allocation8 + $0x154] ss:$12 sps:$4 sm:$0xff]  }
 0x29b   :  { %2123 = vmatprep.subr.bf16.mxu0 %v9085_v12  ;;  %v9161_v12 = vld [vmem:[#allocation8 + $0x150] ss:$12 sps:$4 sm:$0xff]  }
 0x29d   :  { %8738 = vmatpush3.bf16.msra.mxu1 %v9086_v13  ;;  %v9166_v13 = vld [vmem:[#allocation8 + $0x16c] ss:$12 sps:$4 sm:$0xff]  }
 0x29e   :  { %2124 = vmatpush1.bf16.msra.mxu0 %v9083_v14  ;;  %8739 = vmatprep.subr.bf16.mxu1 %v10425_v15  ;;  %v9164_v14 = vld [vmem:[#allocation8 + $0x168] ss:$12 sps:$4 sm:$0xff]  }
 0x29f   :  { %2125 = vmatprep.subr.bf16.mxu0 %v9089_v16  ;;  %v9169_v16 = vld [vmem:[#allocation8 + $0x184] ss:$12 sps:$4 sm:$0xff]  }
 0x2a1   :  { %8740 = vmatpush3.bf16.msra.mxu1 %v9090_v44  ;;  %v9167_v44 = vld [vmem:[#allocation8 + $0x180] ss:$12 sps:$4 sm:$0xff]  }
 0x2a2   :  { %2126 = vmatpush1.bf16.msra.mxu0 %v9087_v36  ;;  %8741 = vmatprep.subr.bf16.mxu1 %v10425_v15  ;;  %v9172_v36 = vld [vmem:[#allocation8 + $0x19c] ss:$12 sps:$4 sm:$0xff]  }
 0x2a3   :  { %2127 = vmatprep.subr.bf16.mxu0 %v9093_v17  ;;  %v9170_v17 = vld [vmem:[#allocation8 + $0x198] ss:$12 sps:$4 sm:$0xff]  }
 0x2a5   :  { %8742 = vmatpush3.bf16.msra.mxu1 %v9094_v18  ;;  %v9175_v18 = vld [vmem:[#allocation8 + $0x1b4] ss:$12 sps:$4 sm:$0xff]  }
 0x2a6   :  { %2128 = vmatpush1.bf16.msra.mxu0 %v9091_v19  ;;  %1449 = vmatprep.subr.bf16.mxu1 %v9097_v21  ;;  %v9173_v19 = vld [vmem:[#allocation8 + $0x1b0] ss:$12 sps:$4 sm:$0xff]   ;;  %v9178_v21 = vld [vmem:[#allocation8 + $0x1cc] ss:$12 sps:$4 sm:$0xff]  }
 0x2a7   :  { %2140 = vmatprep.subr.bf16.mxu0 %v9100_v22  ;;  %v9176_v22 = vld [vmem:[#allocation8 + $0x1c8] ss:$12 sps:$4 sm:$0xff]  }
 0x2a8   :  { %8744 = vmatmul.mubr.bf16.vlgmr.msra.gmra.mrb[8].mxu1 %v10773_v27 }
 0x2a9   :  { %2130 = vmatmul.mubr.bf16.vlgmr.msra.gmra.mrb[8].mxu0 %v10747_v53  ;;  %1450 = vmatpush1.bf16.msra.mxu1 %v9095_v24  ;;  %v9181_v24 = vld [vmem:[#allocation8 + $0x1e4] ss:$12 sps:$4 sm:$0xff]  }
 0x2aa   :  { %1481 = vmatprep.mubr.bf16.mxu1 %v10745_v52  ;;  %2141 = vmatpush1.bf16.msra.mxu0 %v9098_v29  ;;  %v9179_v29 = vld [vmem:[#allocation8 + $0x1e0] ss:$12 sps:$4 sm:$0xff]  }
 0x2ab   :  { %1451 = vmatprep.subr.bf16.mxu1 %v9103_v28  ;;  %2142 = vmatprep.subr.bf16.mxu0 %v9106_v30  ;;  %v9184_v28 = vld [vmem:[#allocation8 + $0x1fc] ss:$12 sps:$4 sm:$0xff]   ;;  %v9182_v30 = vld [vmem:[#allocation8 + $0x1f8] ss:$12 sps:$4 sm:$0xff]  }
 0x2ac   :  { %2172 = vmatprep.mubr.bf16.mxu0 %v10426_v57 }
 0x2ad   :  { %1452 = vmatpush1.bf16.msra.mxu1 %v9101_v31  ;;  %v9187_v31 = vld [vmem:[#allocation8 + $0x214] ss:$12 sps:$4 sm:$0xff]  }
 0x2ae   :  { %2143 = vmatpush1.bf16.msra.mxu0 %v9104_v32  ;;  %1453 = vmatprep.subr.bf16.mxu1 %v9109_v33  ;;  %v9185_v32 = vld [vmem:[#allocation8 + $0x210] ss:$12 sps:$4 sm:$0xff]   ;;  %v9190_v33 = vld [vmem:[#allocation8 + $0x22c] ss:$12 sps:$4 sm:$0xff]  }
 0x2af   :  { %2144 = vmatprep.subr.bf16.mxu0 %v9112_v37  ;;  %v9188_v37 = vld [vmem:[#allocation8 + $0x228] ss:$12 sps:$4 sm:$0xff]  }
 0x2b1   :  { %1454 = vmatpush1.bf16.msra.mxu1 %v9107_v38  ;;  %v9191_v38 = vld [vmem:[#allocation11 + $0xc8] ss:$12 sps:$4 sm:$0xff]  }
 0x2b2   :  { %2145 = vmatpush1.bf16.msra.mxu0 %v9110_v39  ;;  %1455 = vmatprep.subr.bf16.mxu1 %v9115_v40  ;;  %v9192_v39 = vld [vmem:[#allocation11 + $0x8] ss:$12 sps:$4 sm:$0xff]   ;;  %v9193_v40 = vld [vmem:[#allocation11 + $0xe0] ss:$12 sps:$4 sm:$0xff]  }
 0x2b3   :  { %2146 = vmatprep.subr.bf16.mxu0 %v9118_v35  ;;  %v9194_v35 = vld [vmem:[#allocation11 + $0x20] ss:$12 sps:$4 sm:$0xff]  }
 0x2b5   :  { %1456 = vmatpush1.bf16.msra.mxu1 %v9113_v41  ;;  %v9195_v41 = vld [vmem:[#allocation11 + $0xf8] ss:$12 sps:$4 sm:$0xff]  }
 0x2b6   :  { %2147 = vmatpush1.bf16.msra.mxu0 %v9116_v45  ;;  %1457 = vmatprep.subr.bf16.mxu1 %v9121_v46  ;;  %v9196_v45 = vld [vmem:[#allocation11 + $0x38] ss:$12 sps:$4 sm:$0xff]   ;;  %v9197_v46 = vld [vmem:[#allocation11 + $0x110] ss:$12 sps:$4 sm:$0xff]  }
 0x2b7   :  { %2148 = vmatprep.subr.bf16.mxu0 %v9124_v47  ;;  %v9198_v47 = vld [vmem:[#allocation11 + $0x50] ss:$12 sps:$4 sm:$0xff]  }
 0x2b9   :  { %1458 = vmatpush1.bf16.msra.mxu1 %v9119_v34  ;;  %v9199_v34 = vld [vmem:[#allocation11 + $0x128] ss:$12 sps:$4 sm:$0xff]  }
 0x2ba   :  { %2149 = vmatpush1.bf16.msra.mxu0 %v9122_v48  ;;  %1459 = vmatprep.subr.bf16.mxu1 %v9127_v49  ;;  %v9200_v48 = vld [vmem:[#allocation11 + $0x68] ss:$12 sps:$4 sm:$0xff]   ;;  %v9201_v49 = vld [vmem:[#allocation11 + $0x140] ss:$12 sps:$4 sm:$0xff]  }
 0x2bb   :  { %2150 = vmatprep.subr.bf16.mxu0 %v9130_v50  ;;  %v9202_v50 = vld [vmem:[#allocation11 + $0x80] ss:$12 sps:$4 sm:$0xff]  }
 0x2bd   :  { %1460 = vmatpush1.bf16.msra.mxu1 %v9125_v51  ;;  %v9203_v51 = vld [vmem:[#allocation11 + $0x158] ss:$12 sps:$4 sm:$0xff]  }
 0x2be   :  { %2151 = vmatpush1.bf16.msra.mxu0 %v9128_v54  ;;  %1461 = vmatprep.subr.bf16.mxu1 %v9133_v43 }
 0x2bf   :  { %2152 = vmatprep.subr.bf16.mxu0 %v9136_v42 }
 0x2c1   :  { %1462 = vmatpush1.bf16.msra.mxu1 %v9131_v55  ;;  %v9204_v55 = vld [vmem:[#allocation11 + $0x98] ss:$12 sps:$4 sm:$0xff]  }
 0x2c2   :  { %2153 = vmatpush1.bf16.msra.mxu0 %v9134_v56  ;;  %1463 = vmatprep.subr.bf16.mxu1 %v9139_v58  ;;  %v9205_v58 = vld [vmem:[#allocation11 + $0x170] ss:$12 sps:$4 sm:$0xff]  }
 0x2c3   :  { %2154 = vmatprep.subr.bf16.mxu0 %v9142_v59 }
 0x2c5   :  { %1464 = vmatpush1.bf16.msra.mxu1 %v9137_v60  ;;  %v9206_v60 = vld [vmem:[#allocation11 + $0xb0] ss:$12 sps:$4 sm:$0xff]  }
 0x2c6   :  { %2155 = vmatpush1.bf16.msra.mxu0 %v9140_v61  ;;  %1465 = vmatprep.subr.bf16.mxu1 %v9145_v62  ;;  %v9207_v61 = vld [vmem:[#allocation11 + $0x188] ss:$12 sps:$4 sm:$0xff]   ;;  %v9208_v62 = vld [vmem:[#allocation11 + $0x1a0] ss:$12 sps:$4 sm:$0xff]  }
 0x2c9   :  { %2173 = vmatmul.mubr.bf16.vlgmr.msra.gmra.mrb[8].mxu0 %v10773_v27  ;;  %1466 = vmatpush1.bf16.msra.mxu1 %v9143_v63  ;;  %v9209_v63 = vld [vmem:[#allocation11 + $0x1b8] ss:$12 sps:$4 sm:$0xff]  }
 0x2ca   :  { %1467 = vmatprep.subr.bf16.mxu1 %v9148_v0  ;;  %2522 = vmatprep.mubr.bf16.mxu0 %v10426_v57  ;;  %v9210_v0 = vld [vmem:[#allocation11 + $0x1d0] ss:$12 sps:$4 sm:$0xff]  }
 0x2cd   :  { %1468 = vmatpush1.bf16.msra.mxu1 %v9146_v1  ;;  %v9211_v1 = vld [vmem:[#allocation11 + $0x1e8] ss:$12 sps:$4 sm:$0xff]  }
 0x2ce   :  { %1469 = vmatprep.subr.bf16.mxu1 %v9151_v2 }
 0x2d1   :  { %1470 = vmatpush1.bf16.msra.mxu1 %v9149_v4 }
 0x2d2   :  { %1471 = vmatprep.subr.bf16.mxu1 %v9154_v5 }
 0x2d5   :  { %1472 = vmatpush1.bf16.msra.mxu1 %v9152_v6 }
 0x2d6   :  { %1473 = vmatprep.subr.bf16.mxu1 %v9157_v7 }
 0x2d9   :  { %1474 = vmatpush1.bf16.msra.mxu1 %v9155_v8 }
 0x2da   :  { %1475 = vmatprep.subr.bf16.mxu1 %v9160_v9 }
 0x2dd   :  { %1476 = vmatpush1.bf16.msra.mxu1 %v9158_v10  ;;  %v9213_v10 = vld [vmem:[#allocation11 + $0x218] ss:$12 sps:$4 sm:$0xff]  }
 0x2de   :  { %1477 = vmatprep.subr.bf16.mxu1 %v9163_v11 }
 0x2e1   :  { %1478 = vmatpush1.bf16.msra.mxu1 %v9161_v12 }
 0x2e2   :  { %1479 = vmatprep.subr.bf16.mxu1 %v9166_v13 }
 0x2e5   :  { %1480 = vmatpush1.bf16.msra.mxu1 %v9164_v14  ;;  %v9214_v14 = vld [vmem:[#allocation11 + $0x230] ss:$12 sps:$4 sm:$0xff]  }
 0x2e6   :  { %1492 = vmatprep.subr.bf16.mxu1 %v9169_v16 }
 0x2e8   :  { %1482 = vmatmul.mubr.bf16.vlgmr.msra.gmra.mrb[12].mxu1 %v10747_v53 }
 0x2e9   :  { %1493 = vmatpush1.bf16.msra.mxu1 %v9167_v44  ;;  %1524 = vmatprep.mubr.bf16.mxu1 %v10426_v57 }
 0x2ea   :  { %1494 = vmatprep.subr.bf16.mxu1 %v9172_v36 }
 0x2ed   :  { %1495 = vmatpush1.bf16.msra.mxu1 %v9170_v17 }
 0x2ee   :  { %1496 = vmatprep.subr.bf16.mxu1 %v9175_v18 }
 0x2f1   :  { %1497 = vmatpush1.bf16.msra.mxu1 %v9173_v19 }
 0x2f2   :  { %1498 = vmatprep.subr.bf16.mxu1 %v9178_v21 }
 0x2f5   :  { %1499 = vmatpush1.bf16.msra.mxu1 %v9176_v22 }
 0x2f6   :  { %1500 = vmatprep.subr.bf16.mxu1 %v9181_v24 }
 0x2f9   :  { %1501 = vmatpush1.bf16.msra.mxu1 %v9179_v29 }
 0x2fa   :  { %1502 = vmatprep.subr.bf16.mxu1 %v9184_v28 }
 0x2fd   :  { %1503 = vmatpush1.bf16.msra.mxu1 %v9182_v30 }
 0x2fe   :  { %1504 = vmatprep.subr.bf16.mxu1 %v9187_v31 }
 0x301   :  { %1505 = vmatpush1.bf16.msra.mxu1 %v9185_v32 }
 0x302   :  { %1506 = vmatprep.subr.bf16.mxu1 %v9190_v33 }
 0x305   :  { %1507 = vmatpush1.bf16.msra.mxu1 %v9188_v37 }
 0x306   :  { %8556 = vmatprep.subr.bf16.mxu1 %v9191_v38 }
 0x308   :  { %1525 = vmatmul.mubr.bf16.vlgmr.msra.gmra.mrb[12].mxu1 %v10773_v27 }
 0x309   :  { %8557 = vmatpush3.bf16.msra.mxu1 %v9192_v39  ;;  %2215 = vmatprep.mubr.bf16.mxu1 %v10745_v52 }
 0x30a   :  { %8558 = vmatprep.subr.bf16.mxu1 %v9193_v40 }
 0x30d   :  { %8559 = vmatpush3.bf16.msra.mxu1 %v9194_v35 }
 0x30e   :  { %8560 = vmatprep.subr.bf16.mxu1 %v9195_v41 }
 0x311   :  { %8561 = vmatpush3.bf16.msra.mxu1 %v9196_v45 }
 0x312   :  { %8562 = vmatprep.subr.bf16.mxu1 %v9197_v46 }
 0x315   :  { %8563 = vmatpush3.bf16.msra.mxu1 %v9198_v47 }
 0x316   :  { %8564 = vmatprep.subr.bf16.mxu1 %v9199_v34 }
 0x319   :  { %8565 = vmatpush3.bf16.msra.mxu1 %v9200_v48 }
 0x31a   :  { %8566 = vmatprep.subr.bf16.mxu1 %v9201_v49 }
 0x31b   :  { %v8541_v52 = vpop.f32.mrb[0].mxu0 }
 0x31c   :  { %v8542_v54 = vpop.f32.mrb[1].mxu0 }
 0x31d   :  { %v8543_v43 = vadd.f32 %v8542_v54, %v8541_v52  ;;  %8567 = vmatpush3.bf16.msra.mxu1 %v9202_v50  ;;  %v8544_v42 = vpop.f32.mrb[2].mxu0 }
 0x31e   :  { %v8545_v56 = vpop.f32.mrb[3].mxu0  ;;  %8568 = vmatprep.subr.bf16.mxu1 %v9203_v51 }
 0x31f   :  { %v8546_v59 = vadd.f32 %v8545_v56, %v8544_v42 }
 0x321   :  { %8569 = vmatpush3.bf16.msra.mxu1 %v9204_v55 }
 0x322   :  { %8570 = vmatprep.subr.bf16.mxu1 %v9205_v58 }
 0x325   :  { %8571 = vmatpush3.bf16.msra.mxu1 %v9206_v60 }
 0x326   :  { %8767 = vmatprep.subr.bf16.mxu1 %v10425_v15 }
 0x328   :  { %2216 = vmatmul.mubr.bf16.vlgmr.msra.gmra.mrb[16].mxu1 %v10747_v53  ;;  %v9212_v53 = vld [vmem:[#allocation11 + $0x200] ss:$12 sps:$4 sm:$0xff]  }
 0x329   :  { %8768 = vmatpush3.bf16.msra.mxu1 %v9207_v61  ;;  %8783 = vmatprep.mubr.msk.bf16.mxu1 %vm10427_vm0, %v10425_v15 }
 0x32a   :  { %8769 = vmatprep.subr.bf16.mxu1 %v10425_v15 }
 0x32d   :  { %8770 = vmatpush3.bf16.msra.mxu1 %v9208_v62 }
 0x32e   :  { %8771 = vmatprep.subr.bf16.mxu1 %v10425_v15 }
 0x331   :  { %8772 = vmatpush3.bf16.msra.mxu1 %v9209_v63 }
 0x332   :  { %8773 = vmatprep.subr.bf16.mxu1 %v10425_v15 }
 0x335   :  { %8774 = vmatpush3.bf16.msra.mxu1 %v9210_v0 }
 0x336   :  { %8775 = vmatprep.subr.bf16.mxu1 %v10425_v15 }
 0x339   :  { %8776 = vmatpush3.bf16.msra.mxu1 %v9211_v1 }
 0x33a   :  { %8777 = vmatprep.subr.bf16.mxu1 %v10425_v15 }
 0x33b   :  { %v878_v2 = vpop.f32.mrb[0].mxu1  ;;  %v1610_v4 = vpop.f32.mrb[4].mxu0 }
 0x33c   :  { %v1611_v5 = vadd.f32 %v8543_v43, %v1610_v4  ;;  %v880_v6 = vpop.f32.mrb[1].mxu1  ;;  %v8765_v7 = vpop.f32.mrb[5].mxu0  ;;  %v2265_v49 = vpack.c.bf16 %v878_v2, %v878_v2 }
 0x33d   :  { %v10809_v8 = vpop.f32.mrb[2].mxu1  ;;  %v1613_v9 = vpop.f32.mrb[6].mxu0  ;;  %8778 = vmatpush3.bf16.msra.mxu1 %v9212_v53  ;;  %v2266_v16 = vpack.c.bf16 %v880_v6, %v880_v6 }
 0x33e   :  { %v1614_v11 = vadd.f32 %v8546_v59, %v1613_v9  ;;  %v884_v12 = vpop.f32.mrb[3].mxu1  ;;  %v8766_v13 = vpop.f32.mrb[7].mxu0  ;;  %8779 = vmatprep.subr.bf16.mxu1 %v10425_v15  ;;  %v2273_v50 = vpack.c.bf16 %v1611_v5, %v1611_v5  ;;  %v2268_v42 = vpack.c.bf16 %v10809_v8, %v10809_v8  ;;  %v2448_v8 = vand.u32 127, %v275_v20 }
 0x33f   :  { %v2269_v54 = vpack.c.bf16 %v884_v12, %v884_v12 }
 0x340   :  { %v2276_v55 = vpack.c.bf16 %v1614_v11, %v1614_v11  ;;  %vm2449_vm2 = vcmp.ge.s32.totalorder %v10717_v23, %v2448_v8  ;;  %v10055_v8 = vld [vmem:[#allocation2 + $0x20] sm:$0xff] }
 0x341   :  { %8780 = vmatpush3.bf16.msra.mxu1 %v9213_v10 }
 0x342   :  { %8781 = vmatprep.subr.bf16.mxu1 %v10425_v15 }
 0x345   :  { %8782 = vmatpush3.bf16.msra.mxu1 %v9214_v14 }
 0x348   :  { %8784 = vmatmul.mubr.bf16.vlgmr.msra.gmra.mrb[20].mxu1 %v10773_v27 }
 0x349   :  { %2315 = vmatprep.mubr.bf16.mxu1 %v2266_v16 }
 0x35b   :  { %v8510_v44 = vpop.f32.mrb[4].mxu1 }
 0x35c   :  { %v8511_v36 = vpop.f32.mrb[5].mxu1 }
 0x35d   :  { %v8512_v17 = vadd.f32 %v8511_v36, %v8510_v44  ;;  %v8513_v18 = vpop.f32.mrb[6].mxu1 }
 0x35e   :  { %v8514_v19 = vpop.f32.mrb[7].mxu1 }
 0x35f   :  { %v8515_v21 = vadd.f32 %v8514_v19, %v8513_v18 }
 0x37b   :  { %v962_v22 = vpop.f32.mrb[8].mxu1 }
 0x37c   :  { %v963_v24 = vadd.f32 %v8512_v17, %v962_v22  ;;  %v8745_v29 = vpop.f32.mrb[9].mxu1 }
 0x37d   :  { %v965_v28 = vpop.f32.mrb[10].mxu1 }
 0x37e   :  { %v966_v30 = vadd.f32 %v8515_v21, %v965_v28  ;;  %v8746_v31 = vpop.f32.mrb[11].mxu1  ;;  %v2267_v52 = vpack.c.bf16 %v963_v24, %v963_v24 }
 0x380   :  { %v2270_v63 = vpack.c.bf16 %v966_v30, %v966_v30 }
 0x39c   :  { %v2174_v32 = vpop.f32.mrb[8].mxu0 }
 0x39d   :  { %v2277_v33 = vpack.c.bf16 %v2174_v32, %v2174_v32  ;;  %v2176_v37 = vpop.f32.mrb[9].mxu0 }
 0x39e   :  { %v2278_v38 = vpack.c.bf16 %v2176_v37, %v2176_v37  ;;  %v10814_v39 = vpop.f32.mrb[10].mxu0 }
 0x39f   :  { %v2482_v27 = vsel %vm2480_vm1, %v2277_v33, 0  ;;  %v2180_v40 = vpop.f32.mrb[11].mxu0 }
 0x3a0   :  { %v2281_v35 = vpack.c.bf16 %v2180_v40, %v2180_v40  ;;  %7904 = vmatprep.subr.msk.bf16.mxu0 %vm2480_vm1, %v2278_v38 }
 0x3a1   :  { %2491 = vmatpush1.bf16.msra.mxu0 %v2482_v27 }
 0x3a2   :  { %7907 = vmatprep.subr.msk.bf16.mxu0 %vm2480_vm1, %v2281_v35  ;;  %v2280_v35 = vpack.c.bf16 %v10814_v39, %v10814_v39 }
 0x3db   :  { %v1526_v41 = vpop.f32.mrb[12].mxu1 }
 0x3dc   :  { %v1528_v45 = vpop.f32.mrb[13].mxu1  ;;  %v2271_v34 = vpack.c.bf16 %v1526_v41, %v1526_v41 }
 0x3dd   :  { %v2272_v46 = vpack.c.bf16 %v1528_v45, %v1528_v45  ;;  %v1530_v47 = vpop.f32.mrb[14].mxu1 }
 0x3de   :  { %v1532_v48 = vpop.f32.mrb[15].mxu1  ;;  %v2274_v43 = vpack.c.bf16 %v1530_v47, %v1530_v47  ;;  %v2575_v47 = vsel %vm2480_vm1, %v2280_v35, 0  ;;  %v9244_v35 = vld [vmem:[#allocation16 + $0x18c] ss:$48 sps:$4 sm:$0xff]  }
 0x3df   :  { %2283 = vmatprep.subr.bf16.mxu1 %v2272_v46  ;;  %v2275_v51 = vpack.c.bf16 %v1532_v48, %v1532_v48 }
 0x3e0   :  { %2284 = vmatpush1.bf16.xpose.msra.mxu1 %v2271_v34 }
 0x3e1   :  { %8787 = vmatprep.subr.bf16.mxu1 %v10425_v15 }
 0x3e7   :  { %2316 = vmatmul.mubr.bf16.vlgmr.msra.gmra.mrb[24].mxu1 %v2265_v49 }
 0x3e8   :  { %8788 = vmatpush3.bf16.xpose.msra.mxu1 %v2273_v50  ;;  %8789 = vmatprep.mubr.msk.bf16.mxu1 %vm10427_vm0, %v10425_v15 }
 0x3e9   :  { %2363 = vmatprep.subr.bf16.mxu1 %v2275_v51 }
 0x3f3   :  { %8790 = vmatmul.mubr.bf16.vlgmr.msra.gmra.mrb[24].mxu1 %v2267_v52 }
 0x3f4   :  { %2364 = vmatpush1.bf16.xpose.msra.mxu1 %v2274_v43  ;;  %2395 = vmatprep.mubr.bf16.mxu1 %v2269_v54  ;;  %v10051_v54 = vld [vmem:[#allocation2] sm:$0xff] }
 0x3f5   :  { %8793 = vmatprep.subr.bf16.mxu1 %v10425_v15 }
 0x3fb   :  { %v8572_v56 = vpop.f32.mrb[16].mxu1  ;;  %2396 = vmatmul.mubr.bf16.vlgmr.msra.gmra.mrb[28].mxu1 %v2268_v42 }
 0x3fc   :  { %8794 = vmatpush3.bf16.xpose.msra.mxu1 %v2276_v55  ;;  %v8573_v58 = vpop.f32.mrb[17].mxu1  ;;  %8795 = vmatprep.mubr.msk.bf16.mxu1 %vm10427_vm0, %v10425_v15 }
 0x3fd   :  { %v8574_v59 = vadd.f32 %v8573_v58, %v8572_v56  ;;  %v8575_v60 = vpop.f32.mrb[18].mxu1  ;;  %8799 = vmatprep.subr.bf16.mxu1 %v10425_v15  ;;  %v10052_v56 = vld [vmem:[#allocation2 + $0x8] sm:$0xff] }
 0x3fe   :  { %v8576_v61 = vpop.f32.mrb[19].mxu1 }
 0x3ff   :  { %v8577_v62 = vadd.f32 %v8576_v61, %v8575_v60 }
 0x407   :  { %8796 = vmatmul.mubr.bf16.vlgmr.msra.gmra.mrb[28].mxu1 %v2270_v63 }
 0x408   :  { %8801 = vmatprep.mubr.msk.bf16.mxu1 %vm10427_vm0, %v10425_v15 }
 0x41b   :  { %v2258_v0 = vpop.f32.mrb[20].mxu1 }
 0x41c   :  { %v2259_v1 = vadd.f32 %v8574_v59, %v2258_v0  ;;  %v8785_v53 = vpop.f32.mrb[21].mxu1 }
 0x41d   :  { %v2261_v2 = vpop.f32.mrb[22].mxu1 }
 0x41e   :  { %v2279_v4 = vpack.c.bf16 %v2259_v1, %v2259_v1  ;;  %v2262_v5 = vadd.f32 %v8577_v62, %v2261_v2  ;;  %v8786_v6 = vpop.f32.mrb[23].mxu1  ;;  %v10053_v62 = vld [vmem:[#allocation2 + $0x10] sm:$0xff] }
 0x420   :  { %v2488_v7 = vsel %vm2480_vm1, %v2279_v4, 0  ;;  %v2282_v41 = vpack.c.bf16 %v2262_v5, %v2262_v5  ;;  %v10054_v4 = vld [vmem:[#allocation2 + $0x18] sm:$0xff] }
 0x421   :  { %8800 = vmatpush3.bf16.msra.mxu1 %v2488_v7 }
 0x422   :  { %8805 = vmatprep.subr.bf16.mxu1 %v10425_v15  ;;  %v2581_v34 = vsel %vm2480_vm1, %v2282_v41, 0  ;;  %v9239_v41 = vld [vmem:[#allocation16 + $0x180] ss:$48 sps:$4 sm:$0xff]  }
 0x4c6   :  { %v2357_v9 = vpop.f32.mrb[24].mxu1 }
 0x4c7   :  { %v2443_v10 = vmul.f32 0.05103104, %v2357_v9  ;;  %v8791_v11 = vpop.f32.mrb[25].mxu1 }
 0x4c8   :  { %v2360_v12 = vpop.f32.mrb[26].mxu1 }
 0x4c9   :  { %v8792_v13 = vpop.f32.mrb[27].mxu1  ;;  %v2450_v14 = vsel %vm2449_vm2, %v2443_v10, -inf }
 0x4ca   :  { %v2453_v16 = vsel %vm2452_vm3, %v2450_v14, -inf }
 0x4cb   :  { %2454 = vmax.xlane.f32.xlu0 %v2453_v16 }
 0x4da   :  { %v2437_v44 = vpop.f32.mrb[28].mxu1 }
 0x4db   :  { %v2444_v36 = vmul.f32 0.05103104, %v2437_v44  ;;  %v8797_v17 = vpop.f32.mrb[29].mxu1 }
 0x4dc   :  { %v2440_v18 = vpop.f32.mrb[30].mxu1  ;;  %v9215_v17 = vld [vmem:[#allocation16] ss:$48 sps:$4 sm:$0xff]  }
 0x4dd   :  { %v8798_v19 = vpop.f32.mrb[31].mxu1  ;;  %v2451_v21 = vsel %vm2449_vm2, %v2444_v36, -inf  ;;  %v9217_v18 = vld [vmem:[#allocation16 + $0x4] ss:$48 sps:$4 sm:$0xff]  }
 0x4de   :  { %v2456_v20 = vsel %vm2452_vm3, %v2451_v21, -inf  ;;  %v9218_v19 = vld [vmem:[#allocation16 + $0x8] ss:$48 sps:$4 sm:$0xff]  }
 0x4df   :  { %2457 = vmax.xlane.f32.xlu1 %v2456_v20  ;;  %v9223_v20 = vld [vmem:[#allocation16 + $0x64] ss:$48 sps:$4 sm:$0xff]  }
 0x558   :  { %v2455_v22 = vpop.xlane.xlu0 %2454 }
 0x559   :  { %v2459_v24 = vsub.f32 %v2450_v14, %v2455_v22  ;;  %v10056_v14 = vld [vmem:[#allocation2 + $0x28] sm:$0xff] }
 0x55a   :  { %v9226_v22 = vld [vmem:[#allocation16 + $0x6c] ss:$48 sps:$4 sm:$0xff]  }
 0x55b   :  { %v2461_v29 = vmul.f32 1.442695, %v2459_v24  ;;  %v9221_v24 = vld [vmem:[#allocation16 + $0x60] ss:$48 sps:$4 sm:$0xff]  }
 0x55d   :  { %10035 = vpow2.f32 %v2461_v29  ;;  %v9224_v29 = vld [vmem:[#allocation16 + $0x68] ss:$48 sps:$4 sm:$0xff]  }
 0x567   :  { %v10036_v28 = vpop.eup %10035 }
 0x568   :  { %v2465_v30 = vsel %vm2452_vm3, %v10036_v28, 0.0 }
 0x569   :  { %2466 = vadd.xlane.f32.xlu0 %v2465_v30  ;;  %v9232_v30 = vld [vmem:[#allocation16 + $0xcc] ss:$48 sps:$4 sm:$0xff]  }
 0x56c   :  { %v2458_v31 = vpop.xlane.xlu1 %2457 }
 0x56d   :  { %v2460_v32 = vsub.f32 %v2451_v21, %v2458_v31  ;;  %v9220_v21 = vld [vmem:[#allocation16 + $0xc] ss:$48 sps:$4 sm:$0xff]   ;;  %v9227_v31 = vld [vmem:[#allocation16 + $0xc0] ss:$48 sps:$4 sm:$0xff]  }
 0x56f   :  { %v2463_v33 = vmul.f32 1.442695, %v2460_v32  ;;  %v9230_v32 = vld [vmem:[#allocation16 + $0xc8] ss:$48 sps:$4 sm:$0xff]  }
 0x571   :  { %10037 = vpow2.f32 %v2463_v33  ;;  %v9235_v33 = vld [vmem:[#allocation16 + $0x124] ss:$48 sps:$4 sm:$0xff]  }
 0x57b   :  { %v10038_v37 = vpop.eup %10037 }
 0x57c   :  { %v2468_v38 = vsel %vm2452_vm3, %v10038_v37, 0.0 }
 0x57d   :  { %2469 = vadd.xlane.f32.xlu1 %v2468_v38  ;;  %v9233_v38 = vld [vmem:[#allocation16 + $0x120] ss:$48 sps:$4 sm:$0xff]  }
 0x5f6   :  { %v2467_v27 = vpop.xlane.xlu0 %2466 }
 0x5f7   :  { %10039 = vrcp.f32 %v2467_v27  ;;  %v9236_v27 = vld [vmem:[#allocation16 + $0x128] ss:$48 sps:$4 sm:$0xff]  }
 0x601   :  { %v10040_v40 = vpop.eup %10039 }
 0x602   :  { %v2473_v45 = vmul.f32 %v10040_v40, %v10036_v28  ;;  %v9229_v28 = vld [vmem:[#allocation16 + $0xc4] ss:$48 sps:$4 sm:$0xff]  }
 0x603   :  { %v9241_v40 = vld [vmem:[#allocation16 + $0x184] ss:$48 sps:$4 sm:$0xff]  }
 0x604   :  { %v2475_v46 = vpack.c.bf16 %v2473_v45, %v2473_v45  ;;  %v9242_v45 = vld [vmem:[#allocation16 + $0x188] ss:$48 sps:$4 sm:$0xff]  }
 0x606   :  { %7905 = vmatmul.mubr.msk.bf16.vlgmr.msra.gmra.mrb[12].mxu0 %vm2452_vm3, %v2475_v46  ;;  %8802 = vmatmul.mubr.msk.bf16.vlgmr.msra.gmra.mrb[32].mxu1 %vm2452_vm3, %v2475_v46  ;;  %v9247_v46 = vld [vmem:[#allocation16 + $0x1e4] ss:$48 sps:$4 sm:$0xff]  }
 0x607   :  { %2584 = vmatpush1.bf16.msra.mxu0 %v2575_v47  ;;  %8806 = vmatpush3.bf16.msra.mxu1 %v2581_v34  ;;  %v9250_v47 = vld [vmem:[#allocation16 + $0x1ec] ss:$48 sps:$4 sm:$0xff]   ;;  %v9245_v34 = vld [vmem:[#allocation16 + $0x1e0] ss:$48 sps:$4 sm:$0xff]  }
 0x608   :  { %2615 = vmatprep.mubr.bf16.mxu0 %v10426_v57  ;;  %8807 = vmatprep.mubr.msk.bf16.mxu1 %vm10427_vm0, %v10425_v15 }
 0x609   :  { %4553 = vmatprep.subr.bf16.mxu0 %v9217_v18  ;;  %4639 = vmatprep.subr.bf16.mxu1 %v9220_v21  ;;  %v9263_v18 = vld [vmem:[#allocation16 + $0x300] ss:$48 sps:$4 sm:$0xff]   ;;  %v9271_v21 = vld [vmem:[#allocation16 + $0x364] ss:$48 sps:$4 sm:$0xff]  }
 0x60a   :  { %v2470_v48 = vpop.xlane.xlu1 %2469 }
 0x60b   :  { %10041 = vrcp.f32 %v2470_v48  ;;  %v9248_v48 = vld [vmem:[#allocation16 + $0x1e8] ss:$48 sps:$4 sm:$0xff]  }
 0x615   :  { %v10042_v39 = vpop.eup %10041 }
 0x616   :  { %v2474_v49 = vmul.f32 %v10042_v39, %v10038_v37  ;;  %v9238_v37 = vld [vmem:[#allocation16 + $0x12c] ss:$48 sps:$4 sm:$0xff]  }
 0x618   :  { %v2476_v50 = vpack.c.bf16 %v2474_v49, %v2474_v49 }
 0x61a   :  { %7908 = vmatmul.mubr.msk.bf16.vlgmr.msra.gmra.mrb[16].mxu0 %vm2452_vm3, %v2476_v50  ;;  %8808 = vmatmul.mubr.msk.bf16.vlgmr.msra.gmra.mrb[36].mxu1 %vm2452_vm3, %v2476_v50 }
 0x61b   :  { %4554 = vmatpush1.bf16.msra.mxu0 %v9215_v17  ;;  %4640 = vmatpush1.bf16.msra.mxu1 %v9218_v19  ;;  %v9268_v17 = vld [vmem:[#allocation16 + $0x30c] ss:$48 sps:$4 sm:$0xff]   ;;  %v9266_v19 = vld [vmem:[#allocation16 + $0x308] ss:$48 sps:$4 sm:$0xff]  }
 0x61c   :  { %4555 = vmatprep.subr.bf16.mxu0 %v9223_v20  ;;  %4641 = vmatprep.subr.bf16.mxu1 %v9226_v22  ;;  %v9274_v20 = vld [vmem:[#allocation16 + $0x36c] ss:$48 sps:$4 sm:$0xff]   ;;  %v9269_v22 = vld [vmem:[#allocation16 + $0x360] ss:$48 sps:$4 sm:$0xff]  }
 0x61f   :  { %4556 = vmatpush1.bf16.msra.mxu0 %v9221_v24  ;;  %4642 = vmatpush1.bf16.msra.mxu1 %v9224_v29  ;;  %v9272_v24 = vld [vmem:[#allocation16 + $0x368] ss:$48 sps:$4 sm:$0xff]   ;;  %v9277_v29 = vld [vmem:[#allocation16 + $0x3c4] ss:$48 sps:$4 sm:$0xff]  }
 0x620   :  { %4557 = vmatprep.subr.bf16.mxu0 %v9229_v28  ;;  %4643 = vmatprep.subr.bf16.mxu1 %v9232_v30  ;;  %v9280_v28 = vld [vmem:[#allocation16 + $0x3cc] ss:$48 sps:$4 sm:$0xff]   ;;  %v9275_v30 = vld [vmem:[#allocation16 + $0x3c0] ss:$48 sps:$4 sm:$0xff]  }
 0x623   :  { %4558 = vmatpush1.bf16.msra.mxu0 %v9227_v31  ;;  %4644 = vmatpush1.bf16.msra.mxu1 %v9230_v32  ;;  %v9278_v31 = vld [vmem:[#allocation16 + $0x3c8] ss:$48 sps:$4 sm:$0xff]   ;;  %v9283_v32 = vld [vmem:[#allocation16 + $0x424] ss:$48 sps:$4 sm:$0xff]  }
 0x624   :  { %4559 = vmatprep.subr.bf16.mxu0 %v9235_v33  ;;  %4645 = vmatprep.subr.bf16.mxu1 %v9238_v37  ;;  %v9286_v33 = vld [vmem:[#allocation16 + $0x42c] ss:$48 sps:$4 sm:$0xff]   ;;  %v9281_v37 = vld [vmem:[#allocation16 + $0x420] ss:$48 sps:$4 sm:$0xff]  }
 0x627   :  { %4560 = vmatpush1.bf16.msra.mxu0 %v9233_v38  ;;  %4646 = vmatpush1.bf16.msra.mxu1 %v9236_v27  ;;  %v9284_v38 = vld [vmem:[#allocation16 + $0x428] ss:$48 sps:$4 sm:$0xff]   ;;  %v9289_v27 = vld [vmem:[#allocation16 + $0x484] ss:$48 sps:$4 sm:$0xff]  }
 0x628   :  { %4561 = vmatprep.subr.bf16.mxu0 %v9241_v40  ;;  %4647 = vmatprep.subr.bf16.mxu1 %v9244_v35  ;;  %v9287_v40 = vld [vmem:[#allocation16 + $0x480] ss:$48 sps:$4 sm:$0xff]   ;;  %v9290_v35 = vld [vmem:[#allocation16 + $0x488] ss:$48 sps:$4 sm:$0xff]  }
 0x62b   :  { %4562 = vmatpush1.bf16.msra.mxu0 %v9239_v41  ;;  %4648 = vmatpush1.bf16.msra.mxu1 %v9242_v45  ;;  %v9292_v41 = vld [vmem:[#allocation16 + $0x48c] ss:$48 sps:$4 sm:$0xff]   ;;  %v9295_v45 = vld [vmem:[#allocation16 + $0x4e4] ss:$48 sps:$4 sm:$0xff]  }
 0x62c   :  { %4563 = vmatprep.subr.bf16.mxu0 %v9247_v46  ;;  %4649 = vmatprep.subr.bf16.mxu1 %v9250_v47  ;;  %v9298_v46 = vld [vmem:[#allocation16 + $0x4ec] ss:$48 sps:$4 sm:$0xff]   ;;  %v9293_v47 = vld [vmem:[#allocation16 + $0x4e0] ss:$48 sps:$4 sm:$0xff]  }
 0x62f   :  { %4564 = vmatpush1.bf16.msra.mxu0 %v9245_v34  ;;  %4650 = vmatpush1.bf16.msra.mxu1 %v9248_v48  ;;  %v9296_v34 = vld [vmem:[#allocation16 + $0x4e8] ss:$48 sps:$4 sm:$0xff]   ;;  %v9301_v48 = vld [vmem:[#allocation16 + $0x544] ss:$48 sps:$4 sm:$0xff]  }
 0x6d9   :  { %v2524_v51 = vpop.f32.mrb[12].mxu0  ;;  %v2565_v52 = vpop.f32.mrb[32].mxu1 }
 0x6da   :  { %v10849_v43 = vadd.f32 %v10051_v54, %v2524_v51  ;;  %v2526_v42 = vpop.f32.mrb[13].mxu0  ;;  %v8803_v55 = vpop.f32.mrb[33].mxu1  ;;  %v10853_v63 = vadd.f32 %v10053_v62, %v2565_v52 }
 0x6db   :  { %v10851_v58 = vadd.f32 %v10052_v56, %v2526_v42  ;;  %v2528_v15 = vpop.f32.mrb[14].mxu0  ;;  %v2568_v59 = vpop.f32.mrb[34].mxu1 }
 0x6dc   :  { %v2529_v60 = vpop.f32.mrb[15].mxu0  ;;  %v8804_v61 = vpop.f32.mrb[35].mxu1 }
 0x6dd   :  { %v2672_v0 = vadd.f32 %v10851_v58, %v10849_v43 }
 0x6df   :  { %v2673_v1 = vadd.f32 %v2672_v0, %v10853_v63 }
 0x6e1   :  { %2674 = vadd.xlane.f32.xlu0 %v2673_v1 }
 0x6ed   :  { %v2617_v53 = vpop.f32.mrb[16].mxu0  ;;  %v2658_v2 = vpop.f32.mrb[36].mxu1 }
 0x6ee   :  { %v10858_v5 = vadd.f32 %v10054_v4, %v2617_v53  ;;  %v2619_v6 = vpop.f32.mrb[17].mxu0  ;;  %v8809_v7 = vpop.f32.mrb[37].mxu1  ;;  %v10862_v16 = vadd.f32 %v10056_v14, %v2658_v2  ;;  %v9260_v14 = vld [vmem:[#allocation16 + $0x2a8] ss:$48 sps:$4 sm:$0xff]  }
 0x6ef   :  { %v10860_v9 = vadd.f32 %v10055_v8, %v2619_v6  ;;  %v2621_v10 = vpop.f32.mrb[18].mxu0  ;;  %v2661_v11 = vpop.f32.mrb[38].mxu1  ;;  %v9253_v6 = vld [vmem:[#allocation16 + $0x244] ss:$48 sps:$4 sm:$0xff]   ;;  %v9256_v7 = vld [vmem:[#allocation16 + $0x24c] ss:$48 sps:$4 sm:$0xff]  }
 0x6f0   :  { %v2622_v12 = vpop.f32.mrb[19].mxu0  ;;  %v8810_v13 = vpop.f32.mrb[39].mxu1  ;;  %v9251_v8 = vld [vmem:[#allocation16 + $0x240] ss:$48 sps:$4 sm:$0xff]   ;;  %v9254_v10 = vld [vmem:[#allocation16 + $0x248] ss:$48 sps:$4 sm:$0xff]   ;;  %4565 = vmatprep.subr.bf16.mxu0 %v9253_v6  ;;  %4651 = vmatprep.subr.bf16.mxu1 %v9256_v7 }
 0x6f1   :  { %v2676_v44 = vadd.f32 %v10860_v9, %v10858_v5  ;;  %v9259_v12 = vld [vmem:[#allocation16 + $0x2a4] ss:$48 sps:$4 sm:$0xff]   ;;  %4566 = vmatpush1.bf16.msra.mxu0 %v9251_v8  ;;  %4652 = vmatpush1.bf16.msra.mxu1 %v9254_v10  ;;  %v9257_v13 = vld [vmem:[#allocation16 + $0x2a0] ss:$48 sps:$4 sm:$0xff]   ;;  %v10899_v10 = vld [vmem:[#allocation13] sm:$0x7] }
 0x6f2   :  { %4567 = vmatprep.subr.bf16.mxu0 %v9259_v12 }
 0x6f3   :  { %v2677_v36 = vadd.f32 %v2676_v44, %v10862_v16  ;;  %v9262_v44 = vld [vmem:[#allocation16 + $0x2ac] ss:$48 sps:$4 sm:$0xff]  }
 0x6f4   :  { %4653 = vmatprep.subr.bf16.mxu1 %v9262_v44  ;;  %v2718_v44 = vrot.slane %v10899_v10, %v10725_v26 }
 0x6f5   :  { %2678 = vadd.xlane.f32.xlu1 %v2677_v36  ;;  %v9265_v36 = vld [vmem:[#allocation16 + $0x304] ss:$48 sps:$4 sm:$0xff]   ;;  %4568 = vmatpush1.bf16.msra.mxu0 %v9257_v13  ;;  %v2722_v13 = vrot.slane %v10899_v10, %v10722_v25 }
 0x6f6   :  { %4654 = vmatpush1.bf16.msra.mxu1 %v9260_v14  ;;  %4569 = vmatprep.subr.bf16.mxu0 %v9265_v36 }
 0x6f7   :  { %4655 = vmatprep.subr.bf16.mxu1 %v9268_v17 }
 0x6f9   :  { %4570 = vmatpush1.bf16.msra.mxu0 %v9263_v18 }
 0x6fa   :  { %4656 = vmatpush1.bf16.msra.mxu1 %v9266_v19  ;;  %4571 = vmatprep.subr.bf16.mxu0 %v9271_v21 }
 0x6fb   :  { %4657 = vmatprep.subr.bf16.mxu1 %v9274_v20 }
 0x6fd   :  { %4572 = vmatpush1.bf16.msra.mxu0 %v9269_v22 }
 0x6fe   :  { %4658 = vmatpush1.bf16.msra.mxu1 %v9272_v24  ;;  %4573 = vmatprep.subr.bf16.mxu0 %v9277_v29 }
 0x6ff   :  { %4659 = vmatprep.subr.bf16.mxu1 %v9280_v28 }
 0x701   :  { %4574 = vmatpush1.bf16.msra.mxu0 %v9275_v30 }
 0x702   :  { %4660 = vmatpush1.bf16.msra.mxu1 %v9278_v31  ;;  %4575 = vmatprep.subr.bf16.mxu0 %v9283_v32  ;;  %v9311_v32 = vld [vmem:[#allocation16 + $0x600] ss:$48 sps:$4 sm:$0xff]  }
 0x703   :  { %4661 = vmatprep.subr.bf16.mxu1 %v9286_v33  ;;  %v9314_v33 = vld [vmem:[#allocation16 + $0x608] ss:$48 sps:$4 sm:$0xff]  }
 0x705   :  { %4576 = vmatpush1.bf16.msra.mxu0 %v9281_v37 }
 0x706   :  { %4662 = vmatpush1.bf16.msra.mxu1 %v9284_v38  ;;  %4577 = vmatprep.subr.bf16.mxu0 %v9289_v27  ;;  %v9319_v38 = vld [vmem:[#allocation16 + $0x664] ss:$48 sps:$4 sm:$0xff]   ;;  %v9322_v27 = vld [vmem:[#allocation16 + $0x66c] ss:$48 sps:$4 sm:$0xff]  }
 0x707   :  { %4663 = vmatprep.subr.bf16.mxu1 %v9292_v41  ;;  %v9323_v41 = vld [vmem:[#allocation16 + $0x6c0] ss:$48 sps:$4 sm:$0xff]  }
 0x709   :  { %4578 = vmatpush1.bf16.msra.mxu0 %v9287_v40  ;;  %v9325_v40 = vld [vmem:[#allocation16 + $0x6c4] ss:$48 sps:$4 sm:$0xff]  }
 0x70a   :  { %4664 = vmatpush1.bf16.msra.mxu1 %v9290_v35  ;;  %4579 = vmatprep.subr.bf16.mxu0 %v9295_v45  ;;  %v9328_v35 = vld [vmem:[#allocation16 + $0x6cc] ss:$48 sps:$4 sm:$0xff]   ;;  %v9326_v45 = vld [vmem:[#allocation16 + $0x6c8] ss:$48 sps:$4 sm:$0xff]  }
 0x70b   :  { %4665 = vmatprep.subr.bf16.mxu1 %v9298_v46  ;;  %v9331_v46 = vld [vmem:[#allocation16 + $0x724] ss:$48 sps:$4 sm:$0xff]  }
 0x70d   :  { %4580 = vmatpush1.bf16.msra.mxu0 %v9293_v47  ;;  %v9334_v47 = vld [vmem:[#allocation16 + $0x72c] ss:$48 sps:$4 sm:$0xff]  }
 0x70e   :  { %4666 = vmatpush1.bf16.msra.mxu1 %v9296_v34  ;;  %4581 = vmatprep.subr.bf16.mxu0 %v9301_v48  ;;  %v9329_v34 = vld [vmem:[#allocation16 + $0x720] ss:$48 sps:$4 sm:$0xff]   ;;  %v9332_v48 = vld [vmem:[#allocation16 + $0x728] ss:$48 sps:$4 sm:$0xff]  }
 0x76e   :  { %v2675_v39 = vpop.xlane.xlu0 %2674 }
 0x76f   :  { %v2680_v49 = vmul.f32 0.0026041667, %v2675_v39  ;;  %v9304_v39 = vld [vmem:[#allocation16 + $0x54c] ss:$48 sps:$4 sm:$0xff]  }
 0x770   :  { %4667 = vmatprep.subr.bf16.mxu1 %v9304_v39  ;;  %v9337_v39 = vld [vmem:[#allocation16 + $0x784] ss:$48 sps:$4 sm:$0xff]  }
 0x771   :  { %v10868_v50 = vsub.f32 %v10849_v43, %v2680_v49  ;;  %v10871_v51 = vsub.f32 %v10851_v58, %v2680_v49  ;;  %v10874_v52 = vsub.f32 %v10853_v63, %v2680_v49  ;;  %v9299_v49 = vld [vmem:[#allocation16 + $0x540] ss:$48 sps:$4 sm:$0xff]  }
 0x772   :  { %4582 = vmatpush1.bf16.msra.mxu0 %v9299_v49  ;;  %v9340_v49 = vld [vmem:[#allocation16 + $0x78c] ss:$48 sps:$4 sm:$0xff]  }
 0x773   :  { %v2688_v54 = vmul.f32 %v10868_v50, %v10868_v50  ;;  %v2689_v42 = vmul.f32 %v10871_v51, %v10871_v51  ;;  %v2690_v55 = vmul.f32 %v10874_v52, %v10874_v52 }
 0x775   :  { %v2694_v56 = vadd.f32 %v2689_v42, %v2688_v54  ;;  %v9302_v54 = vld [vmem:[#allocation16 + $0x548] ss:$48 sps:$4 sm:$0xff]   ;;  %v9307_v42 = vld [vmem:[#allocation16 + $0x5a4] ss:$48 sps:$4 sm:$0xff]  }
 0x776   :  { %4668 = vmatpush1.bf16.msra.mxu1 %v9302_v54  ;;  %4583 = vmatprep.subr.bf16.mxu0 %v9307_v42  ;;  %v9335_v54 = vld [vmem:[#allocation16 + $0x780] ss:$48 sps:$4 sm:$0xff]   ;;  %v9338_v42 = vld [vmem:[#allocation16 + $0x788] ss:$48 sps:$4 sm:$0xff]  }
 0x777   :  { %v2695_v15 = vadd.f32 %v2694_v56, %v2690_v55  ;;  %v9310_v55 = vld [vmem:[#allocation16 + $0x5ac] ss:$48 sps:$4 sm:$0xff]   ;;  %v9305_v56 = vld [vmem:[#allocation16 + $0x5a0] ss:$48 sps:$4 sm:$0xff]  }
 0x778   :  { %4669 = vmatprep.subr.bf16.mxu1 %v9310_v55  ;;  %4584 = vmatpush1.bf16.msra.mxu0 %v9305_v56  ;;  %v9343_v55 = vld [vmem:[#allocation16 + $0x7e4] ss:$48 sps:$4 sm:$0xff]   ;;  %v9346_v56 = vld [vmem:[#allocation16 + $0x7ec] ss:$48 sps:$4 sm:$0xff]  }
 0x779   :  { %2696 = vadd.xlane.f32.xlu0 %v2695_v15  ;;  %v9308_v15 = vld [vmem:[#allocation16 + $0x5a8] ss:$48 sps:$4 sm:$0xff]  }
 0x77a   :  { %4670 = vmatpush1.bf16.msra.mxu1 %v9308_v15  ;;  %v9341_v15 = vld [vmem:[#allocation16 + $0x7e0] ss:$48 sps:$4 sm:$0xff]  }
 0x782   :  { %v2679_v59 = vpop.xlane.xlu1 %2678 }
 0x783   :  { %v2681_v60 = vmul.f32 0.0026041667, %v2679_v59  ;;  %v9313_v59 = vld [vmem:[#allocation16 + $0x604] ss:$48 sps:$4 sm:$0xff]  }
 0x784   :  { %4596 = vmatprep.subr.bf16.mxu0 %v9313_v59  ;;  %v9344_v59 = vld [vmem:[#allocation16 + $0x7e8] ss:$48 sps:$4 sm:$0xff]  }
 0x785   :  { %v10883_v61 = vsub.f32 %v10858_v5, %v2681_v60  ;;  %v10886_v62 = vsub.f32 %v10860_v9, %v2681_v60  ;;  %v10889_v0 = vsub.f32 %v10862_v16, %v2681_v60  ;;  %v9316_v60 = vld [vmem:[#allocation16 + $0x60c] ss:$48 sps:$4 sm:$0xff]  }
 0x786   :  { %4682 = vmatprep.subr.bf16.mxu1 %v9316_v60  ;;  %v9349_v60 = vld [vmem:[#allocation16 + $0x844] ss:$48 sps:$4 sm:$0xff]  }
 0x787   :  { %v2691_v1 = vmul.f32 %v10883_v61, %v10883_v61  ;;  %v2692_v53 = vmul.f32 %v10886_v62, %v10886_v62  ;;  %v2693_v2 = vmul.f32 %v10889_v0, %v10889_v0 }
 0x789   :  { %v2698_v4 = vadd.f32 %v2692_v53, %v2691_v1 }
 0x78b   :  { %v2699_v11 = vadd.f32 %v2698_v4, %v2693_v2 }
 0x78d   :  { %2700 = vadd.xlane.f32.xlu1 %v2699_v11  ;;  %v10901_v11 = vld [vmem:[#allocation14] sm:$0x7] }
 0x78e   :  { %v2744_v17 = vrot.slane %v10901_v11, %v10722_v25  ;;  %v2740_v18 = vrot.slane %v10901_v11, %v10725_v26 }
 0x806   :  { %v2697_v1 = vpop.xlane.xlu0 %2696 }
 0x807   :  { %v2702_v53 = vmul.f32 0.0026041667, %v2697_v1  ;;  %v9352_v1 = vld [vmem:[#allocation16 + $0x84c] ss:$48 sps:$4 sm:$0xff]  }
 0x809   :  { %v2704_v2 = vadd.f32 1e-05, %v2702_v53 }
 0x80b   :  { %10043 = vrsqrt.f32 %v2704_v2 }
 0x815   :  { %v10897_v8 = vpop.eup %10043 }
 0x816   :  { %v2709_v12 = vmul.f32 %v10897_v8, %v10871_v51  ;;  %v2708_v14 = vmul.f32 %v10897_v8, %v10868_v50  ;;  %v2710_v2 = vmul.f32 %v10897_v8, %v10874_v52  ;;  %v9356_v52 = vld [vmem:[#allocation16 + $0x8a8] ss:$48 sps:$4 sm:$0xff]  }
 0x818   :  { %v2731_v19 = vmul.f32 %v2722_v13, %v2709_v12  ;;  %v2730_v20 = vmul.f32 %v2718_v44, %v2708_v14  ;;  %v9355_v12 = vld [vmem:[#allocation16 + $0x8a4] ss:$48 sps:$4 sm:$0xff]  }
 0x81a   :  { %v2701_v4 = vpop.xlane.xlu1 %2700  ;;  %v2753_v24 = vadd.f32 %v2744_v17, %v2731_v19  ;;  %v2752_v28 = vadd.f32 %v2740_v18, %v2730_v20  ;;  %v9367_v20 = vld [vmem:[#allocation16 + $0x74] ss:$48 sps:$4 sm:$0xff]  }
 0x81b   :  { %v2703_v6 = vmul.f32 0.0026041667, %v2701_v4  ;;  %v2726_v4 = vrot.slane %v10899_v10, %v10761_v3  ;;  %v9361_v10 = vld [vmem:[#allocation16 + $0x14] ss:$48 sps:$4 sm:$0xff]  }
 0x81d   :  { %v2705_v7 = vadd.f32 1e-05, %v2703_v6  ;;  %v9347_v6 = vld [vmem:[#allocation16 + $0x840] ss:$48 sps:$4 sm:$0xff]  }
 0x81f   :  { %10045 = vrsqrt.f32 %v2705_v7  ;;  %v9350_v7 = vld [vmem:[#allocation16 + $0x848] ss:$48 sps:$4 sm:$0xff]  }
 0x829   :  { %v10911_v36 = vpop.eup %10045 }
 0x82a   :  { %v2712_v51 = vmul.f32 %v10911_v36, %v10886_v62  ;;  %v2711_v21 = vmul.f32 %v10911_v36, %v10883_v61  ;;  %v9317_v61 = vld [vmem:[#allocation16 + $0x660] ss:$48 sps:$4 sm:$0xff]   ;;  %v9320_v62 = vld [vmem:[#allocation16 + $0x668] ss:$48 sps:$4 sm:$0xff]   ;;  %v2713_v53 = vmul.f32 %v10911_v36, %v10889_v0  ;;  %v9364_v36 = vld [vmem:[#allocation16 + $0x1c] ss:$48 sps:$4 sm:$0xff]  }
 0x82b   :  { %v9353_v0 = vld [vmem:[#allocation16 + $0x8a0] ss:$48 sps:$4 sm:$0xff]  }
 0x82c   :  { %v2734_v50 = vmul.f32 %v2722_v13, %v2712_v51  ;;  %v2733_v22 = vmul.f32 %v2718_v44, %v2711_v21  ;;  %v9358_v13 = vld [vmem:[#allocation16 + $0x8ac] ss:$48 sps:$4 sm:$0xff]   ;;  %v2735_v14 = vmul.f32 %v2726_v4, %v2713_v53  ;;  %v2732_v44 = vmul.f32 %v2726_v4, %v2710_v2  ;;  %v9359_v51 = vld [vmem:[#allocation16 + $0x10] ss:$48 sps:$4 sm:$0xff]   ;;  %v9362_v21 = vld [vmem:[#allocation16 + $0x18] ss:$48 sps:$4 sm:$0xff]  }
 0x82d   :  { %v9415_v53 = vld [vmem:[#allocation16 + $0x374] ss:$48 sps:$4 sm:$0xff]   ;;  %v9418_v2 = vld [vmem:[#allocation16 + $0x37c] ss:$48 sps:$4 sm:$0xff]   ;;  %v9413_v4 = vld [vmem:[#allocation16 + $0x370] ss:$48 sps:$4 sm:$0xff]  }
 0x82e   :  { %v2756_v29 = vadd.f32 %v2744_v17, %v2734_v50  ;;  %v2755_v30 = vadd.f32 %v2740_v18, %v2733_v22  ;;  %v2748_v17 = vrot.slane %v10901_v11, %v10761_v3  ;;  %v9370_v11 = vld [vmem:[#allocation16 + $0x7c] ss:$48 sps:$4 sm:$0xff]   ;;  %v9365_v50 = vld [vmem:[#allocation16 + $0x70] ss:$48 sps:$4 sm:$0xff]   ;;  %v9368_v22 = vld [vmem:[#allocation16 + $0x78] ss:$48 sps:$4 sm:$0xff]  }
 0x830   :  { %v10921_v31 = vpack.c.bf16 %v2756_v29, %v2753_v24  ;;  %v10923_v37 = vpack.c.bf16 %v2755_v30, %v2752_v28  ;;  %v2757_v8 = vadd.f32 %v2748_v17, %v2735_v14  ;;  %v2754_v18 = vadd.f32 %v2748_v17, %v2732_v44  ;;  %v9373_v24 = vld [vmem:[#allocation16 + $0xd4] ss:$48 sps:$4 sm:$0xff]   ;;  %v9376_v29 = vld [vmem:[#allocation16 + $0xdc] ss:$48 sps:$4 sm:$0xff]   ;;  %v9371_v28 = vld [vmem:[#allocation16 + $0xd0] ss:$48 sps:$4 sm:$0xff]  }
 0x831   :  { %v9374_v30 = vld [vmem:[#allocation16 + $0xd8] ss:$48 sps:$4 sm:$0xff]   ;;  %v9427_v44 = vld [vmem:[#allocation16 + $0x434] ss:$48 sps:$4 sm:$0xff]   ;;  %v9430_v17 = vld [vmem:[#allocation16 + $0x43c] ss:$48 sps:$4 sm:$0xff]  }
 0x832   :  { %4585 = vmatprep.mubr.bf16.mxu0 %v10921_v31  ;;  %4671 = vmatprep.mubr.bf16.mxu1 %v10921_v31  ;;  %v10939_v19 = vpack.c.bf16 %v2757_v8, %v2754_v18  ;;  %v9422_v14 = vld [vmem:[#allocation16 + $0x3d8] ss:$48 sps:$4 sm:$0xff]   ;;  %v9433_v8 = vld [vmem:[#allocation16 + $0x494] ss:$48 sps:$4 sm:$0xff]  }
 0x833   :  { %4586 = vmatmul.mubr.bf16.vlgmr.msra.gmra.mrb[20].mxu0 %v10923_v37  ;;  %4672 = vmatmul.mubr.bf16.vlgmr.msra.gmra.mrb[40].mxu1 %v10923_v37  ;;  %v9434_v18 = vld [vmem:[#allocation16 + $0x498] ss:$48 sps:$4 sm:$0xff]  }
 0x834   :  { %4597 = vmatpush1.bf16.msra.mxu0 %v9311_v32  ;;  %4683 = vmatpush1.bf16.msra.mxu1 %v9314_v33  ;;  %v9379_v32 = vld [vmem:[#allocation16 + $0x134] ss:$48 sps:$4 sm:$0xff]   ;;  %v9382_v33 = vld [vmem:[#allocation16 + $0x13c] ss:$48 sps:$4 sm:$0xff]  }
 0x835   :  { %4598 = vmatprep.subr.bf16.mxu0 %v9319_v38  ;;  %4684 = vmatprep.subr.bf16.mxu1 %v9322_v27  ;;  %v9377_v38 = vld [vmem:[#allocation16 + $0x130] ss:$48 sps:$4 sm:$0xff]   ;;  %v9380_v27 = vld [vmem:[#allocation16 + $0x138] ss:$48 sps:$4 sm:$0xff]  }
 0x836   :  { %4628 = vmatprep.mubr.bf16.mxu0 %v10426_v57  ;;  %4714 = vmatprep.mubr.bf16.mxu1 %v10426_v57 }
 0x838   :  { %4599 = vmatpush1.bf16.msra.mxu0 %v9317_v61  ;;  %4685 = vmatpush1.bf16.msra.mxu1 %v9320_v62  ;;  %v9385_v61 = vld [vmem:[#allocation16 + $0x194] ss:$48 sps:$4 sm:$0xff]   ;;  %v9388_v62 = vld [vmem:[#allocation16 + $0x19c] ss:$48 sps:$4 sm:$0xff]  }
 0x839   :  { %4600 = vmatprep.subr.bf16.mxu0 %v9325_v40  ;;  %4686 = vmatprep.subr.bf16.mxu1 %v9328_v35  ;;  %v9383_v40 = vld [vmem:[#allocation16 + $0x190] ss:$48 sps:$4 sm:$0xff]   ;;  %v9386_v35 = vld [vmem:[#allocation16 + $0x198] ss:$48 sps:$4 sm:$0xff]  }
 0x83c   :  { %4601 = vmatpush1.bf16.msra.mxu0 %v9323_v41  ;;  %4687 = vmatpush1.bf16.msra.mxu1 %v9326_v45  ;;  %v9391_v41 = vld [vmem:[#allocation16 + $0x1f4] ss:$48 sps:$4 sm:$0xff]   ;;  %v9394_v45 = vld [vmem:[#allocation16 + $0x1fc] ss:$48 sps:$4 sm:$0xff]  }
 0x83d   :  { %4602 = vmatprep.subr.bf16.mxu0 %v9331_v46  ;;  %4688 = vmatprep.subr.bf16.mxu1 %v9334_v47  ;;  %v9389_v46 = vld [vmem:[#allocation16 + $0x1f0] ss:$48 sps:$4 sm:$0xff]   ;;  %v9392_v47 = vld [vmem:[#allocation16 + $0x1f8] ss:$48 sps:$4 sm:$0xff]  }
 0x840   :  { %4603 = vmatpush1.bf16.msra.mxu0 %v9329_v34  ;;  %4689 = vmatpush1.bf16.msra.mxu1 %v9332_v48  ;;  %v9397_v34 = vld [vmem:[#allocation16 + $0x254] ss:$48 sps:$4 sm:$0xff]   ;;  %v9400_v48 = vld [vmem:[#allocation16 + $0x25c] ss:$48 sps:$4 sm:$0xff]  }
 0x841   :  { %4604 = vmatprep.subr.bf16.mxu0 %v9337_v39  ;;  %4690 = vmatprep.subr.bf16.mxu1 %v9340_v49  ;;  %v9395_v39 = vld [vmem:[#allocation16 + $0x250] ss:$48 sps:$4 sm:$0xff]   ;;  %v9398_v49 = vld [vmem:[#allocation16 + $0x258] ss:$48 sps:$4 sm:$0xff]  }
 0x844   :  { %4605 = vmatpush1.bf16.msra.mxu0 %v9335_v54  ;;  %4691 = vmatpush1.bf16.msra.mxu1 %v9338_v42  ;;  %v9403_v54 = vld [vmem:[#allocation16 + $0x2b4] ss:$48 sps:$4 sm:$0xff]   ;;  %v9406_v42 = vld [vmem:[#allocation16 + $0x2bc] ss:$48 sps:$4 sm:$0xff]  }
 0x845   :  { %4606 = vmatprep.subr.bf16.mxu0 %v9343_v55  ;;  %4692 = vmatprep.subr.bf16.mxu1 %v9346_v56  ;;  %v9401_v55 = vld [vmem:[#allocation16 + $0x2b0] ss:$48 sps:$4 sm:$0xff]   ;;  %v9404_v56 = vld [vmem:[#allocation16 + $0x2b8] ss:$48 sps:$4 sm:$0xff]  }
 0x848   :  { %4607 = vmatpush1.bf16.msra.mxu0 %v9341_v15  ;;  %4693 = vmatpush1.bf16.msra.mxu1 %v9344_v59  ;;  %v9409_v15 = vld [vmem:[#allocation16 + $0x314] ss:$48 sps:$4 sm:$0xff]   ;;  %v9412_v59 = vld [vmem:[#allocation16 + $0x31c] ss:$48 sps:$4 sm:$0xff]  }
 0x849   :  { %4608 = vmatprep.subr.bf16.mxu0 %v9349_v60  ;;  %4694 = vmatprep.subr.bf16.mxu1 %v9352_v1  ;;  %v9407_v60 = vld [vmem:[#allocation16 + $0x310] ss:$48 sps:$4 sm:$0xff]   ;;  %v9410_v1 = vld [vmem:[#allocation16 + $0x318] ss:$48 sps:$4 sm:$0xff]  }
 0x84c   :  { %4609 = vmatpush1.bf16.msra.mxu0 %v9347_v6  ;;  %4695 = vmatpush1.bf16.msra.mxu1 %v9350_v7  ;;  %v9416_v6 = vld [vmem:[#allocation16 + $0x378] ss:$48 sps:$4 sm:$0xff]   ;;  %v9421_v7 = vld [vmem:[#allocation16 + $0x3d4] ss:$48 sps:$4 sm:$0xff]  }
 0x84d   :  { %4610 = vmatprep.subr.bf16.mxu0 %v9355_v12  ;;  %4696 = vmatprep.subr.bf16.mxu1 %v9358_v13  ;;  %v9424_v12 = vld [vmem:[#allocation16 + $0x3dc] ss:$48 sps:$4 sm:$0xff]   ;;  %v9419_v13 = vld [vmem:[#allocation16 + $0x3d0] ss:$48 sps:$4 sm:$0xff]  }
 0x850   :  { %4611 = vmatpush1.bf16.msra.mxu0 %v9353_v0  ;;  %4697 = vmatpush1.bf16.msra.mxu1 %v9356_v52  ;;  %v9425_v0 = vld [vmem:[#allocation16 + $0x430] ss:$48 sps:$4 sm:$0xff]   ;;  %v9428_v52 = vld [vmem:[#allocation16 + $0x438] ss:$48 sps:$4 sm:$0xff]  }
 0x851   :  { %4725 = vmatprep.subr.bf16.mxu0 %v9361_v10  ;;  %4811 = vmatprep.subr.bf16.mxu1 %v9364_v36  ;;  %v9436_v10 = vld [vmem:[#allocation16 + $0x49c] ss:$48 sps:$4 sm:$0xff]   ;;  %v9431_v36 = vld [vmem:[#allocation16 + $0x490] ss:$48 sps:$4 sm:$0xff]  }
 0x853   :  { %4629 = vmatmul.mubr.bf16.vlgmr.msra.gmra.mrb[20].mxu0 %v10939_v19  ;;  %4715 = vmatmul.mubr.bf16.vlgmr.msra.gmra.mrb[40].mxu1 %v10939_v19 }
 0x854   :  { %4726 = vmatpush1.bf16.msra.mxu0 %v9359_v51  ;;  %4757 = vmatprep.mubr.bf16.mxu0 %v10921_v31  ;;  %v9439_v51 = vld [vmem:[#allocation16 + $0x4f4] ss:$48 sps:$4 sm:$0xff]  }
 0x855   :  { %4812 = vmatpush1.bf16.msra.mxu1 %v9362_v21  ;;  %4843 = vmatprep.mubr.bf16.mxu1 %v10921_v31  ;;  %v9442_v21 = vld [vmem:[#allocation16 + $0x4fc] ss:$48 sps:$4 sm:$0xff]  }
 0x856   :  { %4727 = vmatprep.subr.bf16.mxu0 %v9367_v20  ;;  %4813 = vmatprep.subr.bf16.mxu1 %v9370_v11  ;;  %v9437_v20 = vld [vmem:[#allocation16 + $0x4f0] ss:$48 sps:$4 sm:$0xff]   ;;  %v9440_v11 = vld [vmem:[#allocation16 + $0x4f8] ss:$48 sps:$4 sm:$0xff]  }
 0x858   :  { %4728 = vmatpush1.bf16.msra.mxu0 %v9365_v50  ;;  %v9445_v50 = vld [vmem:[#allocation16 + $0x554] ss:$48 sps:$4 sm:$0xff]  }
 0x859   :  { %4814 = vmatpush1.bf16.msra.mxu1 %v9368_v22  ;;  %4729 = vmatprep.subr.bf16.mxu0 %v9373_v24  ;;  %v9448_v22 = vld [vmem:[#allocation16 + $0x55c] ss:$48 sps:$4 sm:$0xff]   ;;  %v9443_v24 = vld [vmem:[#allocation16 + $0x550] ss:$48 sps:$4 sm:$0xff]  }
 0x85a   :  { %4815 = vmatprep.subr.bf16.mxu1 %v9376_v29  ;;  %v9446_v29 = vld [vmem:[#allocation16 + $0x558] ss:$48 sps:$4 sm:$0xff]  }
 0x85c   :  { %4730 = vmatpush1.bf16.msra.mxu0 %v9371_v28  ;;  %v9451_v28 = vld [vmem:[#allocation16 + $0x5b4] ss:$48 sps:$4 sm:$0xff]  }
 0x85d   :  { %4816 = vmatpush1.bf16.msra.mxu1 %v9374_v30  ;;  %4731 = vmatprep.subr.bf16.mxu0 %v9379_v32  ;;  %v9454_v30 = vld [vmem:[#allocation16 + $0x5bc] ss:$48 sps:$4 sm:$0xff]   ;;  %v9449_v32 = vld [vmem:[#allocation16 + $0x5b0] ss:$48 sps:$4 sm:$0xff]  }
 0x85e   :  { %4817 = vmatprep.subr.bf16.mxu1 %v9382_v33  ;;  %v9452_v33 = vld [vmem:[#allocation16 + $0x5b8] ss:$48 sps:$4 sm:$0xff]  }
 0x860   :  { %4732 = vmatpush1.bf16.msra.mxu0 %v9377_v38  ;;  %v9457_v38 = vld [vmem:[#allocation16 + $0x614] ss:$48 sps:$4 sm:$0xff]  }
 0x861   :  { %4818 = vmatpush1.bf16.msra.mxu1 %v9380_v27  ;;  %4733 = vmatprep.subr.bf16.mxu0 %v9385_v61  ;;  %v9460_v27 = vld [vmem:[#allocation16 + $0x61c] ss:$48 sps:$4 sm:$0xff]   ;;  %v9455_v61 = vld [vmem:[#allocation16 + $0x610] ss:$48 sps:$4 sm:$0xff]  }
 0x862   :  { %4819 = vmatprep.subr.bf16.mxu1 %v9388_v62  ;;  %v9458_v62 = vld [vmem:[#allocation16 + $0x618] ss:$48 sps:$4 sm:$0xff]  }
 0x864   :  { %4734 = vmatpush1.bf16.msra.mxu0 %v9383_v40  ;;  %v9463_v40 = vld [vmem:[#allocation16 + $0x674] ss:$48 sps:$4 sm:$0xff]  }
 0x865   :  { %4820 = vmatpush1.bf16.msra.mxu1 %v9386_v35  ;;  %4735 = vmatprep.subr.bf16.mxu0 %v9391_v41  ;;  %v9466_v35 = vld [vmem:[#allocation16 + $0x67c] ss:$48 sps:$4 sm:$0xff]   ;;  %v9461_v41 = vld [vmem:[#allocation16 + $0x670] ss:$48 sps:$4 sm:$0xff]  }
 0x866   :  { %4821 = vmatprep.subr.bf16.mxu1 %v9394_v45  ;;  %v9464_v45 = vld [vmem:[#allocation16 + $0x678] ss:$48 sps:$4 sm:$0xff]  }
 0x868   :  { %4736 = vmatpush1.bf16.msra.mxu0 %v9389_v46  ;;  %v9469_v46 = vld [vmem:[#allocation16 + $0x6d4] ss:$48 sps:$4 sm:$0xff]  }
 0x869   :  { %4822 = vmatpush1.bf16.msra.mxu1 %v9392_v47  ;;  %4737 = vmatprep.subr.bf16.mxu0 %v9397_v34  ;;  %v9472_v47 = vld [vmem:[#allocation16 + $0x6dc] ss:$48 sps:$4 sm:$0xff]   ;;  %v9467_v34 = vld [vmem:[#allocation16 + $0x6d0] ss:$48 sps:$4 sm:$0xff]  }
 0x86a   :  { %4823 = vmatprep.subr.bf16.mxu1 %v9400_v48  ;;  %v9470_v48 = vld [vmem:[#allocation16 + $0x6d8] ss:$48 sps:$4 sm:$0xff]  }
 0x86c   :  { %4738 = vmatpush1.bf16.msra.mxu0 %v9395_v39  ;;  %v9475_v39 = vld [vmem:[#allocation16 + $0x734] ss:$48 sps:$4 sm:$0xff]  }
 0x86d   :  { %4824 = vmatpush1.bf16.msra.mxu1 %v9398_v49  ;;  %4739 = vmatprep.subr.bf16.mxu0 %v9403_v54  ;;  %v9478_v49 = vld [vmem:[#allocation16 + $0x73c] ss:$48 sps:$4 sm:$0xff]   ;;  %v9473_v54 = vld [vmem:[#allocation16 + $0x730] ss:$48 sps:$4 sm:$0xff]  }
 0x86e   :  { %4825 = vmatprep.subr.bf16.mxu1 %v9406_v42  ;;  %v9476_v42 = vld [vmem:[#allocation16 + $0x738] ss:$48 sps:$4 sm:$0xff]  }
 0x870   :  { %4740 = vmatpush1.bf16.msra.mxu0 %v9401_v55  ;;  %v9481_v55 = vld [vmem:[#allocation16 + $0x794] ss:$48 sps:$4 sm:$0xff]  }
 0x871   :  { %4826 = vmatpush1.bf16.msra.mxu1 %v9404_v56  ;;  %4741 = vmatprep.subr.bf16.mxu0 %v9409_v15  ;;  %v9484_v56 = vld [vmem:[#allocation16 + $0x79c] ss:$48 sps:$4 sm:$0xff]   ;;  %v9479_v15 = vld [vmem:[#allocation16 + $0x790] ss:$48 sps:$4 sm:$0xff]  }
 0x872   :  { %4827 = vmatprep.subr.bf16.mxu1 %v9412_v59  ;;  %v9482_v59 = vld [vmem:[#allocation16 + $0x798] ss:$48 sps:$4 sm:$0xff]  }
 0x874   :  { %4742 = vmatpush1.bf16.msra.mxu0 %v9407_v60  ;;  %v9487_v60 = vld [vmem:[#allocation16 + $0x7f4] ss:$48 sps:$4 sm:$0xff]  }
 0x875   :  { %4828 = vmatpush1.bf16.msra.mxu1 %v9410_v1  ;;  %4743 = vmatprep.subr.bf16.mxu0 %v9415_v53  ;;  %v9490_v1 = vld [vmem:[#allocation16 + $0x7fc] ss:$48 sps:$4 sm:$0xff]   ;;  %v9485_v53 = vld [vmem:[#allocation16 + $0x7f0] ss:$48 sps:$4 sm:$0xff]  }
 0x876   :  { %4829 = vmatprep.subr.bf16.mxu1 %v9418_v2  ;;  %v9488_v2 = vld [vmem:[#allocation16 + $0x7f8] ss:$48 sps:$4 sm:$0xff]  }
 0x878   :  { %4744 = vmatpush1.bf16.msra.mxu0 %v9413_v4  ;;  %v9493_v4 = vld [vmem:[#allocation16 + $0x854] ss:$48 sps:$4 sm:$0xff]  }
 0x879   :  { %4830 = vmatpush1.bf16.msra.mxu1 %v9416_v6  ;;  %4745 = vmatprep.subr.bf16.mxu0 %v9421_v7  ;;  %v9496_v6 = vld [vmem:[#allocation16 + $0x85c] ss:$48 sps:$4 sm:$0xff]   ;;  %v9491_v7 = vld [vmem:[#allocation16 + $0x850] ss:$48 sps:$4 sm:$0xff]  }
 0x87a   :  { %4831 = vmatprep.subr.bf16.mxu1 %v9424_v12  ;;  %v9494_v12 = vld [vmem:[#allocation16 + $0x858] ss:$48 sps:$4 sm:$0xff]  }
 0x87c   :  { %4746 = vmatpush1.bf16.msra.mxu0 %v9419_v13  ;;  %v9499_v13 = vld [vmem:[#allocation16 + $0x8b4] ss:$48 sps:$4 sm:$0xff]  }
 0x87d   :  { %4832 = vmatpush1.bf16.msra.mxu1 %v9422_v14  ;;  %4747 = vmatprep.subr.bf16.mxu0 %v9427_v44  ;;  %v9502_v14 = vld [vmem:[#allocation16 + $0x8bc] ss:$48 sps:$4 sm:$0xff]   ;;  %v9497_v44 = vld [vmem:[#allocation16 + $0x8b0] ss:$48 sps:$4 sm:$0xff]  }
 0x87e   :  { %4833 = vmatprep.subr.bf16.mxu1 %v9430_v17  ;;  %v9500_v17 = vld [vmem:[#allocation16 + $0x8b8] ss:$48 sps:$4 sm:$0xff]  }
 0x880   :  { %4748 = vmatpush1.bf16.msra.mxu0 %v9425_v0  ;;  %v9505_v0 = vld [vmem:[#allocation16 + $0x24] ss:$48 sps:$4 sm:$0xff]  }
 0x881   :  { %4834 = vmatpush1.bf16.msra.mxu1 %v9428_v52  ;;  %4749 = vmatprep.subr.bf16.mxu0 %v9433_v8  ;;  %v9508_v52 = vld [vmem:[#allocation16 + $0x2c] ss:$48 sps:$4 sm:$0xff]   ;;  %v9503_v8 = vld [vmem:[#allocation16 + $0x20] ss:$48 sps:$4 sm:$0xff]  }
 0x882   :  { %4835 = vmatprep.subr.bf16.mxu1 %v9436_v10  ;;  %v9506_v10 = vld [vmem:[#allocation16 + $0x28] ss:$48 sps:$4 sm:$0xff]  }
 0x884   :  { %4750 = vmatpush1.bf16.msra.mxu0 %v9431_v36  ;;  %v9511_v36 = vld [vmem:[#allocation16 + $0x84] ss:$48 sps:$4 sm:$0xff]  }
 0x885   :  { %4836 = vmatpush1.bf16.msra.mxu1 %v9434_v18  ;;  %4751 = vmatprep.subr.bf16.mxu0 %v9439_v51  ;;  %v9514_v18 = vld [vmem:[#allocation16 + $0x8c] ss:$48 sps:$4 sm:$0xff]   ;;  %v9509_v51 = vld [vmem:[#allocation16 + $0x80] ss:$48 sps:$4 sm:$0xff]  }
 0x886   :  { %4837 = vmatprep.subr.bf16.mxu1 %v9442_v21  ;;  %v9512_v21 = vld [vmem:[#allocation16 + $0x88] ss:$48 sps:$4 sm:$0xff]  }
 0x888   :  { %4752 = vmatpush1.bf16.msra.mxu0 %v9437_v20  ;;  %v9517_v20 = vld [vmem:[#allocation16 + $0xe4] ss:$48 sps:$4 sm:$0xff]  }
 0x889   :  { %4838 = vmatpush1.bf16.msra.mxu1 %v9440_v11  ;;  %4753 = vmatprep.subr.bf16.mxu0 %v9445_v50  ;;  %v9520_v11 = vld [vmem:[#allocation16 + $0xec] ss:$48 sps:$4 sm:$0xff]   ;;  %v9515_v50 = vld [vmem:[#allocation16 + $0xe0] ss:$48 sps:$4 sm:$0xff]  }
 0x88a   :  { %4839 = vmatprep.subr.bf16.mxu1 %v9448_v22  ;;  %v9518_v22 = vld [vmem:[#allocation16 + $0xe8] ss:$48 sps:$4 sm:$0xff]  }
 0x88c   :  { %4754 = vmatpush1.bf16.msra.mxu0 %v9443_v24  ;;  %v9523_v24 = vld [vmem:[#allocation16 + $0x144] ss:$48 sps:$4 sm:$0xff]  }
 0x88d   :  { %4840 = vmatpush1.bf16.msra.mxu1 %v9446_v29  ;;  %4755 = vmatprep.subr.bf16.mxu0 %v9451_v28  ;;  %v9526_v29 = vld [vmem:[#allocation16 + $0x14c] ss:$48 sps:$4 sm:$0xff]   ;;  %v9521_v28 = vld [vmem:[#allocation16 + $0x140] ss:$48 sps:$4 sm:$0xff]  }
 0x88e   :  { %4841 = vmatprep.subr.bf16.mxu1 %v9454_v30  ;;  %v9524_v30 = vld [vmem:[#allocation16 + $0x148] ss:$48 sps:$4 sm:$0xff]  }
 0x890   :  { %4756 = vmatpush1.bf16.msra.mxu0 %v9449_v32  ;;  %v9529_v32 = vld [vmem:[#allocation16 + $0x1a4] ss:$48 sps:$4 sm:$0xff]  }
 0x891   :  { %4842 = vmatpush1.bf16.msra.mxu1 %v9452_v33  ;;  %4768 = vmatprep.subr.bf16.mxu0 %v9457_v38  ;;  %v9532_v33 = vld [vmem:[#allocation16 + $0x1ac] ss:$48 sps:$4 sm:$0xff]   ;;  %v9530_v38 = vld [vmem:[#allocation16 + $0x1a8] ss:$48 sps:$4 sm:$0xff]  }
 0x892   :  { %4854 = vmatprep.subr.bf16.mxu1 %v9460_v27  ;;  %v9535_v27 = vld [vmem:[#allocation16 + $0x204] ss:$48 sps:$4 sm:$0xff]  }
 0x893   :  { %4758 = vmatmul.mubr.bf16.vlgmr.msra.gmra.mrb[24].mxu0 %v10923_v37 }
 0x894   :  { %4844 = vmatmul.mubr.bf16.vlgmr.msra.gmra.mrb[44].mxu1 %v10923_v37  ;;  %4769 = vmatpush1.bf16.msra.mxu0 %v9455_v61  ;;  %v9538_v61 = vld [vmem:[#allocation16 + $0x20c] ss:$48 sps:$4 sm:$0xff]  }
 0x895   :  { %4855 = vmatpush1.bf16.msra.mxu1 %v9458_v62  ;;  %4770 = vmatprep.subr.bf16.mxu0 %v9463_v40  ;;  %v9533_v62 = vld [vmem:[#allocation16 + $0x200] ss:$48 sps:$4 sm:$0xff]   ;;  %v9536_v40 = vld [vmem:[#allocation16 + $0x208] ss:$48 sps:$4 sm:$0xff]  }
 0x896   :  { %4856 = vmatprep.subr.bf16.mxu1 %v9466_v35  ;;  %4800 = vmatprep.mubr.bf16.mxu0 %v10426_v57  ;;  %v9541_v35 = vld [vmem:[#allocation16 + $0x264] ss:$48 sps:$4 sm:$0xff]  }
 0x897   :  { %4886 = vmatprep.mubr.bf16.mxu1 %v10426_v57 }
 0x898   :  { %4771 = vmatpush1.bf16.msra.mxu0 %v9461_v41  ;;  %v9544_v41 = vld [vmem:[#allocation16 + $0x26c] ss:$48 sps:$4 sm:$0xff]  }
 0x899   :  { %4857 = vmatpush1.bf16.msra.mxu1 %v9464_v45  ;;  %4772 = vmatprep.subr.bf16.mxu0 %v9469_v46  ;;  %v9539_v45 = vld [vmem:[#allocation16 + $0x260] ss:$48 sps:$4 sm:$0xff]   ;;  %v9542_v46 = vld [vmem:[#allocation16 + $0x268] ss:$48 sps:$4 sm:$0xff]  }
 0x89a   :  { %4858 = vmatprep.subr.bf16.mxu1 %v9472_v47  ;;  %v9547_v47 = vld [vmem:[#allocation16 + $0x2c4] ss:$48 sps:$4 sm:$0xff]  }
 0x89c   :  { %4773 = vmatpush1.bf16.msra.mxu0 %v9467_v34  ;;  %v9550_v34 = vld [vmem:[#allocation16 + $0x2cc] ss:$48 sps:$4 sm:$0xff]  }
 0x89d   :  { %4859 = vmatpush1.bf16.msra.mxu1 %v9470_v48  ;;  %4774 = vmatprep.subr.bf16.mxu0 %v9475_v39  ;;  %v9545_v48 = vld [vmem:[#allocation16 + $0x2c0] ss:$48 sps:$4 sm:$0xff]   ;;  %v9548_v39 = vld [vmem:[#allocation16 + $0x2c8] ss:$48 sps:$4 sm:$0xff]  }
 0x89e   :  { %4860 = vmatprep.subr.bf16.mxu1 %v9478_v49  ;;  %v9553_v49 = vld [vmem:[#allocation16 + $0x324] ss:$48 sps:$4 sm:$0xff]  }
 0x8a0   :  { %4775 = vmatpush1.bf16.msra.mxu0 %v9473_v54  ;;  %v9556_v54 = vld [vmem:[#allocation16 + $0x32c] ss:$48 sps:$4 sm:$0xff]  }
 0x8a1   :  { %4861 = vmatpush1.bf16.msra.mxu1 %v9476_v42  ;;  %4776 = vmatprep.subr.bf16.mxu0 %v9481_v55  ;;  %v9551_v42 = vld [vmem:[#allocation16 + $0x320] ss:$48 sps:$4 sm:$0xff]   ;;  %v9554_v55 = vld [vmem:[#allocation16 + $0x328] ss:$48 sps:$4 sm:$0xff]  }
 0x8a2   :  { %4862 = vmatprep.subr.bf16.mxu1 %v9484_v56  ;;  %v9559_v56 = vld [vmem:[#allocation16 + $0x384] ss:$48 sps:$4 sm:$0xff]  }
 0x8a4   :  { %4777 = vmatpush1.bf16.msra.mxu0 %v9479_v15  ;;  %v9562_v15 = vld [vmem:[#allocation16 + $0x38c] ss:$48 sps:$4 sm:$0xff]  }
 0x8a5   :  { %4863 = vmatpush1.bf16.msra.mxu1 %v9482_v59  ;;  %4778 = vmatprep.subr.bf16.mxu0 %v9487_v60  ;;  %v9557_v59 = vld [vmem:[#allocation16 + $0x380] ss:$48 sps:$4 sm:$0xff]   ;;  %v9560_v60 = vld [vmem:[#allocation16 + $0x388] ss:$48 sps:$4 sm:$0xff]  }
 0x8a6   :  { %4864 = vmatprep.subr.bf16.mxu1 %v9490_v1  ;;  %v9565_v1 = vld [vmem:[#allocation16 + $0x3e4] ss:$48 sps:$4 sm:$0xff]  }
 0x8a8   :  { %4779 = vmatpush1.bf16.msra.mxu0 %v9485_v53  ;;  %v9568_v53 = vld [vmem:[#allocation16 + $0x3ec] ss:$48 sps:$4 sm:$0xff]  }
 0x8a9   :  { %4865 = vmatpush1.bf16.msra.mxu1 %v9488_v2  ;;  %4780 = vmatprep.subr.bf16.mxu0 %v9493_v4  ;;  %v9563_v2 = vld [vmem:[#allocation16 + $0x3e0] ss:$48 sps:$4 sm:$0xff]   ;;  %v9566_v4 = vld [vmem:[#allocation16 + $0x3e8] ss:$48 sps:$4 sm:$0xff]  }
 0x8aa   :  { %4866 = vmatprep.subr.bf16.mxu1 %v9496_v6  ;;  %v9571_v6 = vld [vmem:[#allocation16 + $0x444] ss:$48 sps:$4 sm:$0xff]  }
 0x8ac   :  { %4781 = vmatpush1.bf16.msra.mxu0 %v9491_v7  ;;  %v9574_v7 = vld [vmem:[#allocation16 + $0x44c] ss:$48 sps:$4 sm:$0xff]  }
 0x8ad   :  { %4867 = vmatpush1.bf16.msra.mxu1 %v9494_v12  ;;  %4782 = vmatprep.subr.bf16.mxu0 %v9499_v13  ;;  %v9569_v12 = vld [vmem:[#allocation16 + $0x440] ss:$48 sps:$4 sm:$0xff]   ;;  %v9572_v13 = vld [vmem:[#allocation16 + $0x448] ss:$48 sps:$4 sm:$0xff]  }
 0x8ae   :  { %4868 = vmatprep.subr.bf16.mxu1 %v9502_v14  ;;  %v9577_v14 = vld [vmem:[#allocation16 + $0x4a4] ss:$48 sps:$4 sm:$0xff]  }
 0x8b0   :  { %4783 = vmatpush1.bf16.msra.mxu0 %v9497_v44  ;;  %v9580_v44 = vld [vmem:[#allocation16 + $0x4ac] ss:$48 sps:$4 sm:$0xff]  }
 0x8b1   :  { %4869 = vmatpush1.bf16.msra.mxu1 %v9500_v17  ;;  %4897 = vmatprep.subr.bf16.mxu0 %v9505_v0  ;;  %v9575_v17 = vld [vmem:[#allocation16 + $0x4a0] ss:$48 sps:$4 sm:$0xff]   ;;  %v9578_v0 = vld [vmem:[#allocation16 + $0x4a8] ss:$48 sps:$4 sm:$0xff]  }
 0x8b2   :  { %4983 = vmatprep.subr.bf16.mxu1 %v9508_v52  ;;  %v9583_v52 = vld [vmem:[#allocation16 + $0x504] ss:$48 sps:$4 sm:$0xff]  }
 0x8b3   :  { %4801 = vmatmul.mubr.bf16.vlgmr.msra.gmra.mrb[24].mxu0 %v10939_v19 }
 0x8b4   :  { %4887 = vmatmul.mubr.bf16.vlgmr.msra.gmra.mrb[44].mxu1 %v10939_v19  ;;  %4898 = vmatpush1.bf16.msra.mxu0 %v9503_v8  ;;  %v9586_v8 = vld [vmem:[#allocation16 + $0x50c] ss:$48 sps:$4 sm:$0xff]  }
 0x8b5   :  { %4929 = vmatprep.mubr.bf16.mxu0 %v10921_v31  ;;  %4984 = vmatpush1.bf16.msra.mxu1 %v9506_v10  ;;  %v9581_v10 = vld [vmem:[#allocation16 + $0x500] ss:$48 sps:$4 sm:$0xff]  }
 0x8b6   :  { %5015 = vmatprep.mubr.bf16.mxu1 %v10921_v31  ;;  %4899 = vmatprep.subr.bf16.mxu0 %v9511_v36  ;;  %v9527_v31 = vld [vmem:[#allocation16 + $0x1a0] ss:$48 sps:$4 sm:$0xff]   ;;  %v9584_v36 = vld [vmem:[#allocation16 + $0x508] ss:$48 sps:$4 sm:$0xff]  }
 0x8b7   :  { %4985 = vmatprep.subr.bf16.mxu1 %v9514_v18  ;;  %v9589_v18 = vld [vmem:[#allocation16 + $0x564] ss:$48 sps:$4 sm:$0xff]  }
 0x8b8   :  { %4900 = vmatpush1.bf16.msra.mxu0 %v9509_v51  ;;  %v9592_v51 = vld [vmem:[#allocation16 + $0x56c] ss:$48 sps:$4 sm:$0xff]  }
 0x8b9   :  { %4986 = vmatpush1.bf16.msra.mxu1 %v9512_v21  ;;  %4901 = vmatprep.subr.bf16.mxu0 %v9517_v20  ;;  %v9587_v21 = vld [vmem:[#allocation16 + $0x560] ss:$48 sps:$4 sm:$0xff]   ;;  %v9590_v20 = vld [vmem:[#allocation16 + $0x568] ss:$48 sps:$4 sm:$0xff]  }
 0x8ba   :  { %4987 = vmatprep.subr.bf16.mxu1 %v9520_v11  ;;  %v9595_v11 = vld [vmem:[#allocation16 + $0x5c4] ss:$48 sps:$4 sm:$0xff]  }
 0x8bc   :  { %4902 = vmatpush1.bf16.msra.mxu0 %v9515_v50  ;;  %v9598_v50 = vld [vmem:[#allocation16 + $0x5cc] ss:$48 sps:$4 sm:$0xff]  }
 0x8bd   :  { %4988 = vmatpush1.bf16.msra.mxu1 %v9518_v22  ;;  %4903 = vmatprep.subr.bf16.mxu0 %v9523_v24  ;;  %v9593_v22 = vld [vmem:[#allocation16 + $0x5c0] ss:$48 sps:$4 sm:$0xff]   ;;  %v9596_v24 = vld [vmem:[#allocation16 + $0x5c8] ss:$48 sps:$4 sm:$0xff]  }
 0x8be   :  { %4989 = vmatprep.subr.bf16.mxu1 %v9526_v29  ;;  %v9601_v29 = vld [vmem:[#allocation16 + $0x624] ss:$48 sps:$4 sm:$0xff]  }
 0x8c0   :  { %4904 = vmatpush1.bf16.msra.mxu0 %v9521_v28  ;;  %v9604_v28 = vld [vmem:[#allocation16 + $0x62c] ss:$48 sps:$4 sm:$0xff]  }
 0x8c1   :  { %4990 = vmatpush1.bf16.msra.mxu1 %v9524_v30  ;;  %4905 = vmatprep.subr.bf16.mxu0 %v9529_v32  ;;  %v9599_v30 = vld [vmem:[#allocation16 + $0x620] ss:$48 sps:$4 sm:$0xff]   ;;  %v9602_v32 = vld [vmem:[#allocation16 + $0x628] ss:$48 sps:$4 sm:$0xff]  }
 0x8c2   :  { %4991 = vmatprep.subr.bf16.mxu1 %v9532_v33  ;;  %v9607_v33 = vld [vmem:[#allocation16 + $0x684] ss:$48 sps:$4 sm:$0xff]  }
 0x8c4   :  { %4906 = vmatpush1.bf16.msra.mxu0 %v9527_v31  ;;  %v9610_v31 = vld [vmem:[#allocation16 + $0x68c] ss:$48 sps:$4 sm:$0xff]  }
 0x8c5   :  { %4992 = vmatpush1.bf16.msra.mxu1 %v9530_v38  ;;  %4907 = vmatprep.subr.bf16.mxu0 %v9535_v27  ;;  %v9605_v38 = vld [vmem:[#allocation16 + $0x680] ss:$48 sps:$4 sm:$0xff]   ;;  %v9608_v27 = vld [vmem:[#allocation16 + $0x688] ss:$48 sps:$4 sm:$0xff]  }
 0x8c6   :  { %4993 = vmatprep.subr.bf16.mxu1 %v9538_v61  ;;  %v9613_v61 = vld [vmem:[#allocation16 + $0x6e4] ss:$48 sps:$4 sm:$0xff]  }
 0x8c8   :  { %4908 = vmatpush1.bf16.msra.mxu0 %v9533_v62  ;;  %v9616_v62 = vld [vmem:[#allocation16 + $0x6ec] ss:$48 sps:$4 sm:$0xff]  }
 0x8c9   :  { %4994 = vmatpush1.bf16.msra.mxu1 %v9536_v40  ;;  %4909 = vmatprep.subr.bf16.mxu0 %v9541_v35  ;;  %v9611_v40 = vld [vmem:[#allocation16 + $0x6e0] ss:$48 sps:$4 sm:$0xff]   ;;  %v9614_v35 = vld [vmem:[#allocation16 + $0x6e8] ss:$48 sps:$4 sm:$0xff]  }
 0x8ca   :  { %4995 = vmatprep.subr.bf16.mxu1 %v9544_v41  ;;  %v9619_v41 = vld [vmem:[#allocation16 + $0x744] ss:$48 sps:$4 sm:$0xff]  }
 0x8cc   :  { %4910 = vmatpush1.bf16.msra.mxu0 %v9539_v45  ;;  %v9617_v45 = vld [vmem:[#allocation16 + $0x740] ss:$48 sps:$4 sm:$0xff]  }
 0x8cd   :  { %4996 = vmatpush1.bf16.msra.mxu1 %v9542_v46  ;;  %4911 = vmatprep.subr.bf16.mxu0 %v9547_v47  ;;  %v9620_v46 = vld [vmem:[#allocation16 + $0x748] ss:$48 sps:$4 sm:$0xff]   ;;  %v9625_v47 = vld [vmem:[#allocation16 + $0x7a4] ss:$48 sps:$4 sm:$0xff]  }
 0x8ce   :  { %4997 = vmatprep.subr.bf16.mxu1 %v9550_v34  ;;  %v9628_v34 = vld [vmem:[#allocation16 + $0x7ac] ss:$48 sps:$4 sm:$0xff]  }
 0x8d0   :  { %4912 = vmatpush1.bf16.msra.mxu0 %v9545_v48  ;;  %v9623_v48 = vld [vmem:[#allocation16 + $0x7a0] ss:$48 sps:$4 sm:$0xff]  }
 0x8d1   :  { %4998 = vmatpush1.bf16.msra.mxu1 %v9548_v39  ;;  %4913 = vmatprep.subr.bf16.mxu0 %v9553_v49  ;;  %v9631_v39 = vld [vmem:[#allocation16 + $0x804] ss:$48 sps:$4 sm:$0xff]   ;;  %v9634_v49 = vld [vmem:[#allocation16 + $0x80c] ss:$48 sps:$4 sm:$0xff]  }
 0x8d2   :  { %4999 = vmatprep.subr.bf16.mxu1 %v9556_v54  ;;  %v9629_v54 = vld [vmem:[#allocation16 + $0x800] ss:$48 sps:$4 sm:$0xff]  }
 0x8d4   :  { %4914 = vmatpush1.bf16.msra.mxu0 %v9551_v42  ;;  %v9632_v42 = vld [vmem:[#allocation16 + $0x808] ss:$48 sps:$4 sm:$0xff]  }
 0x8d5   :  { %5000 = vmatpush1.bf16.msra.mxu1 %v9554_v55  ;;  %4915 = vmatprep.subr.bf16.mxu0 %v9559_v56  ;;  %v9637_v55 = vld [vmem:[#allocation16 + $0x864] ss:$48 sps:$4 sm:$0xff]   ;;  %v9640_v56 = vld [vmem:[#allocation16 + $0x86c] ss:$48 sps:$4 sm:$0xff]  }
 0x8d6   :  { %5001 = vmatprep.subr.bf16.mxu1 %v9562_v15  ;;  %v9635_v15 = vld [vmem:[#allocation16 + $0x860] ss:$48 sps:$4 sm:$0xff]  }
 0x8d8   :  { %4916 = vmatpush1.bf16.msra.mxu0 %v9557_v59  ;;  %v9638_v59 = vld [vmem:[#allocation16 + $0x868] ss:$48 sps:$4 sm:$0xff]  }
 0x8d9   :  { %5002 = vmatpush1.bf16.msra.mxu1 %v9560_v60  ;;  %4917 = vmatprep.subr.bf16.mxu0 %v9565_v1  ;;  %v9643_v60 = vld [vmem:[#allocation16 + $0x8c4] ss:$48 sps:$4 sm:$0xff]   ;;  %v9646_v1 = vld [vmem:[#allocation16 + $0x8cc] ss:$48 sps:$4 sm:$0xff]  }
 0x8da   :  { %5003 = vmatprep.subr.bf16.mxu1 %v9568_v53  ;;  %v9641_v53 = vld [vmem:[#allocation16 + $0x8c0] ss:$48 sps:$4 sm:$0xff]  }
 0x8dc   :  { %4918 = vmatpush1.bf16.msra.mxu0 %v9563_v2  ;;  %v9644_v2 = vld [vmem:[#allocation16 + $0x8c8] ss:$48 sps:$4 sm:$0xff]  }
 0x8dd   :  { %5004 = vmatpush1.bf16.msra.mxu1 %v9566_v4  ;;  %4919 = vmatprep.subr.bf16.mxu0 %v9571_v6  ;;  %v9649_v4 = vld [vmem:[#allocation19 + $0x4] ss:$12 sps:$4 sm:$0xff]   ;;  %v9650_v6 = vld [vmem:[#allocation19 + $0xc8] ss:$12 sps:$4 sm:$0xff]  }
 0x8de   :  { %5005 = vmatprep.subr.bf16.mxu1 %v9574_v7  ;;  %v9647_v7 = vld [vmem:[#allocation19] ss:$12 sps:$4 sm:$0xff]  }
 0x8e0   :  { %4920 = vmatpush1.bf16.msra.mxu0 %v9569_v12  ;;  %v9651_v12 = vld [vmem:[#allocation19 + $0x8] ss:$12 sps:$4 sm:$0xff]  }
 0x8e1   :  { %5006 = vmatpush1.bf16.msra.mxu1 %v9572_v13  ;;  %4921 = vmatprep.subr.bf16.mxu0 %v9577_v14  ;;  %v9654_v13 = vld [vmem:[#allocation19 + $0x1c] ss:$12 sps:$4 sm:$0xff]   ;;  %v9655_v14 = vld [vmem:[#allocation19 + $0xe0] ss:$12 sps:$4 sm:$0xff]  }
 0x8e2   :  { %5007 = vmatprep.subr.bf16.mxu1 %v9580_v44  ;;  %v9652_v44 = vld [vmem:[#allocation19 + $0x18] ss:$12 sps:$4 sm:$0xff]  }
 0x8e4   :  { %4922 = vmatpush1.bf16.msra.mxu0 %v9575_v17  ;;  %v9656_v17 = vld [vmem:[#allocation19 + $0x20] ss:$12 sps:$4 sm:$0xff]  }
 0x8e5   :  { %5008 = vmatpush1.bf16.msra.mxu1 %v9578_v0  ;;  %4923 = vmatprep.subr.bf16.mxu0 %v9583_v52  ;;  %v9659_v0 = vld [vmem:[#allocation19 + $0x34] ss:$12 sps:$4 sm:$0xff]   ;;  %v9660_v52 = vld [vmem:[#allocation19 + $0xf8] ss:$12 sps:$4 sm:$0xff]  }
 0x8e6   :  { %5009 = vmatprep.subr.bf16.mxu1 %v9586_v8  ;;  %v9657_v8 = vld [vmem:[#allocation19 + $0x30] ss:$12 sps:$4 sm:$0xff]  }
 0x8e8   :  { %4924 = vmatpush1.bf16.msra.mxu0 %v9581_v10  ;;  %v9661_v10 = vld [vmem:[#allocation19 + $0x38] ss:$12 sps:$4 sm:$0xff]  }
 0x8e9   :  { %5010 = vmatpush1.bf16.msra.mxu1 %v9584_v36  ;;  %4925 = vmatprep.subr.bf16.mxu0 %v9589_v18  ;;  %v9664_v36 = vld [vmem:[#allocation19 + $0x4c] ss:$12 sps:$4 sm:$0xff]   ;;  %v9665_v18 = vld [vmem:[#allocation19 + $0x110] ss:$12 sps:$4 sm:$0xff]  }
 0x8ea   :  { %5011 = vmatprep.subr.bf16.mxu1 %v9592_v51  ;;  %v9662_v51 = vld [vmem:[#allocation19 + $0x48] ss:$12 sps:$4 sm:$0xff]  }
 0x8ec   :  { %4926 = vmatpush1.bf16.msra.mxu0 %v9587_v21  ;;  %v9669_v21 = vld [vmem:[#allocation19 + $0x64] ss:$12 sps:$4 sm:$0xff]  }
 0x8ed   :  { %5012 = vmatpush1.bf16.msra.mxu1 %v9590_v20  ;;  %4927 = vmatprep.subr.bf16.mxu0 %v9595_v11  ;;  %v9670_v20 = vld [vmem:[#allocation19 + $0x128] ss:$12 sps:$4 sm:$0xff]   ;;  %v9667_v11 = vld [vmem:[#allocation19 + $0x60] ss:$12 sps:$4 sm:$0xff]  }
 0x8ee   :  { %5013 = vmatprep.subr.bf16.mxu1 %v9598_v50  ;;  %v10959_v50 = vld [vmem:[#allocation17] sm:$0xff] }
 0x8f0   :  { %4928 = vmatpush1.bf16.msra.mxu0 %v9593_v22  ;;  %v3067_v22 = vsub.s32 3, %v10717_v23 }
 0x8f1   :  { %5014 = vmatpush1.bf16.msra.mxu1 %v9596_v24  ;;  %4940 = vmatprep.subr.bf16.mxu0 %v9601_v29  ;;  %v9671_v24 = vld [vmem:[#allocation19 + $0x68] ss:$12 sps:$4 sm:$0xff]  }
 0x8f2   :  { %5026 = vmatprep.subr.bf16.mxu1 %v9604_v28  ;;  %v9674_v29 = vld [vmem:[#allocation19 + $0x7c] ss:$12 sps:$4 sm:$0xff]   ;;  %v9675_v28 = vld [vmem:[#allocation19 + $0x140] ss:$12 sps:$4 sm:$0xff]  }
 0x8f3   :  { %4930 = vmatmul.mubr.bf16.vlgmr.msra.gmra.mrb[28].mxu0 %v10923_v37 }
 0x8f4   :  { %5016 = vmatmul.mubr.bf16.vlgmr.msra.gmra.mrb[48].mxu1 %v10923_v37  ;;  %4941 = vmatpush1.bf16.msra.mxu0 %v9599_v30  ;;  %v9622_v37 = vld [vmem:[#allocation16 + $0x74c] ss:$48 sps:$4 sm:$0xff]   ;;  %v3056_v30 = vrot.slane %v10959_v50, %v10725_v26 }
 0x8f5   :  { %5027 = vmatpush1.bf16.msra.mxu1 %v9602_v32  ;;  %4942 = vmatprep.subr.bf16.mxu0 %v9607_v33  ;;  %v3064_v32 = vrot.slane %v10959_v50, %v10761_v3  ;;  %v3060_v33 = vrot.slane %v10959_v50, %v10722_v25 }
 0x8f6   :  { %5028 = vmatprep.subr.bf16.mxu1 %v9610_v31  ;;  %4972 = vmatprep.mubr.bf16.mxu0 %v10426_v57  ;;  %v3068_v31 = vrot.slane %v10959_v50, %v3067_v22 }
 0x8f7   :  { %5058 = vmatprep.mubr.bf16.mxu1 %v10426_v57  ;;  %v9626_v57 = vld [vmem:[#allocation16 + $0x7a8] ss:$48 sps:$4 sm:$0xff]  }
 0x8f8   :  { %4943 = vmatpush1.bf16.msra.mxu0 %v9605_v38  ;;  %v9672_v38 = vld [vmem:[#allocation19 + $0x78] ss:$12 sps:$4 sm:$0xff]  }
 0x8f9   :  { %5029 = vmatpush1.bf16.msra.mxu1 %v9608_v27  ;;  %4944 = vmatprep.subr.bf16.mxu0 %v9613_v61  ;;  %v9676_v27 = vld [vmem:[#allocation19 + $0x80] ss:$12 sps:$4 sm:$0xff]  }
 0x8fa   :  { %5030 = vmatprep.subr.bf16.mxu1 %v9616_v62  ;;  %v9679_v61 = vld [vmem:[#allocation19 + $0x94] ss:$12 sps:$4 sm:$0xff]  }
 0x8fc   :  { %4945 = vmatpush1.bf16.msra.mxu0 %v9611_v40 }
 0x8fd   :  { %5031 = vmatpush1.bf16.msra.mxu1 %v9614_v35  ;;  %4946 = vmatprep.subr.bf16.mxu0 %v9619_v41  ;;  %v9680_v35 = vld [vmem:[#allocation19 + $0x158] ss:$12 sps:$4 sm:$0xff]  }
 0x8fe   :  { %5032 = vmatprep.subr.bf16.mxu1 %v9622_v37 }
 0x900   :  { %4947 = vmatpush1.bf16.msra.mxu0 %v9617_v45 }
 0x901   :  { %5033 = vmatpush1.bf16.msra.mxu1 %v9620_v46  ;;  %4948 = vmatprep.subr.bf16.mxu0 %v9625_v47 }
 0x902   :  { %5034 = vmatprep.subr.bf16.mxu1 %v9628_v34 }
 0x904   :  { %4949 = vmatpush1.bf16.msra.mxu0 %v9623_v48 }
 0x905   :  { %5035 = vmatpush1.bf16.msra.mxu1 %v9626_v57  ;;  %4950 = vmatprep.subr.bf16.mxu0 %v9631_v39  ;;  %v9677_v39 = vld [vmem:[#allocation19 + $0x90] ss:$12 sps:$4 sm:$0xff]  }
 0x906   :  { %5036 = vmatprep.subr.bf16.mxu1 %v9634_v49 }
 0x908   :  { %4951 = vmatpush1.bf16.msra.mxu0 %v9629_v54 }
 0x909   :  { %5037 = vmatpush1.bf16.msra.mxu1 %v9632_v42  ;;  %4952 = vmatprep.subr.bf16.mxu0 %v9637_v55 }
 0x90a   :  { %5038 = vmatprep.subr.bf16.mxu1 %v9640_v56  ;;  %v9681_v56 = vld [vmem:[#allocation19 + $0x98] ss:$12 sps:$4 sm:$0xff]  }
 0x90c   :  { %4953 = vmatpush1.bf16.msra.mxu0 %v9635_v15  ;;  %v9684_v15 = vld [vmem:[#allocation19 + $0xac] ss:$12 sps:$4 sm:$0xff]  }
 0x90d   :  { %5039 = vmatpush1.bf16.msra.mxu1 %v9638_v59  ;;  %4954 = vmatprep.subr.bf16.mxu0 %v9643_v60 }
 0x90e   :  { %5040 = vmatprep.subr.bf16.mxu1 %v9646_v1  ;;  %v9685_v1 = vld [vmem:[#allocation19 + $0x170] ss:$12 sps:$4 sm:$0xff]  }
 0x910   :  { %4955 = vmatpush1.bf16.msra.mxu0 %v9641_v53 }
 0x911   :  { %5041 = vmatpush1.bf16.msra.mxu1 %v9644_v2  ;;  %7042 = vmatprep.subr.bf16.mxu0 %v9649_v4 }
 0x912   :  { %8595 = vmatprep.subr.bf16.mxu1 %v9650_v6 }
 0x913   :  { %4973 = vmatmul.mubr.bf16.vlgmr.msra.gmra.mrb[28].mxu0 %v10939_v19 }
 0x914   :  { %5059 = vmatmul.mubr.bf16.vlgmr.msra.gmra.mrb[48].mxu1 %v10939_v19  ;;  %7043 = vmatpush1.bf16.msra.mxu0 %v9647_v7  ;;  %v9666_v19 = vld [vmem:[#allocation19 + $0x50] ss:$12 sps:$4 sm:$0xff]  }
 0x915   :  { %8596 = vmatpush3.bf16.msra.mxu1 %v9651_v12  ;;  %7044 = vmatprep.subr.bf16.mxu0 %v9654_v13 }
 0x916   :  { %8597 = vmatprep.subr.bf16.mxu1 %v9655_v14 }
 0x918   :  { %7045 = vmatpush1.bf16.msra.mxu0 %v9652_v44  ;;  %v9682_v44 = vld [vmem:[#allocation19 + $0xa8] ss:$12 sps:$4 sm:$0xff]  }
 0x919   :  { %8598 = vmatpush3.bf16.msra.mxu1 %v9656_v17  ;;  %7046 = vmatprep.subr.bf16.mxu0 %v9659_v0 }
 0x91a   :  { %8599 = vmatprep.subr.bf16.mxu1 %v9660_v52  ;;  %v9686_v52 = vld [vmem:[#allocation19 + $0xb0] ss:$12 sps:$4 sm:$0xff]  }
 0x91c   :  { %7047 = vmatpush1.bf16.msra.mxu0 %v9657_v8 }
 0x91d   :  { %8600 = vmatpush3.bf16.msra.mxu1 %v9661_v10  ;;  %7048 = vmatprep.subr.bf16.mxu0 %v9664_v36  ;;  %v9689_v36 = vld [vmem:[#allocation19 + $0xc4] ss:$12 sps:$4 sm:$0xff]  }
 0x91e   :  { %8601 = vmatprep.subr.bf16.mxu1 %v9665_v18  ;;  %v9690_v18 = vld [vmem:[#allocation19 + $0x248] ss:$12 sps:$4 sm:$0xff]  }
 0x920   :  { %7049 = vmatpush1.bf16.msra.mxu0 %v9662_v51  ;;  %v9687_v51 = vld [vmem:[#allocation19 + $0xc0] ss:$12 sps:$4 sm:$0xff]  }
 0x921   :  { %8602 = vmatpush3.bf16.msra.mxu1 %v9666_v19  ;;  %7050 = vmatprep.subr.bf16.mxu0 %v9669_v21  ;;  %v9691_v19 = vld [vmem:[#allocation19 + $0x188] ss:$12 sps:$4 sm:$0xff]  }
 0x922   :  { %8603 = vmatprep.subr.bf16.mxu1 %v9670_v20  ;;  %v9694_v21 = vld [vmem:[#allocation19 + $0xdc] ss:$12 sps:$4 sm:$0xff]   ;;  %v9695_v20 = vld [vmem:[#allocation19 + $0x260] ss:$12 sps:$4 sm:$0xff]  }
 0x924   :  { %7051 = vmatpush1.bf16.msra.mxu0 %v9667_v11  ;;  %v9692_v11 = vld [vmem:[#allocation19 + $0xd8] ss:$12 sps:$4 sm:$0xff]  }
 0x925   :  { %8604 = vmatpush3.bf16.msra.mxu1 %v9671_v24  ;;  %7052 = vmatprep.subr.bf16.mxu0 %v9674_v29  ;;  %v9696_v24 = vld [vmem:[#allocation19 + $0x1a0] ss:$12 sps:$4 sm:$0xff]  }
 0x926   :  { %v4630_v62 = vpop.f32.mrb[20].mxu0  ;;  %v4716_v40 = vpop.f32.mrb[40].mxu1  ;;  %8605 = vmatprep.subr.bf16.mxu1 %v9675_v28  ;;  %v9699_v29 = vld [vmem:[#allocation19 + $0xf4] ss:$12 sps:$4 sm:$0xff]   ;;  %v9700_v28 = vld [vmem:[#allocation19 + $0x278] ss:$12 sps:$4 sm:$0xff]  }
 0x927   :  { %v8811_v41 = vadd.f32 %v4630_v62, %v3056_v30  ;;  %v8815_v37 = vadd.f32 %v4716_v40, %v3064_v32  ;;  %v4632_v45 = vpop.f32.mrb[21].mxu0  ;;  %v4718_v46 = vpop.f32.mrb[41].mxu1  ;;  %v9710_v62 = vld [vmem:[#allocation19 + $0x2a8] ss:$12 sps:$4 sm:$0xff]   ;;  %v9707_v40 = vld [vmem:[#allocation19 + $0x120] ss:$12 sps:$4 sm:$0xff]  }
 0x928   :  { %v8812_v47 = vadd.f32 %v4632_v45, %v3060_v33  ;;  %v8816_v34 = vadd.f32 %v4718_v46, %v3068_v31  ;;  %v4634_v48 = vpop.f32.mrb[22].mxu0  ;;  %v4720_v57 = vpop.f32.mrb[42].mxu1  ;;  %7053 = vmatpush1.bf16.msra.mxu0 %v9672_v38  ;;  %v9702_v38 = vld [vmem:[#allocation19 + $0x108] ss:$12 sps:$4 sm:$0xff]   ;;  %v9712_v45 = vld [vmem:[#allocation19 + $0x138] ss:$12 sps:$4 sm:$0xff]  }
 0x929   :  { %v8813_v49 = vadd.f32 %v4634_v48, %v3056_v30  ;;  %v8817_v54 = vadd.f32 %v4720_v57, %v3064_v32  ;;  %8606 = vmatpush3.bf16.msra.mxu1 %v9676_v27  ;;  %v4636_v42 = vpop.f32.mrb[23].mxu0  ;;  %v4722_v55 = vpop.f32.mrb[43].mxu1  ;;  %7054 = vmatprep.subr.bf16.mxu0 %v9679_v61  ;;  %v5069_v53 = vmax.f32 %v8811_v41, 0.0  ;;  %v5071_v2 = vmax.f32 %v8815_v37, 0.0  ;;  %v9697_v30 = vld [vmem:[#allocation19 + $0xf0] ss:$12 sps:$4 sm:$0xff]  }
 0x92a   :  { %v8814_v59 = vadd.f32 %v4636_v42, %v3060_v33  ;;  %v8818_v60 = vadd.f32 %v4722_v55, %v3068_v31  ;;  %8607 = vmatprep.subr.bf16.mxu1 %v9680_v35  ;;  %v5070_v7 = vmax.f32 %v8812_v47, 0.0  ;;  %v5072_v12 = vmax.f32 %v8816_v34, 0.0  ;;  %v9701_v32 = vld [vmem:[#allocation19 + $0x1b8] ss:$12 sps:$4 sm:$0xff]   ;;  %v9705_v31 = vld [vmem:[#allocation19 + $0x290] ss:$12 sps:$4 sm:$0xff]  }
 0x92b   :  { %v5081_v4 = vmax.f32 %v8813_v49, 0.0  ;;  %v5083_v6 = vmax.f32 %v8817_v54, 0.0  ;;  %v9704_v33 = vld [vmem:[#allocation19 + $0x10c] ss:$12 sps:$4 sm:$0xff]   ;;  %v9706_v27 = vld [vmem:[#allocation19 + $0x1d0] ss:$12 sps:$4 sm:$0xff]  }
 0x92c   :  { %v5082_v13 = vmax.f32 %v8814_v59, 0.0  ;;  %v5084_v14 = vmax.f32 %v8818_v60, 0.0  ;;  %7055 = vmatpush1.bf16.msra.mxu0 %v9677_v39  ;;  %v9709_v61 = vld [vmem:[#allocation19 + $0x124] ss:$12 sps:$4 sm:$0xff]   ;;  %v9711_v35 = vld [vmem:[#allocation19 + $0x1e8] ss:$12 sps:$4 sm:$0xff]  }
 0x92d   :  { %v10971_v17 = vpack.c.bf16 %v5081_v4, %v5069_v53  ;;  %v10973_v0 = vpack.c.bf16 %v5083_v6, %v5071_v2  ;;  %8608 = vmatpush3.bf16.msra.mxu1 %v9681_v56  ;;  %7056 = vmatprep.subr.bf16.mxu0 %v9684_v15  ;;  %v9714_v41 = vld [vmem:[#allocation19 + $0x13c] ss:$12 sps:$4 sm:$0xff]   ;;  %v9715_v37 = vld [vmem:[#allocation19 + $0x2c0] ss:$12 sps:$4 sm:$0xff]   ;;  %v9720_v34 = vld [vmem:[#allocation19 + $0x2d8] ss:$12 sps:$4 sm:$0xff]  }
 0x92e   :  { %v5094_v8 = vpack.c.bf16 %v5082_v13, %v5070_v7  ;;  %v10975_v10 = vpack.c.bf16 %v5084_v14, %v5072_v12  ;;  %8609 = vmatprep.subr.bf16.mxu1 %v9685_v1  ;;  %v9716_v46 = vld [vmem:[#allocation19 + $0x200] ss:$12 sps:$4 sm:$0xff]   ;;  %v9717_v48 = vld [vmem:[#allocation19 + $0x150] ss:$12 sps:$4 sm:$0xff]   ;;  %v9721_v57 = vld [vmem:[#allocation19 + $0x218] ss:$12 sps:$4 sm:$0xff]  }
 0x92f   :  { %v9719_v47 = vld [vmem:[#allocation19 + $0x154] ss:$12 sps:$4 sm:$0xff]   ;;  %v9724_v39 = vld [vmem:[#allocation19 + $0x16c] ss:$12 sps:$4 sm:$0xff]   ;;  %v9725_v49 = vld [vmem:[#allocation19 + $0x2f0] ss:$12 sps:$4 sm:$0xff]  }
 0x930   :  { %7057 = vmatpush1.bf16.msra.mxu0 %v9682_v44  ;;  %7074 = vmatprep.mubr.bf16.mxu0 %v5094_v8  ;;  %v9722_v54 = vld [vmem:[#allocation19 + $0x168] ss:$12 sps:$4 sm:$0xff]   ;;  %v9726_v42 = vld [vmem:[#allocation19 + $0x230] ss:$12 sps:$4 sm:$0xff]   ;;  %v9727_v15 = vld [vmem:[#allocation19 + $0x180] ss:$12 sps:$4 sm:$0xff]  }
 0x931   :  { %8610 = vmatpush3.bf16.msra.mxu1 %v9686_v52  ;;  %7332 = vmatprep.mubr.bf16.mxu1 %v5094_v8  ;;  %v9729_v55 = vld [vmem:[#allocation19 + $0x184] ss:$12 sps:$4 sm:$0xff]   ;;  %v9751_v56 = vld [vmem:[#allocation19 + $0x3c8] ss:$12 sps:$4 sm:$0xff]   ;;  %v9756_v1 = vld [vmem:[#allocation19 + $0x3e0] ss:$12 sps:$4 sm:$0xff]  }
 0x932   :  { %7058 = vmatprep.subr.bf16.mxu0 %v9689_v36  ;;  %8617 = vmatprep.subr.bf16.mxu1 %v9690_v18  ;;  %v9732_v59 = vld [vmem:[#allocation19 + $0x19c] ss:$12 sps:$4 sm:$0xff]   ;;  %v9730_v53 = vld [vmem:[#allocation19 + $0x198] ss:$12 sps:$4 sm:$0xff]   ;;  %v9735_v2 = vld [vmem:[#allocation19 + $0x1b4] ss:$12 sps:$4 sm:$0xff]  }
 0x933   :  { %v9752_v60 = vld [vmem:[#allocation19 + $0x308] ss:$12 sps:$4 sm:$0xff]   ;;  %v9757_v4 = vld [vmem:[#allocation19 + $0x320] ss:$12 sps:$4 sm:$0xff]   ;;  %v9761_v6 = vld [vmem:[#allocation19 + $0x3f8] ss:$12 sps:$4 sm:$0xff]  }
 0x934   :  { %7333 = vmatmul.mubr.bf16.vlgmr.msra.gmra.mrb[52].mxu1 %v10971_v17  ;;  %7059 = vmatpush1.bf16.msra.mxu0 %v9687_v51  ;;  %v9733_v7 = vld [vmem:[#allocation19 + $0x1b0] ss:$12 sps:$4 sm:$0xff]   ;;  %v9738_v12 = vld [vmem:[#allocation19 + $0x1cc] ss:$12 sps:$4 sm:$0xff]   ;;  %v9736_v44 = vld [vmem:[#allocation19 + $0x1c8] ss:$12 sps:$4 sm:$0xff]  }
 0x935   :  { %8618 = vmatpush3.bf16.msra.mxu1 %v9691_v19  ;;  %7373 = vmatprep.mubr.bf16.mxu1 %v10975_v10  ;;  %v9762_v13 = vld [vmem:[#allocation19 + $0x338] ss:$12 sps:$4 sm:$0xff]   ;;  %v9766_v14 = vld [vmem:[#allocation19 + $0x410] ss:$12 sps:$4 sm:$0xff]   ;;  %v9771_v8 = vld [vmem:[#allocation19 + $0x428] ss:$12 sps:$4 sm:$0xff]  }
 0x936   :  { %7060 = vmatprep.subr.bf16.mxu0 %v9694_v21  ;;  %8619 = vmatprep.subr.bf16.mxu1 %v9695_v20  ;;  %v9767_v52 = vld [vmem:[#allocation19 + $0x350] ss:$12 sps:$4 sm:$0xff]   ;;  %v9772_v18 = vld [vmem:[#allocation19 + $0x368] ss:$12 sps:$4 sm:$0xff]   ;;  %v9776_v51 = vld [vmem:[#allocation19 + $0x440] ss:$12 sps:$4 sm:$0xff]  }
 0x937   :  { %v9744_v36 = vld [vmem:[#allocation19 + $0x1fc] ss:$12 sps:$4 sm:$0xff]   ;;  %v9742_v19 = vld [vmem:[#allocation19 + $0x1f8] ss:$12 sps:$4 sm:$0xff]   ;;  %v9747_v21 = vld [vmem:[#allocation19 + $0x214] ss:$12 sps:$4 sm:$0xff]  }
 0x938   :  { %7061 = vmatpush1.bf16.msra.mxu0 %v9692_v11  ;;  %v9777_v20 = vld [vmem:[#allocation19 + $0x380] ss:$12 sps:$4 sm:$0xff]   ;;  %v9781_v11 = vld [vmem:[#allocation19 + $0x458] ss:$12 sps:$4 sm:$0xff]  }
 0x939   :  { %8620 = vmatpush3.bf16.msra.mxu1 %v9696_v24  ;;  %7062 = vmatprep.subr.bf16.mxu0 %v9699_v29  ;;  %v9745_v24 = vld [vmem:[#allocation19 + $0x210] ss:$12 sps:$4 sm:$0xff]   ;;  %v9750_v29 = vld [vmem:[#allocation19 + $0x22c] ss:$12 sps:$4 sm:$0xff]  }
 0x93a   :  { %8621 = vmatprep.subr.bf16.mxu1 %v9700_v28  ;;  %v9782_v28 = vld [vmem:[#allocation19 + $0x398] ss:$12 sps:$4 sm:$0xff]  }
 0x93c   :  { %7063 = vmatpush1.bf16.msra.mxu0 %v9697_v30  ;;  %v9786_v30 = vld [vmem:[#allocation19 + $0x470] ss:$12 sps:$4 sm:$0xff]  }
 0x93d   :  { %8622 = vmatpush3.bf16.msra.mxu1 %v9701_v32  ;;  %7064 = vmatprep.subr.bf16.mxu0 %v9704_v33  ;;  %v9748_v32 = vld [vmem:[#allocation19 + $0x228] ss:$12 sps:$4 sm:$0xff]   ;;  %v9755_v33 = vld [vmem:[#allocation19 + $0x244] ss:$12 sps:$4 sm:$0xff]  }
 0x93e   :  { %8623 = vmatprep.subr.bf16.mxu1 %v9705_v31  ;;  %v9787_v31 = vld [vmem:[#allocation19 + $0x3b0] ss:$12 sps:$4 sm:$0xff]  }
 0x940   :  { %7065 = vmatpush1.bf16.msra.mxu0 %v9702_v38  ;;  %v9791_v38 = vld [vmem:[#allocation19 + $0x548] ss:$12 sps:$4 sm:$0xff]  }
 0x941   :  { %8624 = vmatpush3.bf16.msra.mxu1 %v9706_v27  ;;  %7066 = vmatprep.subr.bf16.mxu0 %v9709_v61  ;;  %v9753_v27 = vld [vmem:[#allocation19 + $0x240] ss:$12 sps:$4 sm:$0xff]   ;;  %v9760_v61 = vld [vmem:[#allocation19 + $0x25c] ss:$12 sps:$4 sm:$0xff]  }
 0x942   :  { %8625 = vmatprep.subr.bf16.mxu1 %v9710_v62  ;;  %v9758_v62 = vld [vmem:[#allocation19 + $0x258] ss:$12 sps:$4 sm:$0xff]  }
 0x944   :  { %7067 = vmatpush1.bf16.msra.mxu0 %v9707_v40  ;;  %v9765_v40 = vld [vmem:[#allocation19 + $0x274] ss:$12 sps:$4 sm:$0xff]  }
 0x945   :  { %8626 = vmatpush3.bf16.msra.mxu1 %v9711_v35  ;;  %7068 = vmatprep.subr.bf16.mxu0 %v9714_v41  ;;  %v9763_v35 = vld [vmem:[#allocation19 + $0x270] ss:$12 sps:$4 sm:$0xff]   ;;  %v9770_v41 = vld [vmem:[#allocation19 + $0x28c] ss:$12 sps:$4 sm:$0xff]  }
 0x946   :  { %8627 = vmatprep.subr.bf16.mxu1 %v9715_v37  ;;  %v9768_v37 = vld [vmem:[#allocation19 + $0x288] ss:$12 sps:$4 sm:$0xff]  }
 0x948   :  { %7069 = vmatpush1.bf16.msra.mxu0 %v9712_v45  ;;  %v9775_v45 = vld [vmem:[#allocation19 + $0x2a4] ss:$12 sps:$4 sm:$0xff]  }
 0x949   :  { %8628 = vmatpush3.bf16.msra.mxu1 %v9716_v46  ;;  %7070 = vmatprep.subr.bf16.mxu0 %v9719_v47  ;;  %v3071_v46 = vsub.s32 4, %v10717_v23  ;;  %v9773_v47 = vld [vmem:[#allocation19 + $0x2a0] ss:$12 sps:$4 sm:$0xff]  }
 0x94a   :  { %8629 = vmatprep.subr.bf16.mxu1 %v9720_v34  ;;  %v3079_v34 = vsub.s32 6, %v10717_v23 }
 0x94c   :  { %7071 = vmatpush1.bf16.msra.mxu0 %v9717_v48  ;;  %v3075_v48 = vsub.s32 5, %v10717_v23 }
 0x94d   :  { %8630 = vmatpush3.bf16.msra.mxu1 %v9721_v57  ;;  %7072 = vmatprep.subr.bf16.mxu0 %v9724_v39  ;;  %v3083_v57 = vsub.s32 7, %v10717_v23  ;;  %v9780_v39 = vld [vmem:[#allocation19 + $0x2bc] ss:$12 sps:$4 sm:$0xff]  }
 0x94e   :  { %8631 = vmatprep.subr.bf16.mxu1 %v9725_v49  ;;  %v3072_v49 = vrot.slane %v10959_v50, %v3071_v46  ;;  %v9802_v46 = vld [vmem:[#allocation19 + $0x4b8] ss:$12 sps:$4 sm:$0xff]  }
 0x950   :  { %7073 = vmatpush1.bf16.msra.mxu0 %v9722_v54  ;;  %v3080_v54 = vrot.slane %v10959_v50, %v3079_v34  ;;  %v9803_v34 = vld [vmem:[#allocation19 + $0x330] ss:$12 sps:$4 sm:$0xff]  }
 0x951   :  { %8632 = vmatpush3.bf16.msra.mxu1 %v9726_v42  ;;  %7085 = vmatprep.subr.bf16.mxu0 %v9729_v55  ;;  %v3076_v42 = vrot.slane %v10959_v50, %v3075_v48  ;;  %v9778_v55 = vld [vmem:[#allocation19 + $0x2b8] ss:$12 sps:$4 sm:$0xff]  }
 0x952   :  { %8639 = vmatprep.subr.bf16.mxu1 %v9751_v56  ;;  %v3084_v56 = vrot.slane %v10959_v50, %v3083_v57  ;;  %v9810_v48 = vld [vmem:[#allocation19 + $0x34c] ss:$12 sps:$4 sm:$0xff]   ;;  %v9807_v57 = vld [vmem:[#allocation19 + $0x4d0] ss:$12 sps:$4 sm:$0xff]  }
 0x953   :  { %7075 = vmatmul.mubr.bf16.vlgmr.msra.gmra.mrb[32].mxu0 %v10971_v17  ;;  %v9741_v17 = vld [vmem:[#allocation19 + $0x1e4] ss:$12 sps:$4 sm:$0xff]  }
 0x954   :  { %7374 = vmatmul.mubr.bf16.vlgmr.msra.gmra.mrb[56].mxu1 %v10973_v0  ;;  %7086 = vmatpush1.bf16.msra.mxu0 %v9727_v15  ;;  %v9785_v15 = vld [vmem:[#allocation19 + $0x2d4] ss:$12 sps:$4 sm:$0xff]  }
 0x955   :  { %7117 = vmatprep.mubr.bf16.mxu0 %v10975_v10  ;;  %7087 = vmatprep.subr.bf16.mxu0 %v9732_v59  ;;  %v9739_v10 = vld [vmem:[#allocation19 + $0x1e0] ss:$12 sps:$4 sm:$0xff]  }
 0x956   :  { %8640 = vmatpush3.bf16.msra.mxu1 %v9752_v60 }
 0x957   :  { %8641 = vmatprep.subr.bf16.mxu1 %v9756_v1 }
 0x958   :  { %7088 = vmatpush1.bf16.msra.mxu0 %v9730_v53 }
 0x959   :  { %7089 = vmatprep.subr.bf16.mxu0 %v9735_v2 }
 0x95a   :  { %8642 = vmatpush3.bf16.msra.mxu1 %v9757_v4 }
 0x95b   :  { %8643 = vmatprep.subr.bf16.mxu1 %v9761_v6 }
 0x95c   :  { %7090 = vmatpush1.bf16.msra.mxu0 %v9733_v7 }
 0x95d   :  { %7091 = vmatprep.subr.bf16.mxu0 %v9738_v12  ;;  %v9783_v12 = vld [vmem:[#allocation19 + $0x2d0] ss:$12 sps:$4 sm:$0xff]  }
 0x95e   :  { %8644 = vmatpush3.bf16.msra.mxu1 %v9762_v13 }
 0x95f   :  { %8645 = vmatprep.subr.bf16.mxu1 %v9766_v14 }
 0x960   :  { %7092 = vmatpush1.bf16.msra.mxu0 %v9736_v44 }
 0x961   :  { %7093 = vmatprep.subr.bf16.mxu0 %v9741_v17 }
 0x962   :  { %8646 = vmatpush3.bf16.msra.mxu1 %v9767_v52  ;;  %v9790_v52 = vld [vmem:[#allocation19 + $0x2ec] ss:$12 sps:$4 sm:$0xff]  }
 0x963   :  { %8647 = vmatprep.subr.bf16.mxu1 %v9771_v8 }
 0x964   :  { %7094 = vmatpush1.bf16.msra.mxu0 %v9739_v10 }
 0x965   :  { %7095 = vmatprep.subr.bf16.mxu0 %v9744_v36 }
 0x966   :  { %8648 = vmatpush3.bf16.msra.mxu1 %v9772_v18 }
 0x967   :  { %8649 = vmatprep.subr.bf16.mxu1 %v9776_v51 }
 0x968   :  { %7096 = vmatpush1.bf16.msra.mxu0 %v9742_v19 }
 0x969   :  { %7097 = vmatprep.subr.bf16.mxu0 %v9747_v21 }
 0x96a   :  { %8650 = vmatpush3.bf16.msra.mxu1 %v9777_v20 }
 0x96b   :  { %8651 = vmatprep.subr.bf16.mxu1 %v9781_v11 }
 0x96c   :  { %7098 = vmatpush1.bf16.msra.mxu0 %v9745_v24  ;;  %v9788_v24 = vld [vmem:[#allocation19 + $0x2e8] ss:$12 sps:$4 sm:$0xff]  }
 0x96d   :  { %7099 = vmatprep.subr.bf16.mxu0 %v9750_v29 }
 0x96e   :  { %8652 = vmatpush3.bf16.msra.mxu1 %v9782_v28 }
 0x96f   :  { %8653 = vmatprep.subr.bf16.mxu1 %v9786_v30 }
 0x970   :  { %7100 = vmatpush1.bf16.msra.mxu0 %v9748_v32  ;;  %v9795_v32 = vld [vmem:[#allocation19 + $0x304] ss:$12 sps:$4 sm:$0xff]  }
 0x971   :  { %7101 = vmatprep.subr.bf16.mxu0 %v9755_v33 }
 0x972   :  { %8654 = vmatpush3.bf16.msra.mxu1 %v9787_v31 }
 0x973   :  { %8661 = vmatprep.subr.bf16.mxu1 %v9791_v38  ;;  %v9792_v38 = vld [vmem:[#allocation19 + $0x488] ss:$12 sps:$4 sm:$0xff]  }
 0x974   :  { %7102 = vmatpush1.bf16.msra.mxu0 %v9753_v27 }
 0x975   :  { %7103 = vmatprep.subr.bf16.mxu0 %v9760_v61  ;;  %v9796_v61 = vld [vmem:[#allocation19 + $0x560] ss:$12 sps:$4 sm:$0xff]  }
 0x978   :  { %7104 = vmatpush1.bf16.msra.mxu0 %v9758_v62  ;;  %v9793_v62 = vld [vmem:[#allocation19 + $0x300] ss:$12 sps:$4 sm:$0xff]  }
 0x979   :  { %7105 = vmatprep.subr.bf16.mxu0 %v9765_v40  ;;  %v9800_v40 = vld [vmem:[#allocation19 + $0x31c] ss:$12 sps:$4 sm:$0xff]  }
 0x97c   :  { %7106 = vmatpush1.bf16.msra.mxu0 %v9763_v35  ;;  %v9797_v35 = vld [vmem:[#allocation19 + $0x4a0] ss:$12 sps:$4 sm:$0xff]  }
 0x97d   :  { %7107 = vmatprep.subr.bf16.mxu0 %v9770_v41  ;;  %v9801_v41 = vld [vmem:[#allocation19 + $0x578] ss:$12 sps:$4 sm:$0xff]  }
 0x980   :  { %7108 = vmatpush1.bf16.msra.mxu0 %v9768_v37  ;;  %v9798_v37 = vld [vmem:[#allocation19 + $0x318] ss:$12 sps:$4 sm:$0xff]  }
 0x981   :  { %7109 = vmatprep.subr.bf16.mxu0 %v9775_v45  ;;  %v9805_v45 = vld [vmem:[#allocation19 + $0x334] ss:$12 sps:$4 sm:$0xff]  }
 0x984   :  { %7110 = vmatpush1.bf16.msra.mxu0 %v9773_v47  ;;  %v9806_v47 = vld [vmem:[#allocation19 + $0x590] ss:$12 sps:$4 sm:$0xff]  }
 0x985   :  { %7111 = vmatprep.subr.bf16.mxu0 %v9780_v39  ;;  %v9811_v39 = vld [vmem:[#allocation19 + $0x5a8] ss:$12 sps:$4 sm:$0xff]  }
 0x986   :  { %v4802_v59 = vpop.f32.mrb[24].mxu0 }
 0x987   :  { %v8819_v60 = vadd.f32 %v4802_v59, %v3072_v49  ;;  %v4888_v1 = vpop.f32.mrb[44].mxu1  ;;  %v4804_v53 = vpop.f32.mrb[25].mxu0  ;;  %v9821_v59 = vld [vmem:[#allocation19 + $0x5d8] ss:$12 sps:$4 sm:$0xff]  }
 0x988   :  { %v8823_v2 = vadd.f32 %v4888_v1, %v3080_v54  ;;  %v8820_v4 = vadd.f32 %v4804_v53, %v3076_v42  ;;  %v4890_v6 = vpop.f32.mrb[45].mxu1  ;;  %v4806_v7 = vpop.f32.mrb[26].mxu0  ;;  %7112 = vmatpush1.bf16.msra.mxu0 %v9778_v55  ;;  %v9813_v55 = vld [vmem:[#allocation19 + $0x360] ss:$12 sps:$4 sm:$0xff]   ;;  %v9822_v53 = vld [vmem:[#allocation19 + $0x518] ss:$12 sps:$4 sm:$0xff]  }
 0x989   :  { %v8824_v13 = vadd.f32 %v4890_v6, %v3084_v56  ;;  %v8821_v14 = vadd.f32 %v4806_v7, %v3072_v49  ;;  %v4892_v44 = vpop.f32.mrb[46].mxu1  ;;  %v4808_v17 = vpop.f32.mrb[27].mxu0  ;;  %7113 = vmatprep.subr.bf16.mxu0 %v9785_v15  ;;  %v5073_v36 = vmax.f32 %v8819_v60, 0.0  ;;  %v9815_v49 = vld [vmem:[#allocation19 + $0x364] ss:$12 sps:$4 sm:$0xff]  }
 0x98a   :  { %v8825_v8 = vadd.f32 %v4892_v44, %v3080_v54  ;;  %v8822_v50 = vadd.f32 %v4808_v17, %v3076_v42  ;;  %v4894_v10 = vpop.f32.mrb[47].mxu1  ;;  %v5075_v19 = vmax.f32 %v8823_v2, 0.0  ;;  %v5074_v21 = vmax.f32 %v8820_v4, 0.0  ;;  %v9812_v54 = vld [vmem:[#allocation19 + $0x4e8] ss:$12 sps:$4 sm:$0xff]  }
 0x98b   :  { %v5085_v18 = vmax.f32 %v8821_v14, 0.0  ;;  %v8826_v51 = vadd.f32 %v4894_v10, %v3084_v56  ;;  %v5076_v29 = vmax.f32 %v8824_v13, 0.0  ;;  %v9816_v42 = vld [vmem:[#allocation19 + $0x5c0] ss:$12 sps:$4 sm:$0xff]   ;;  %v9820_v56 = vld [vmem:[#allocation19 + $0x37c] ss:$12 sps:$4 sm:$0xff]  }
 0x98c   :  { %v5087_v20 = vmax.f32 %v8825_v8, 0.0  ;;  %v5086_v11 = vmax.f32 %v8822_v50, 0.0  ;;  %7114 = vmatpush1.bf16.msra.mxu0 %v9783_v12  ;;  %v9817_v15 = vld [vmem:[#allocation19 + $0x500] ss:$12 sps:$4 sm:$0xff]   ;;  %v9818_v60 = vld [vmem:[#allocation19 + $0x378] ss:$12 sps:$4 sm:$0xff]  }
 0x98d   :  { %v10990_v28 = vpack.c.bf16 %v5085_v18, %v5073_v36  ;;  %v5088_v30 = vmax.f32 %v8826_v51, 0.0  ;;  %7115 = vmatprep.subr.bf16.mxu0 %v9790_v52  ;;  %v9825_v1 = vld [vmem:[#allocation19 + $0x394] ss:$12 sps:$4 sm:$0xff]   ;;  %v9826_v2 = vld [vmem:[#allocation19 + $0x5f0] ss:$12 sps:$4 sm:$0xff]  }
 0x98e   :  { %v10992_v33 = vpack.c.bf16 %v5087_v20, %v5075_v19  ;;  %v5098_v31 = vpack.c.bf16 %v5086_v11, %v5074_v21  ;;  %v9823_v4 = vld [vmem:[#allocation19 + $0x390] ss:$12 sps:$4 sm:$0xff]   ;;  %v9830_v6 = vld [vmem:[#allocation19 + $0x3ac] ss:$12 sps:$4 sm:$0xff]   ;;  %v9855_v12 = vld [vmem:[#allocation19 + $0x6c8] ss:$12 sps:$4 sm:$0xff]  }
 0x98f   :  { %v10994_v27 = vpack.c.bf16 %v5088_v30, %v5076_v29  ;;  %v9827_v7 = vld [vmem:[#allocation19 + $0x530] ss:$12 sps:$4 sm:$0xff]   ;;  %v9828_v13 = vld [vmem:[#allocation19 + $0x3a8] ss:$12 sps:$4 sm:$0xff]   ;;  %v9860_v17 = vld [vmem:[#allocation19 + $0x6e0] ss:$12 sps:$4 sm:$0xff]  }
 0x990   :  { %7116 = vmatpush1.bf16.msra.mxu0 %v9788_v24  ;;  %7414 = vmatprep.mubr.bf16.mxu1 %v5098_v31  ;;  %v9833_v14 = vld [vmem:[#allocation19 + $0x3c4] ss:$12 sps:$4 sm:$0xff]   ;;  %v9856_v44 = vld [vmem:[#allocation19 + $0x608] ss:$12 sps:$4 sm:$0xff]   ;;  %v9831_v52 = vld [vmem:[#allocation19 + $0x3c0] ss:$12 sps:$4 sm:$0xff]  }
 0x991   :  { %7415 = vmatmul.mubr.bf16.vlgmr.msra.gmra.mrb[60].mxu1 %v10990_v28  ;;  %7128 = vmatprep.subr.bf16.mxu0 %v9795_v32  ;;  %v9836_v8 = vld [vmem:[#allocation19 + $0x3dc] ss:$12 sps:$4 sm:$0xff]   ;;  %v9861_v50 = vld [vmem:[#allocation19 + $0x620] ss:$12 sps:$4 sm:$0xff]   ;;  %v9865_v10 = vld [vmem:[#allocation19 + $0x6f8] ss:$12 sps:$4 sm:$0xff]  }
 0x992   :  { %8662 = vmatpush3.bf16.msra.mxu1 %v9792_v38  ;;  %7455 = vmatprep.mubr.bf16.mxu1 %v10994_v27  ;;  %v9834_v36 = vld [vmem:[#allocation19 + $0x3d8] ss:$12 sps:$4 sm:$0xff]   ;;  %v9839_v18 = vld [vmem:[#allocation19 + $0x3f4] ss:$12 sps:$4 sm:$0xff]   ;;  %v9870_v19 = vld [vmem:[#allocation19 + $0x710] ss:$12 sps:$4 sm:$0xff]  }
 0x993   :  { %7118 = vmatmul.mubr.bf16.vlgmr.msra.gmra.mrb[32].mxu0 %v10973_v0  ;;  %8663 = vmatprep.subr.bf16.mxu1 %v9796_v61  ;;  %v9808_v0 = vld [vmem:[#allocation19 + $0x348] ss:$12 sps:$4 sm:$0xff]   ;;  %v9866_v51 = vld [vmem:[#allocation19 + $0x638] ss:$12 sps:$4 sm:$0xff]   ;;  %v9837_v21 = vld [vmem:[#allocation19 + $0x3f0] ss:$12 sps:$4 sm:$0xff]  }
 0x994   :  { %7129 = vmatpush1.bf16.msra.mxu0 %v9793_v62  ;;  %7160 = vmatprep.mubr.bf16.mxu0 %v5098_v31  ;;  %v9842_v20 = vld [vmem:[#allocation19 + $0x40c] ss:$12 sps:$4 sm:$0xff]   ;;  %v9871_v11 = vld [vmem:[#allocation19 + $0x650] ss:$12 sps:$4 sm:$0xff]   ;;  %v9875_v24 = vld [vmem:[#allocation19 + $0x728] ss:$12 sps:$4 sm:$0xff]  }
 0x995   :  { %7130 = vmatprep.subr.bf16.mxu0 %v9800_v40  ;;  %v9840_v29 = vld [vmem:[#allocation19 + $0x408] ss:$12 sps:$4 sm:$0xff]   ;;  %v9845_v30 = vld [vmem:[#allocation19 + $0x424] ss:$12 sps:$4 sm:$0xff]   ;;  %v9880_v31 = vld [vmem:[#allocation19 + $0x740] ss:$12 sps:$4 sm:$0xff]  }
 0x996   :  { %8664 = vmatpush3.bf16.msra.mxu1 %v9797_v35  ;;  %v9876_v32 = vld [vmem:[#allocation19 + $0x668] ss:$12 sps:$4 sm:$0xff]   ;;  %v9843_v38 = vld [vmem:[#allocation19 + $0x420] ss:$12 sps:$4 sm:$0xff]   ;;  %v9885_v40 = vld [vmem:[#allocation19 + $0x758] ss:$12 sps:$4 sm:$0xff]  }
 0x997   :  { %8665 = vmatprep.subr.bf16.mxu1 %v9801_v41  ;;  %v9848_v61 = vld [vmem:[#allocation19 + $0x43c] ss:$12 sps:$4 sm:$0xff]   ;;  %v9881_v62 = vld [vmem:[#allocation19 + $0x680] ss:$12 sps:$4 sm:$0xff]   ;;  %v9846_v35 = vld [vmem:[#allocation19 + $0x438] ss:$12 sps:$4 sm:$0xff]  }
 0x998   :  { %7131 = vmatpush1.bf16.msra.mxu0 %v9798_v37  ;;  %v9851_v41 = vld [vmem:[#allocation19 + $0x454] ss:$12 sps:$4 sm:$0xff]   ;;  %v9886_v37 = vld [vmem:[#allocation19 + $0x698] ss:$12 sps:$4 sm:$0xff]  }
 0x999   :  { %7132 = vmatprep.subr.bf16.mxu0 %v9805_v45  ;;  %v9890_v45 = vld [vmem:[#allocation19 + $0x770] ss:$12 sps:$4 sm:$0xff]  }
 0x99a   :  { %8666 = vmatpush3.bf16.msra.mxu1 %v9802_v46  ;;  %v9849_v46 = vld [vmem:[#allocation19 + $0x450] ss:$12 sps:$4 sm:$0xff]  }
 0x99b   :  { %8667 = vmatprep.subr.bf16.mxu1 %v9806_v47  ;;  %v9854_v47 = vld [vmem:[#allocation19 + $0x46c] ss:$12 sps:$4 sm:$0xff]  }
 0x99c   :  { %7133 = vmatpush1.bf16.msra.mxu0 %v9803_v34  ;;  %v9891_v34 = vld [vmem:[#allocation19 + $0x6b0] ss:$12 sps:$4 sm:$0xff]  }
 0x99d   :  { %7134 = vmatprep.subr.bf16.mxu0 %v9810_v48  ;;  %v9895_v48 = vld [vmem:[#allocation19 + $0x848] ss:$12 sps:$4 sm:$0xff]  }
 0x99e   :  { %8668 = vmatpush3.bf16.msra.mxu1 %v9807_v57  ;;  %v9852_v57 = vld [vmem:[#allocation19 + $0x468] ss:$12 sps:$4 sm:$0xff]  }
 0x99f   :  { %8669 = vmatprep.subr.bf16.mxu1 %v9811_v39  ;;  %v9859_v39 = vld [vmem:[#allocation19 + $0x484] ss:$12 sps:$4 sm:$0xff]  }
 0x9a0   :  { %7135 = vmatpush1.bf16.msra.mxu0 %v9808_v0  ;;  %v9857_v0 = vld [vmem:[#allocation19 + $0x480] ss:$12 sps:$4 sm:$0xff]  }
 0x9a1   :  { %7136 = vmatprep.subr.bf16.mxu0 %v9815_v49  ;;  %v9864_v49 = vld [vmem:[#allocation19 + $0x49c] ss:$12 sps:$4 sm:$0xff]  }
 0x9a2   :  { %8670 = vmatpush3.bf16.msra.mxu1 %v9812_v54  ;;  %v9862_v54 = vld [vmem:[#allocation19 + $0x498] ss:$12 sps:$4 sm:$0xff]  }
 0x9a3   :  { %8671 = vmatprep.subr.bf16.mxu1 %v9816_v42  ;;  %v9869_v42 = vld [vmem:[#allocation19 + $0x4b4] ss:$12 sps:$4 sm:$0xff]  }
 0x9a4   :  { %7137 = vmatpush1.bf16.msra.mxu0 %v9813_v55  ;;  %v9867_v55 = vld [vmem:[#allocation19 + $0x4b0] ss:$12 sps:$4 sm:$0xff]  }
 0x9a5   :  { %7138 = vmatprep.subr.bf16.mxu0 %v9820_v56  ;;  %v9874_v56 = vld [vmem:[#allocation19 + $0x4cc] ss:$12 sps:$4 sm:$0xff]  }
 0x9a6   :  { %8672 = vmatpush3.bf16.msra.mxu1 %v9817_v15  ;;  %v9872_v15 = vld [vmem:[#allocation19 + $0x4c8] ss:$12 sps:$4 sm:$0xff]  }
 0x9a7   :  { %8673 = vmatprep.subr.bf16.mxu1 %v9821_v59  ;;  %v9879_v59 = vld [vmem:[#allocation19 + $0x4e4] ss:$12 sps:$4 sm:$0xff]  }
 0x9a8   :  { %7139 = vmatpush1.bf16.msra.mxu0 %v9818_v60  ;;  %v9877_v60 = vld [vmem:[#allocation19 + $0x4e0] ss:$12 sps:$4 sm:$0xff]  }
 0x9a9   :  { %7140 = vmatprep.subr.bf16.mxu0 %v9825_v1  ;;  %v3050_v1 = vld [vmem:[#allocation17 + $0x8] sm:$0xf] }
 0x9aa   :  { %8674 = vmatpush3.bf16.msra.mxu1 %v9822_v53  ;;  %v9884_v53 = vld [vmem:[#allocation19 + $0x4fc] ss:$12 sps:$4 sm:$0xff]  }
 0x9ab   :  { %8675 = vmatprep.subr.bf16.mxu1 %v9826_v2  ;;  %v3092_v2 = vrot.slane %v3050_v1, %v10722_v25 }
 0x9ac   :  { %7141 = vmatpush1.bf16.msra.mxu0 %v9823_v4  ;;  %v9882_v4 = vld [vmem:[#allocation19 + $0x4f8] ss:$12 sps:$4 sm:$0xff]  }
 0x9ad   :  { %7142 = vmatprep.subr.bf16.mxu0 %v9830_v6  ;;  %v3100_v6 = vrot.slane %v3050_v1, %v3067_v22 }
 0x9ae   :  { %8676 = vmatpush3.bf16.msra.mxu1 %v9827_v7  ;;  %v9889_v7 = vld [vmem:[#allocation19 + $0x514] ss:$12 sps:$4 sm:$0xff]  }
 0x9af   :  { %8683 = vmatprep.subr.bf16.mxu1 %v9855_v12 }
 0x9b0   :  { %7143 = vmatpush1.bf16.msra.mxu0 %v9828_v13 }
 0x9b1   :  { %7456 = vmatmul.mubr.bf16.vlgmr.msra.gmra.mrb[64].mxu1 %v10992_v33  ;;  %7144 = vmatprep.subr.bf16.mxu0 %v9833_v14 }
 0x9b2   :  { %8684 = vmatpush3.bf16.msra.mxu1 %v9856_v44 }
 0x9b3   :  { %8685 = vmatprep.subr.bf16.mxu1 %v9860_v17 }
 0x9b4   :  { %7145 = vmatpush1.bf16.msra.mxu0 %v9831_v52 }
 0x9b5   :  { %7146 = vmatprep.subr.bf16.mxu0 %v9836_v8 }
 0x9b6   :  { %8686 = vmatpush3.bf16.msra.mxu1 %v9861_v50 }
 0x9b7   :  { %8687 = vmatprep.subr.bf16.mxu1 %v9865_v10  ;;  %v9887_v10 = vld [vmem:[#allocation19 + $0x510] ss:$12 sps:$4 sm:$0xff]  }
 0x9b8   :  { %7147 = vmatpush1.bf16.msra.mxu0 %v9834_v36 }
 0x9b9   :  { %7148 = vmatprep.subr.bf16.mxu0 %v9839_v18 }
 0x9ba   :  { %8688 = vmatpush3.bf16.msra.mxu1 %v9866_v51 }
 0x9bb   :  { %8689 = vmatprep.subr.bf16.mxu1 %v9870_v19 }
 0x9bc   :  { %7149 = vmatpush1.bf16.msra.mxu0 %v9837_v21  ;;  %v9894_v21 = vld [vmem:[#allocation19 + $0x52c] ss:$12 sps:$4 sm:$0xff]  }
 0x9bd   :  { %7150 = vmatprep.subr.bf16.mxu0 %v9842_v20 }
 0x9be   :  { %8690 = vmatpush3.bf16.msra.mxu1 %v9871_v11 }
 0x9bf   :  { %8691 = vmatprep.subr.bf16.mxu1 %v9875_v24 }
 0x9c0   :  { %7151 = vmatpush1.bf16.msra.mxu0 %v9840_v29 }
 0x9c1   :  { %7152 = vmatprep.subr.bf16.mxu0 %v9845_v30 }
 0x9c2   :  { %8692 = vmatpush3.bf16.msra.mxu1 %v9876_v32 }
 0x9c3   :  { %8693 = vmatprep.subr.bf16.mxu1 %v9880_v31 }
 0x9c4   :  { %7153 = vmatpush1.bf16.msra.mxu0 %v9843_v38 }
 0x9c5   :  { %7154 = vmatprep.subr.bf16.mxu0 %v9848_v61  ;;  %v9892_v61 = vld [vmem:[#allocation19 + $0x528] ss:$12 sps:$4 sm:$0xff]  }
 0x9c6   :  { %8694 = vmatpush3.bf16.msra.mxu1 %v9881_v62 }
 0x9c7   :  { %8695 = vmatprep.subr.bf16.mxu1 %v9885_v40 }
 0x9c8   :  { %7155 = vmatpush1.bf16.msra.mxu0 %v9846_v35 }
 0x9c9   :  { %7156 = vmatprep.subr.bf16.mxu0 %v9851_v41  ;;  %v9899_v41 = vld [vmem:[#allocation19 + $0x544] ss:$12 sps:$4 sm:$0xff]  }
 0x9ca   :  { %8696 = vmatpush3.bf16.msra.mxu1 %v9886_v37 }
 0x9cb   :  { %8697 = vmatprep.subr.bf16.mxu1 %v9890_v45 }
 0x9cc   :  { %7157 = vmatpush1.bf16.msra.mxu0 %v9849_v46  ;;  %v9896_v46 = vld [vmem:[#allocation19 + $0x788] ss:$12 sps:$4 sm:$0xff]  }
 0x9cd   :  { %7158 = vmatprep.subr.bf16.mxu0 %v9854_v47 }
 0x9ce   :  { %8698 = vmatpush3.bf16.msra.mxu1 %v9891_v34  ;;  %v9900_v34 = vld [vmem:[#allocation19 + $0x860] ss:$12 sps:$4 sm:$0xff]  }
 0x9cf   :  { %8705 = vmatprep.subr.bf16.mxu1 %v9895_v48  ;;  %v9897_v48 = vld [vmem:[#allocation19 + $0x540] ss:$12 sps:$4 sm:$0xff]  }
 0x9d0   :  { %7159 = vmatpush1.bf16.msra.mxu0 %v9852_v57  ;;  %v9904_v57 = vld [vmem:[#allocation19 + $0x55c] ss:$12 sps:$4 sm:$0xff]  }
 0x9d1   :  { %7171 = vmatprep.subr.bf16.mxu0 %v9859_v39  ;;  %v9901_v39 = vld [vmem:[#allocation19 + $0x7a0] ss:$12 sps:$4 sm:$0xff]  }
 0x9d3   :  { %7161 = vmatmul.mubr.bf16.vlgmr.msra.gmra.mrb[32].mxu0 %v10990_v28  ;;  %v3088_v28 = vrot.slane %v3050_v1, %v10725_v26 }
 0x9d4   :  { %7172 = vmatpush1.bf16.msra.mxu0 %v9857_v0  ;;  %7203 = vmatprep.mubr.bf16.mxu0 %v10994_v27  ;;  %v3096_v27 = vrot.slane %v3050_v1, %v10761_v3  ;;  %v9905_v0 = vld [vmem:[#allocation19 + $0x878] ss:$12 sps:$4 sm:$0xff]   ;;  %v9912_v1 = vld [vmem:[#allocation19 + $0x588] ss:$12 sps:$4 sm:$0xff]  }
 0x9d5   :  { %7173 = vmatprep.subr.bf16.mxu0 %v9864_v49  ;;  %v9902_v49 = vld [vmem:[#allocation19 + $0x558] ss:$12 sps:$4 sm:$0xff]  }
 0x9d8   :  { %7174 = vmatpush1.bf16.msra.mxu0 %v9862_v54  ;;  %v9909_v54 = vld [vmem:[#allocation19 + $0x574] ss:$12 sps:$4 sm:$0xff]  }
 0x9d9   :  { %7175 = vmatprep.subr.bf16.mxu0 %v9869_v42  ;;  %v9906_v42 = vld [vmem:[#allocation19 + $0x7b8] ss:$12 sps:$4 sm:$0xff]  }
 0x9dc   :  { %7176 = vmatpush1.bf16.msra.mxu0 %v9867_v55  ;;  %v9910_v55 = vld [vmem:[#allocation19 + $0x890] ss:$12 sps:$4 sm:$0xff]  }
 0x9dd   :  { %7177 = vmatprep.subr.bf16.mxu0 %v9874_v56  ;;  %v9907_v56 = vld [vmem:[#allocation19 + $0x570] ss:$12 sps:$4 sm:$0xff]  }
 0x9e0   :  { %7178 = vmatpush1.bf16.msra.mxu0 %v9872_v15  ;;  %v9914_v15 = vld [vmem:[#allocation19 + $0x58c] ss:$12 sps:$4 sm:$0xff]  }
 0x9e1   :  { %7179 = vmatprep.subr.bf16.mxu0 %v9879_v59  ;;  %v9911_v59 = vld [vmem:[#allocation19 + $0x7d0] ss:$12 sps:$4 sm:$0xff]  }
 0x9e4   :  { %7180 = vmatpush1.bf16.msra.mxu0 %v9877_v60  ;;  %v9915_v60 = vld [vmem:[#allocation19 + $0x8a8] ss:$12 sps:$4 sm:$0xff]  }
 0x9e5   :  { %7181 = vmatprep.subr.bf16.mxu0 %v9884_v53  ;;  %v9919_v53 = vld [vmem:[#allocation19 + $0x5a4] ss:$12 sps:$4 sm:$0xff]  }
 0x9e6   :  { %v4974_v12 = vpop.f32.mrb[28].mxu0 }
 0x9e7   :  { %v8827_v13 = vadd.f32 %v4974_v12, %v3088_v28  ;;  %v5060_v14 = vpop.f32.mrb[48].mxu1  ;;  %v4976_v44 = vpop.f32.mrb[29].mxu0  ;;  %v9922_v12 = vld [vmem:[#allocation19 + $0x5b8] ss:$12 sps:$4 sm:$0xff]  }
 0x9e8   :  { %v8831_v17 = vadd.f32 %v5060_v14, %v3096_v27  ;;  %v8828_v52 = vadd.f32 %v4976_v44, %v3092_v2  ;;  %v5062_v8 = vpop.f32.mrb[49].mxu1  ;;  %v4978_v50 = vpop.f32.mrb[30].mxu0  ;;  %7182 = vmatpush1.bf16.msra.mxu0 %v9882_v4  ;;  %v9924_v4 = vld [vmem:[#allocation19 + $0x5bc] ss:$12 sps:$4 sm:$0xff]   ;;  %v9926_v14 = vld [vmem:[#allocation19 + $0x818] ss:$12 sps:$4 sm:$0xff]  }
 0x9e9   :  { %v8832_v36 = vadd.f32 %v5062_v8, %v3100_v6  ;;  %v8829_v18 = vadd.f32 %v4978_v50, %v3088_v28  ;;  %v5064_v51 = vpop.f32.mrb[50].mxu1  ;;  %v4980_v19 = vpop.f32.mrb[31].mxu0  ;;  %7183 = vmatprep.subr.bf16.mxu0 %v9889_v7  ;;  %v5077_v11 = vmax.f32 %v8827_v13, 0.0  ;;  %v9916_v28 = vld [vmem:[#allocation19 + $0x7e8] ss:$12 sps:$4 sm:$0xff]  }
 0x9ea   :  { %v8833_v23 = vadd.f32 %v5064_v51, %v3096_v27  ;;  %v8830_v22 = vadd.f32 %v4980_v19, %v3092_v2  ;;  %v5066_v20 = vpop.f32.mrb[51].mxu1  ;;  %v5079_v30 = vmax.f32 %v8831_v17, 0.0  ;;  %v5078_v32 = vmax.f32 %v8828_v52, 0.0  ;;  %v9920_v27 = vld [vmem:[#allocation19 + $0x8c0] ss:$12 sps:$4 sm:$0xff]  }
 0x9eb   :  { %v5089_v24 = vmax.f32 %v8829_v18, 0.0  ;;  %v8834_v29 = vadd.f32 %v5066_v20, %v3100_v6  ;;  %v5080_v62 = vmax.f32 %v8832_v36, 0.0  ;;  %v9917_v2 = vld [vmem:[#allocation19 + $0x5a0] ss:$12 sps:$4 sm:$0xff]   ;;  %v9925_v7 = vld [vmem:[#allocation19 + $0x8d8] ss:$12 sps:$4 sm:$0xff]  }
 0x9ec   :  { %v5091_v31 = vmax.f32 %v8833_v23, 0.0  ;;  %v5090_v38 = vmax.f32 %v8830_v22, 0.0  ;;  %7184 = vmatpush1.bf16.msra.mxu0 %v9887_v10  ;;  %v9921_v6 = vld [vmem:[#allocation19 + $0x800] ss:$12 sps:$4 sm:$0xff]   ;;  %v9930_v17 = vld [vmem:[#allocation19 + $0x8f0] ss:$12 sps:$4 sm:$0xff]  }
 0x9ed   :  { %v11007_v40 = vpack.c.bf16 %v5089_v24, %v5077_v11  ;;  %v5092_v35 = vmax.f32 %v8834_v29, 0.0  ;;  %7185 = vmatprep.subr.bf16.mxu0 %v9894_v21  ;;  %v9929_v13 = vld [vmem:[#allocation19 + $0x5d4] ss:$12 sps:$4 sm:$0xff]   ;;  %v9927_v8 = vld [vmem:[#allocation19 + $0x5d0] ss:$12 sps:$4 sm:$0xff]  }
 0x9ee   :  { %v11009_v37 = vpack.c.bf16 %v5091_v31, %v5079_v30  ;;  %v11011_v45 = vpack.c.bf16 %v5090_v38, %v5078_v32  ;;  %v9934_v36 = vld [vmem:[#allocation19 + $0x5ec] ss:$12 sps:$4 sm:$0xff]   ;;  %v9931_v51 = vld [vmem:[#allocation19 + $0x830] ss:$12 sps:$4 sm:$0xff]   ;;  %v9932_v21 = vld [vmem:[#allocation19 + $0x5e8] ss:$12 sps:$4 sm:$0xff]  }
 0x9ef   :  { %v11013_v47 = vpack.c.bf16 %v5092_v35, %v5080_v62  ;;  %v9937_v23 = vld [vmem:[#allocation19 + $0x604] ss:$12 sps:$4 sm:$0xff]   ;;  %v9935_v22 = vld [vmem:[#allocation19 + $0x600] ss:$12 sps:$4 sm:$0xff]   ;;  %v9940_v20 = vld [vmem:[#allocation19 + $0x61c] ss:$12 sps:$4 sm:$0xff]  }
 0x9f0   :  { %7186 = vmatpush1.bf16.msra.mxu0 %v9892_v61  ;;  %7496 = vmatprep.mubr.bf16.mxu1 %v11011_v45  ;;  %v9938_v11 = vld [vmem:[#allocation19 + $0x618] ss:$12 sps:$4 sm:$0xff]   ;;  %v9943_v24 = vld [vmem:[#allocation19 + $0x634] ss:$12 sps:$4 sm:$0xff]   ;;  %v9941_v29 = vld [vmem:[#allocation19 + $0x630] ss:$12 sps:$4 sm:$0xff]  }
 0x9f1   :  { %7497 = vmatmul.mubr.bf16.vlgmr.msra.gmra.mrb[68].mxu1 %v11007_v40  ;;  %7187 = vmatprep.subr.bf16.mxu0 %v9899_v41  ;;  %v9946_v30 = vld [vmem:[#allocation19 + $0x64c] ss:$12 sps:$4 sm:$0xff]   ;;  %v9944_v32 = vld [vmem:[#allocation19 + $0x648] ss:$12 sps:$4 sm:$0xff]   ;;  %v9949_v31 = vld [vmem:[#allocation19 + $0x664] ss:$12 sps:$4 sm:$0xff]  }
 0x9f2   :  { %8706 = vmatpush3.bf16.msra.mxu1 %v9896_v46  ;;  %7537 = vmatprep.mubr.bf16.mxu1 %v11013_v47  ;;  %v9947_v38 = vld [vmem:[#allocation19 + $0x660] ss:$12 sps:$4 sm:$0xff]   ;;  %v9952_v61 = vld [vmem:[#allocation19 + $0x67c] ss:$12 sps:$4 sm:$0xff]  }
 0x9f3   :  { %8707 = vmatprep.subr.bf16.mxu1 %v9900_v34  ;;  %v11021_v62 = vld [vmem:[#allocation20] sm:$0x7]  ;;  %v9953_v34 = vld [vmem:[#allocation19 + $0x690] ss:$12 sps:$4 sm:$0xff]  }
 0x9f4   :  { %7188 = vmatpush1.bf16.msra.mxu0 %v9897_v48  ;;  %v5502_v35 = vrot.slane %v11021_v62, %v10761_v3  ;;  %v9955_v41 = vld [vmem:[#allocation19 + $0x694] ss:$12 sps:$4 sm:$0xff]  }
 0x9f5   :  { %7189 = vmatprep.subr.bf16.mxu0 %v9904_v57 }
 0x9f6   :  { %8708 = vmatpush3.bf16.msra.mxu1 %v9901_v39 }
 0x9f7   :  { %8709 = vmatprep.subr.bf16.mxu1 %v9905_v0  ;;  %v9958_v0 = vld [vmem:[#allocation19 + $0x6ac] ss:$12 sps:$4 sm:$0xff]  }
 0x9f8   :  { %7190 = vmatpush1.bf16.msra.mxu0 %v9902_v49 }
 0x9f9   :  { %7191 = vmatprep.subr.bf16.mxu0 %v9909_v54 }
 0x9fa   :  { %8710 = vmatpush3.bf16.msra.mxu1 %v9906_v42 }
 0x9fb   :  { %8711 = vmatprep.subr.bf16.mxu1 %v9910_v55 }
 0x9fc   :  { %7192 = vmatpush1.bf16.msra.mxu0 %v9907_v56  ;;  %v9956_v56 = vld [vmem:[#allocation19 + $0x6a8] ss:$12 sps:$4 sm:$0xff]  }
 0x9fd   :  { %7193 = vmatprep.subr.bf16.mxu0 %v9914_v15 }
 0x9fe   :  { %8712 = vmatpush3.bf16.msra.mxu1 %v9911_v59  ;;  %v9961_v59 = vld [vmem:[#allocation19 + $0x6c4] ss:$12 sps:$4 sm:$0xff]  }
 0x9ff   :  { %8713 = vmatprep.subr.bf16.mxu1 %v9915_v60  ;;  %v9959_v60 = vld [vmem:[#allocation19 + $0x6c0] ss:$12 sps:$4 sm:$0xff]  }
 0xa00   :  { %7194 = vmatpush1.bf16.msra.mxu0 %v9912_v1  ;;  %v9964_v1 = vld [vmem:[#allocation19 + $0x6dc] ss:$12 sps:$4 sm:$0xff]  }
 0xa01   :  { %7195 = vmatprep.subr.bf16.mxu0 %v9919_v53  ;;  %v9962_v53 = vld [vmem:[#allocation19 + $0x6d8] ss:$12 sps:$4 sm:$0xff]  }
 0xa02   :  { %8714 = vmatpush3.bf16.msra.mxu1 %v9916_v28  ;;  %v9967_v28 = vld [vmem:[#allocation19 + $0x6f4] ss:$12 sps:$4 sm:$0xff]  }
 0xa03   :  { %8715 = vmatprep.subr.bf16.mxu1 %v9920_v27  ;;  %v9965_v27 = vld [vmem:[#allocation19 + $0x6f0] ss:$12 sps:$4 sm:$0xff]  }
 0xa04   :  { %7196 = vmatpush1.bf16.msra.mxu0 %v9917_v2  ;;  %v9970_v2 = vld [vmem:[#allocation19 + $0x70c] ss:$12 sps:$4 sm:$0xff]  }
 0xa05   :  { %7197 = vmatprep.subr.bf16.mxu0 %v9924_v4  ;;  %v9968_v4 = vld [vmem:[#allocation19 + $0x708] ss:$12 sps:$4 sm:$0xff]  }
 0xa06   :  { %8716 = vmatpush3.bf16.msra.mxu1 %v9921_v6  ;;  %v9973_v6 = vld [vmem:[#allocation19 + $0x724] ss:$12 sps:$4 sm:$0xff]  }
 0xa07   :  { %v8611_v44 = vpop.f32.mrb[52].mxu1  ;;  %8717 = vmatprep.subr.bf16.mxu1 %v9925_v7  ;;  %v9971_v7 = vld [vmem:[#allocation19 + $0x720] ss:$12 sps:$4 sm:$0xff]  }
 0xa08   :  { %v8612_v52 = vpop.f32.mrb[53].mxu1  ;;  %7198 = vmatpush1.bf16.msra.mxu0 %v9922_v12  ;;  %v9976_v12 = vld [vmem:[#allocation19 + $0x73c] ss:$12 sps:$4 sm:$0xff]  }
 0xa09   :  { %v8613_v50 = vadd.f32 %v8612_v52, %v8611_v44  ;;  %v8614_v10 = vpop.f32.mrb[54].mxu1  ;;  %7199 = vmatprep.subr.bf16.mxu0 %v9929_v13  ;;  %v9974_v13 = vld [vmem:[#allocation19 + $0x738] ss:$12 sps:$4 sm:$0xff]   ;;  %v9977_v44 = vld [vmem:[#allocation19 + $0x750] ss:$12 sps:$4 sm:$0xff]  }
 0xa0a   :  { %v8615_v18 = vpop.f32.mrb[55].mxu1  ;;  %8718 = vmatpush3.bf16.msra.mxu1 %v9926_v14  ;;  %v9979_v14 = vld [vmem:[#allocation19 + $0x754] ss:$12 sps:$4 sm:$0xff]  }
 0xa0b   :  { %v8616_v19 = vadd.f32 %v8615_v18, %v8614_v10  ;;  %8719 = vmatprep.subr.bf16.mxu1 %v9930_v17  ;;  %v7335_v48 = vadd.f32 %v8613_v50, %v5502_v35  ;;  %v9982_v17 = vld [vmem:[#allocation19 + $0x76c] ss:$12 sps:$4 sm:$0xff]   ;;  %v9980_v52 = vld [vmem:[#allocation19 + $0x768] ss:$12 sps:$4 sm:$0xff]  }
 0xa0c   :  { %7200 = vmatpush1.bf16.msra.mxu0 %v9927_v8  ;;  %v9985_v8 = vld [vmem:[#allocation19 + $0x784] ss:$12 sps:$4 sm:$0xff]   ;;  %v9983_v50 = vld [vmem:[#allocation19 + $0x780] ss:$12 sps:$4 sm:$0xff]   ;;  %v9988_v10 = vld [vmem:[#allocation19 + $0x79c] ss:$12 sps:$4 sm:$0xff]  }
 0xa0d   :  { %7201 = vmatprep.subr.bf16.mxu0 %v9934_v36  ;;  %v7338_v54 = vadd.f32 %v8616_v19, %v5502_v35  ;;  %v9986_v36 = vld [vmem:[#allocation19 + $0x798] ss:$12 sps:$4 sm:$0xff]   ;;  %v9991_v18 = vld [vmem:[#allocation19 + $0x7b4] ss:$12 sps:$4 sm:$0xff]  }
 0xa0e   :  { %8720 = vmatpush3.bf16.msra.mxu1 %v9931_v51  ;;  %v9989_v51 = vld [vmem:[#allocation19 + $0x7b0] ss:$12 sps:$4 sm:$0xff]   ;;  %v9994_v19 = vld [vmem:[#allocation19 + $0x7cc] ss:$12 sps:$4 sm:$0xff]  }
 0xa10   :  { %7202 = vmatpush1.bf16.msra.mxu0 %v9932_v21  ;;  %v9992_v21 = vld [vmem:[#allocation19 + $0x7c8] ss:$12 sps:$4 sm:$0xff]  }
 0xa11   :  { %7538 = vmatmul.mubr.bf16.vlgmr.msra.gmra.mrb[72].mxu1 %v11009_v37  ;;  %7214 = vmatprep.subr.bf16.mxu0 %v9937_v23  ;;  %v9997_v23 = vld [vmem:[#allocation19 + $0x7e4] ss:$12 sps:$4 sm:$0xff]  }
 0xa13   :  { %7204 = vmatmul.mubr.bf16.vlgmr.msra.gmra.mrb[32].mxu0 %v10992_v33  ;;  %v9950_v33 = vld [vmem:[#allocation19 + $0x678] ss:$12 sps:$4 sm:$0xff]  }
 0xa14   :  { %7215 = vmatpush1.bf16.msra.mxu0 %v9935_v22  ;;  %7246 = vmatprep.mubr.bf16.mxu0 %v11011_v45  ;;  %v9995_v22 = vld [vmem:[#allocation19 + $0x7e0] ss:$12 sps:$4 sm:$0xff]  }
 0xa15   :  { %7216 = vmatprep.subr.bf16.mxu0 %v9940_v20  ;;  %v10000_v20 = vld [vmem:[#allocation19 + $0x7fc] ss:$12 sps:$4 sm:$0xff]  }
 0xa18   :  { %7217 = vmatpush1.bf16.msra.mxu0 %v9938_v11  ;;  %v9998_v11 = vld [vmem:[#allocation19 + $0x7f8] ss:$12 sps:$4 sm:$0xff]  }
 0xa19   :  { %7218 = vmatprep.subr.bf16.mxu0 %v9943_v24 }
 0xa1c   :  { %7219 = vmatpush1.bf16.msra.mxu0 %v9941_v29 }
 0xa1d   :  { %7220 = vmatprep.subr.bf16.mxu0 %v9946_v30 }
 0xa20   :  { %7221 = vmatpush1.bf16.msra.mxu0 %v9944_v32 }
 0xa21   :  { %7222 = vmatprep.subr.bf16.mxu0 %v9949_v31 }
 0xa24   :  { %7223 = vmatpush1.bf16.msra.mxu0 %v9947_v38 }
 0xa25   :  { %7224 = vmatprep.subr.bf16.mxu0 %v9952_v61  ;;  %v10001_v61 = vld [vmem:[#allocation19 + $0x810] ss:$12 sps:$4 sm:$0xff]  }
 0xa27   :  { %v8633_v45 = vpop.f32.mrb[56].mxu1 }
 0xa28   :  { %v8634_v46 = vpop.f32.mrb[57].mxu1  ;;  %7225 = vmatpush1.bf16.msra.mxu0 %v9950_v33  ;;  %v10006_v33 = vld [vmem:[#allocation19 + $0x82c] ss:$12 sps:$4 sm:$0xff]  }
 0xa29   :  { %v8635_v57 = vadd.f32 %v8634_v46, %v8633_v45  ;;  %v8636_v39 = vpop.f32.mrb[58].mxu1  ;;  %7226 = vmatprep.subr.bf16.mxu0 %v9955_v41  ;;  %v10004_v41 = vld [vmem:[#allocation19 + $0x828] ss:$12 sps:$4 sm:$0xff]   ;;  %v10009_v45 = vld [vmem:[#allocation19 + $0x844] ss:$12 sps:$4 sm:$0xff]  }
 0xa2a   :  { %v8637_v49 = vpop.f32.mrb[59].mxu1  ;;  %v10007_v46 = vld [vmem:[#allocation19 + $0x840] ss:$12 sps:$4 sm:$0xff]  }
 0xa2b   :  { %v11025_v42 = vadd.f32 %v8635_v57, %v7335_v48  ;;  %v8638_v55 = vadd.f32 %v8637_v49, %v8636_v39  ;;  %v10010_v48 = vld [vmem:[#allocation19 + $0x858] ss:$12 sps:$4 sm:$0xff]   ;;  %v10015_v57 = vld [vmem:[#allocation19 + $0x874] ss:$12 sps:$4 sm:$0xff]   ;;  %v10013_v39 = vld [vmem:[#allocation19 + $0x870] ss:$12 sps:$4 sm:$0xff]  }
 0xa2c   :  { %7227 = vmatpush1.bf16.msra.mxu0 %v9953_v34  ;;  %v10012_v34 = vld [vmem:[#allocation19 + $0x85c] ss:$12 sps:$4 sm:$0xff]  }
 0xa2d   :  { %v11027_v15 = vadd.f32 %v8638_v55, %v7338_v54  ;;  %7228 = vmatprep.subr.bf16.mxu0 %v9958_v0  ;;  %v10018_v0 = vld [vmem:[#allocation19 + $0x88c] ss:$12 sps:$4 sm:$0xff]   ;;  %v10016_v49 = vld [vmem:[#allocation19 + $0x888] ss:$12 sps:$4 sm:$0xff]   ;;  %v10021_v54 = vld [vmem:[#allocation19 + $0x8a4] ss:$12 sps:$4 sm:$0xff]  }
 0xa2e   :  { %v10024_v55 = vld [vmem:[#allocation19 + $0x8bc] ss:$12 sps:$4 sm:$0xff]  }
 0xa30   :  { %7229 = vmatpush1.bf16.msra.mxu0 %v9956_v56 }
 0xa31   :  { %7230 = vmatprep.subr.bf16.mxu0 %v9961_v59 }
 0xa34   :  { %7231 = vmatpush1.bf16.msra.mxu0 %v9959_v60  ;;  %v10027_v60 = vld [vmem:[#allocation19 + $0x8d4] ss:$12 sps:$4 sm:$0xff]  }
 0xa35   :  { %7232 = vmatprep.subr.bf16.mxu0 %v9964_v1 }
 0xa38   :  { %7233 = vmatpush1.bf16.msra.mxu0 %v9962_v53 }
 0xa39   :  { %7234 = vmatprep.subr.bf16.mxu0 %v9967_v28 }
 0xa3c   :  { %7235 = vmatpush1.bf16.msra.mxu0 %v9965_v27 }
 0xa3d   :  { %7236 = vmatprep.subr.bf16.mxu0 %v9970_v2 }
 0xa40   :  { %7237 = vmatpush1.bf16.msra.mxu0 %v9968_v4  ;;  %v10025_v4 = vld [vmem:[#allocation19 + $0x8d0] ss:$12 sps:$4 sm:$0xff]  }
 0xa41   :  { %7238 = vmatprep.subr.bf16.mxu0 %v9973_v6  ;;  %v10030_v6 = vld [vmem:[#allocation19 + $0x8ec] ss:$12 sps:$4 sm:$0xff]  }
 0xa44   :  { %7239 = vmatpush1.bf16.msra.mxu0 %v9971_v7 }
 0xa45   :  { %7240 = vmatprep.subr.bf16.mxu0 %v9976_v12  ;;  %v10028_v12 = vld [vmem:[#allocation19 + $0x8e8] ss:$12 sps:$4 sm:$0xff]  }
 0xa48   :  { %7241 = vmatpush1.bf16.msra.mxu0 %v9974_v13 }
 0xa49   :  { %7242 = vmatprep.subr.bf16.mxu0 %v9979_v14 }
 0xa4c   :  { %7243 = vmatpush1.bf16.msra.mxu0 %v9977_v44 }
 0xa4d   :  { %7244 = vmatprep.subr.bf16.mxu0 %v9982_v17 }
 0xa50   :  { %7245 = vmatpush1.bf16.msra.mxu0 %v9980_v52 }
 0xa51   :  { %7257 = vmatprep.subr.bf16.mxu0 %v9985_v8 }
 0xa53   :  { %7247 = vmatmul.mubr.bf16.vlgmr.msra.gmra.mrb[32].mxu0 %v11007_v40 }
 0xa54   :  { %7258 = vmatpush1.bf16.msra.mxu0 %v9983_v50  ;;  %7289 = vmatprep.mubr.bf16.mxu0 %v11013_v47  ;;  %v10003_v47 = vld [vmem:[#allocation19 + $0x814] ss:$12 sps:$4 sm:$0xff]  }
 0xa55   :  { %7259 = vmatprep.subr.bf16.mxu0 %v9988_v10 }
 0xa58   :  { %7260 = vmatpush1.bf16.msra.mxu0 %v9986_v36 }
 0xa59   :  { %7261 = vmatprep.subr.bf16.mxu0 %v9991_v18 }
 0xa5c   :  { %7262 = vmatpush1.bf16.msra.mxu0 %v9989_v51 }
 0xa5d   :  { %7263 = vmatprep.subr.bf16.mxu0 %v9994_v19 }
 0xa60   :  { %7264 = vmatpush1.bf16.msra.mxu0 %v9992_v21 }
 0xa61   :  { %7265 = vmatprep.subr.bf16.mxu0 %v9997_v23 }
 0xa64   :  { %7266 = vmatpush1.bf16.msra.mxu0 %v9995_v22  ;;  %v8655_v40 = vpop.f32.mrb[60].mxu1 }
 0xa65   :  { %v8656_v24 = vpop.f32.mrb[61].mxu1  ;;  %7267 = vmatprep.subr.bf16.mxu0 %v10000_v20 }
 0xa66   :  { %v8657_v29 = vadd.f32 %v8656_v24, %v8655_v40  ;;  %v8658_v30 = vpop.f32.mrb[62].mxu1  ;;  %v5494_v40 = vrot.slane %v11021_v62, %v10725_v26 }
 0xa67   :  { %v8659_v32 = vpop.f32.mrb[63].mxu1 }
 0xa68   :  { %v7417_v31 = vadd.f32 %v8657_v29, %v11025_v42  ;;  %v8660_v38 = vadd.f32 %v8659_v32, %v8658_v30  ;;  %7268 = vmatpush1.bf16.msra.mxu0 %v9998_v11  ;;  %v10019_v42 = vld [vmem:[#allocation19 + $0x8a0] ss:$12 sps:$4 sm:$0xff]  }
 0xa69   :  { %7269 = vmatprep.subr.bf16.mxu0 %v10003_v47 }
 0xa6a   :  { %v7420_v35 = vadd.f32 %v8660_v38, %v11027_v15  ;;  %v10022_v15 = vld [vmem:[#allocation19 + $0x8b8] ss:$12 sps:$4 sm:$0xff]  }
 0xa6c   :  { %7270 = vmatpush1.bf16.msra.mxu0 %v10001_v61 }
 0xa6d   :  { %7271 = vmatprep.subr.bf16.mxu0 %v10006_v33 }
 0xa70   :  { %7272 = vmatpush1.bf16.msra.mxu0 %v10004_v41 }
 0xa71   :  { %7273 = vmatprep.subr.bf16.mxu0 %v10009_v45 }
 0xa74   :  { %7274 = vmatpush1.bf16.msra.mxu0 %v10007_v46 }
 0xa75   :  { %7275 = vmatprep.subr.bf16.mxu0 %v10012_v34 }
 0xa78   :  { %7276 = vmatpush1.bf16.msra.mxu0 %v10010_v48 }
 0xa79   :  { %7277 = vmatprep.subr.bf16.mxu0 %v10015_v57 }
 0xa7c   :  { %7278 = vmatpush1.bf16.msra.mxu0 %v10013_v39 }
 0xa7d   :  { %7279 = vmatprep.subr.bf16.mxu0 %v10018_v0 }
 0xa80   :  { %7280 = vmatpush1.bf16.msra.mxu0 %v10016_v49 }
 0xa81   :  { %7281 = vmatprep.subr.bf16.mxu0 %v10021_v54 }
 0xa84   :  { %v8677_v56 = vpop.f32.mrb[64].mxu1  ;;  %7282 = vmatpush1.bf16.msra.mxu0 %v10019_v42 }
 0xa85   :  { %v8678_v59 = vpop.f32.mrb[65].mxu1  ;;  %7283 = vmatprep.subr.bf16.mxu0 %v10024_v55 }
 0xa86   :  { %v8679_v1 = vadd.f32 %v8678_v59, %v8677_v56  ;;  %v8680_v53 = vpop.f32.mrb[66].mxu1 }
 0xa87   :  { %v8681_v28 = vpop.f32.mrb[67].mxu1 }
 0xa88   :  { %v7458_v27 = vadd.f32 %v8679_v1, %v7417_v31  ;;  %v8682_v2 = vadd.f32 %v8681_v28, %v8680_v53  ;;  %7284 = vmatpush1.bf16.msra.mxu0 %v10022_v15 }
 0xa89   :  { %7285 = vmatprep.subr.bf16.mxu0 %v10027_v60 }
 0xa8a   :  { %v7461_v7 = vadd.f32 %v8682_v2, %v7420_v35 }
 0xa8c   :  { %7286 = vmatpush1.bf16.msra.mxu0 %v10025_v4 }
 0xa8d   :  { %7287 = vmatprep.subr.bf16.mxu0 %v10030_v6 }
 0xa90   :  { %7288 = vmatpush1.bf16.msra.mxu0 %v10028_v12 }
 0xa93   :  { %7290 = vmatmul.mubr.bf16.vlgmr.msra.gmra.mrb[32].mxu0 %v11009_v37  ;;  %v5498_v37 = vrot.slane %v11021_v62, %v10722_v25 }
 0xac4   :  { %v8699_v13 = vpop.f32.mrb[68].mxu1 }
 0xac5   :  { %v8700_v14 = vpop.f32.mrb[69].mxu1 }
 0xac6   :  { %v8701_v44 = vadd.f32 %v8700_v14, %v8699_v13  ;;  %v8702_v17 = vpop.f32.mrb[70].mxu1  ;;  %v7552_v14 = vld [vmem:[#allocation22] sm:$0x7] }
 0xac7   :  { %v8703_v52 = vpop.f32.mrb[71].mxu1 }
 0xac8   :  { %v7499_v8 = vadd.f32 %v8701_v44, %v7458_v27  ;;  %v8704_v50 = vadd.f32 %v8703_v52, %v8702_v17  ;;  %v7553_v44 = vld [vmem:[#allocation23] sm:$0x7]  ;;  %v7600_v17 = vrot.slane %v7552_v14, %v10725_v26  ;;  %v7604_v52 = vrot.slane %v7552_v14, %v10722_v25 }
 0xaca   :  { %v7502_v10 = vadd.f32 %v8704_v50, %v7461_v7 }
 0xae4   :  { %v8721_v36 = vpop.f32.mrb[72].mxu1 }
 0xae5   :  { %v8722_v18 = vpop.f32.mrb[73].mxu1 }
 0xae6   :  { %v8723_v51 = vadd.f32 %v8722_v18, %v8721_v36  ;;  %v8724_v19 = vpop.f32.mrb[74].mxu1  ;;  %v7626_v36 = vrot.slane %v7553_v44, %v10722_v25 }
 0xae7   :  { %v8725_v21 = vpop.f32.mrb[75].mxu1 }
 0xae8   :  { %v7540_v23 = vadd.f32 %v8723_v51, %v7499_v8  ;;  %v8726_v22 = vadd.f32 %v8725_v21, %v8724_v19  ;;  %v7608_v8 = vrot.slane %v7552_v14, %v10761_v3 }
 0xaea   :  { %v7543_v20 = vadd.f32 %v8726_v22, %v7502_v10  ;;  %v7548_v45 = vadd.f32 %v7540_v23, %v10853_v63  ;;  %v7622_v10 = vrot.slane %v7553_v44, %v10725_v26  ;;  %v7630_v23 = vrot.slane %v7553_v44, %v10761_v3 }
 0xaec   :  { %v7551_v34 = vadd.f32 %v7543_v20, %v10862_v16 }
 0xb66   :  { %v7291_v11 = vpop.f32.mrb[32].mxu0 }
 0xb67   :  { %v8835_v24 = vadd.f32 %v7291_v11, %v5494_v40  ;;  %v7293_v47 = vpop.f32.mrb[33].mxu0 }
 0xb68   :  { %v8836_v29 = vadd.f32 %v7293_v47, %v5498_v37  ;;  %v7295_v30 = vpop.f32.mrb[34].mxu0 }
 0xb69   :  { %v7546_v32 = vadd.f32 %v8835_v24, %v10849_v43  ;;  %v8837_v31 = vadd.f32 %v7295_v30, %v5494_v40  ;;  %v7297_v38 = vpop.f32.mrb[35].mxu0 }
 0xb6a   :  { %v7547_v61 = vadd.f32 %v8836_v29, %v10851_v58  ;;  %v8838_v33 = vadd.f32 %v7297_v38, %v5498_v37 }
 0xb6b   :  { %v7549_v35 = vadd.f32 %v8837_v31, %v10858_v5 }
 0xb6c   :  { %v7550_v41 = vadd.f32 %v8838_v33, %v10860_v9  ;;  %v7554_v46 = vadd.f32 %v7547_v61, %v7546_v32 }
 0xb6e   :  { %v7555_v62 = vadd.f32 %v7554_v46, %v7548_v45  ;;  %v7558_v48 = vadd.f32 %v7550_v41, %v7549_v35 }
 0xb70   :  { %7556 = vadd.xlane.f32.xlu0 %v7555_v62  ;;  %v7559_v57 = vadd.f32 %v7558_v48, %v7551_v34 }
 0xb72   :  { %7560 = vadd.xlane.f32.xlu1 %v7559_v57 }
 0xbfd   :  { %v7557_v43 = vpop.xlane.xlu0 %7556 }
 0xbfe   :  { %v7562_v39 = vmul.f32 0.0026041667, %v7557_v43 }
 0xbff   :  { %v7561_v0 = vpop.xlane.xlu1 %7560 }
 0xc00   :  { %v7564_v49 = vsub.f32 %v7546_v32, %v7562_v39  ;;  %v7565_v58 = vsub.f32 %v7547_v61, %v7562_v39  ;;  %v7563_v54 = vmul.f32 0.0026041667, %v7561_v0  ;;  %v7566_v42 = vsub.f32 %v7548_v45, %v7562_v39 }
 0xc02   :  { %v7567_v5 = vsub.f32 %v7549_v35, %v7563_v54  ;;  %v7568_v55 = vsub.f32 %v7550_v41, %v7563_v54  ;;  %v7569_v9 = vsub.f32 %v7551_v34, %v7563_v54  ;;  %v7570_v56 = vmul.f32 %v7564_v49, %v7564_v49 }
 0xc03   :  { %v7571_v63 = vmul.f32 %v7565_v58, %v7565_v58  ;;  %v7572_v60 = vmul.f32 %v7566_v42, %v7566_v42 }
 0xc04   :  { %v7573_v15 = vmul.f32 %v7567_v5, %v7567_v5  ;;  %v7574_v59 = vmul.f32 %v7568_v55, %v7568_v55  ;;  %v7575_v1 = vmul.f32 %v7569_v9, %v7569_v9 }
 0xc05   :  { %v7576_v16 = vadd.f32 %v7571_v63, %v7570_v56 }
 0xc06   :  { %v7580_v53 = vadd.f32 %v7574_v59, %v7573_v15 }
 0xc07   :  { %v7577_v28 = vadd.f32 %v7576_v16, %v7572_v60 }
 0xc08   :  { %v7581_v27 = vadd.f32 %v7580_v53, %v7575_v1 }
 0xc09   :  { %7578 = vadd.xlane.f32.xlu0 %v7577_v28 }
 0xc0a   :  { %7582 = vadd.xlane.f32.xlu1 %v7581_v27 }
 0xc96   :  { %v7579_v2 = vpop.xlane.xlu0 %7578 }
 0xc97   :  { %v7584_v4 = vmul.f32 0.0026041667, %v7579_v2  ;;  %v7583_v6 = vpop.xlane.xlu1 %7582 }
 0xc98   :  { %v7585_v7 = vmul.f32 0.0026041667, %v7583_v6 }
 0xc99   :  { %v7586_v12 = vadd.f32 1e-05, %v7584_v4 }
 0xc9a   :  { %v7587_v13 = vadd.f32 1e-05, %v7585_v7 }
 0xc9b   :  { %10047 = vrsqrt.f32 %v7586_v12 }
 0xc9c   :  { %10049 = vrsqrt.f32 %v7587_v13 }
 0xca5   :  { %v10048_v50 = vpop.eup %10047 }
 0xca6   :  { %v10050_v18 = vpop.eup %10049  ;;  %v7590_v51 = vmul.f32 %v10048_v50, %v7564_v49  ;;  %v7591_v19 = vmul.f32 %v10048_v50, %v7565_v58  ;;  %v7592_v21 = vmul.f32 %v10048_v50, %v7566_v42 }
 0xca7   :  { %v7593_v22 = vmul.f32 %v10050_v18, %v7567_v5  ;;  %v7594_v20 = vmul.f32 %v10050_v18, %v7568_v55  ;;  %v7595_v40 = vmul.f32 %v10050_v18, %v7569_v9 }
 0xca8   :  { %v7612_v37 = vmul.f32 %v7600_v17, %v7590_v51  ;;  %v7613_v11 = vmul.f32 %v7604_v52, %v7591_v19  ;;  %v7614_v24 = vmul.f32 %v7608_v8, %v7592_v21 }
 0xca9   :  { %v7615_v47 = vmul.f32 %v7600_v17, %v7593_v22  ;;  %v7616_v29 = vmul.f32 %v7604_v52, %v7594_v20  ;;  %v7617_v30 = vmul.f32 %v7608_v8, %v7595_v40 }
 0xcaa   :  { %v7634_v32 = vadd.f32 %v7622_v10, %v7612_v37  ;;  %v7635_v31 = vadd.f32 %v7626_v36, %v7613_v11  ;;  %v7636_v26 = vadd.f32 %v7630_v23, %v7614_v24 }
 0xcab   :  { %v7637_v25 = vadd.f32 %v7622_v10, %v7615_v47  ;;  %v7638_v38 = vadd.f32 %v7626_v36, %v7616_v29  ;;  %v7639_v61 = vadd.f32 %v7630_v23, %v7617_v30 }
 0xcac   :  { %v8490_v33 = vpack.c.bf16 %v7635_v31, %v7634_v32  ;;  %v8491_v35 = vpack.c.bf16 %v7636_v26, %v7636_v26 }
 0xcad   :  { %v8492_v3 = vpack.c.bf16 %v7638_v38, %v7637_v25  ;;  %v8493_v41 = vpack.c.bf16 %v7639_v61, %v7639_v61 }
 0xcae   :  { %7660 = vst [vmem:[#allocation25] sm:$0xff] %v8490_v33  ;;  %7661 = vst [vmem:[#allocation25 + $0x8] sm:$0xf] %v8491_v35 }
 0xcaf   :  { %7662 = vst [vmem:[#allocation25 + $0xc] sm:$0xff] %v8492_v3  ;;  %7663 = vst [vmem:[#allocation25 + $0x14] sm:$0xf] %v8493_v41 }
 0xcb0   :  { %10376 = shalt.err (!%p10373_p4)
}
 0xcb1   :  { %s10377_s25 = scalar_lea.hbm %s11079_s14, 384 }
 0xcb2   :  { %p10378_p5 = scmp.ne.s32.totalorder %s11079_s14, %s10377_s25  ;;  %p10381_p6 = scmp.lt.u32.totalorder %s10377_s25, %s11079_s14 }
 0xcb4   :  { %p10383_p7 = pnand %p10381_p6, %p10378_p5 }
 0xcb6   :  { %10386 = shalt.err (!%p10383_p7)
}
 0xcb7   :  { %7675 = dma.vmem_to_hbm [thread:$0]  %s7670_s8, 384, %s11079_s14, [#allocation4], %s10407_s1, %s10407_s1, %s10408_s30  }
 0xcb8   :  { %10403 = dma.done.wait [#allocation4], 384  }
 0xcb9   :  { %10404 = vsyncadd [#allocation4], 4294966912 }
 0xcba   :  { %7679 = vsyncpa [#allocation3], 1 }
 0xcbb   :  { %7680 = vsyncpa [#allocation6], 1 }
 0xcbc   :  { %7681 = vsyncpa [#allocation9], 1 }
 0xcbd   :  { %7682 = vsyncpa [#allocation12], 1 }
 0xcbe   :  { %7683 = vsyncpa [#allocation15], 1 }
 0xcbf   :  { %7684 = vsyncpa [#allocation18], 1 }
 0xcc0   :  { %7685 = vsyncpa [#allocation21], 1 }
 0xcc1   :  { %7686 = vsyncpa [#allocation24], 1 }
 0xcc2   :  { %7687 = vsyncpa [#allocation4], 1 }

</bundles_post_ra>
